<compile_context>
chip_gen: v5e
topology: v5e:2x2
jax: 0.10.0
libtpu: 0.0.40
codegen_flags: <defaults>
</compile_context>

<pallas_src>
import math

import jax
import jax.numpy as jnp
from jax.experimental import pallas as pl
from jax.experimental.pallas import tpu as pltpu


def _lrelu(x, slope=0.1):  # nn.LeakyReLU(0.1)
    return jnp.where(x > 0, x, slope * x)


def _pointnet_h2(x_ref, w1t_ref, b1_ref, w2_ref, b2_ref):
    """Shared PointNet layers 1-2 for one (1, 3, TN) vertex block.

    Returns h2 in bf16, points-major (TN, 64).
    """
    x = x_ref[0]                         # (3, TN) f32, points lane-dense
    w1t = w1t_ref[...]                   # (64, 3) f32
    b1 = b1_ref[...]                     # (64, 1) f32
    # Layer 1 (K=3) channels-major on the VPU: every broadcast is a hoisted 2-D
    # broadcast ((64,1) over lanes, (1,TN) over sublanes) -- no per-row lane broadcast.
    h1_cm = _lrelu(
        w1t[:, 0:1] * x[0:1, :]
        + w1t[:, 1:2] * x[1:2, :]
        + w1t[:, 2:3] * x[2:3, :]
        + b1)                            # (64, TN) f32
    h1 = h1_cm.T                         # (TN, 64) points-major (single small XLU transpose)
    h1b = h1.astype(jnp.bfloat16)
    h2 = _lrelu(
        jnp.dot(h1b, w2_ref[...], preferred_element_type=jnp.float32) + b2_ref[...])
    return h2.astype(jnp.bfloat16)       # (TN, 64) bf16


def _pme_pool_kernel(
    x_ref,                               # (1, 3, TN) f32
    w1t_ref, b1_ref,                     # (64, 3) f32, (64, 1) f32
    w2_ref, b2_ref,                      # (64, 64) bf16, (1, 64) f32
    w3_ref, b3_ref,                      # (64, 128) bf16, (1, 128) f32
    w4_ref, b4_ref,                      # (128, 512) bf16, (1, 512) f32
    wc1b_ref, bc1_ref,                   # (512, 512) bf16, (1, 512) f32
    f1g_ref,                             # out: (1, 1, 512) f32
    gmax_ref,                            # scratch: (1, 512) f32 running max
):
    n = pl.program_id(1)

    @pl.when(n == 0)
    def _init():
        gmax_ref[...] = jnp.full(gmax_ref.shape, -jnp.inf, gmax_ref.dtype)

    h2b = _pointnet_h2(x_ref, w1t_ref, b1_ref, w2_ref, b2_ref)          # (TN, 64) bf16
    h3 = _lrelu(
        jnp.dot(h2b, w3_ref[...], preferred_element_type=jnp.float32) + b3_ref[...])
    h4 = _lrelu(
        jnp.dot(h3.astype(jnp.bfloat16), w4_ref[...],
                preferred_element_type=jnp.float32)
        + b4_ref[...]).astype(jnp.bfloat16)                              # (TN, 512) bf16

    # Max-pool over points, done as a pairwise bf16 tree (exact: rounding is monotone)
    # down to 8 rows, then one tiny f32 sublane reduction.  Keeps the big (TN,512)
    # tensor bf16 (half the VMEM round-trip) using only elementwise maxima.
    m = h4
    rows = m.shape[0]
    while rows > 8 and rows % 2 == 0:
        half = rows // 2
        m = jnp.maximum(m[:half], m[half:])
        rows = half
    tile_max = jnp.max(m.astype(jnp.float32), axis=0, keepdims=True)    # (1, 512) f32
    gmax_ref[...] = jnp.maximum(gmax_ref[...], tile_max)

    @pl.when(n == pl.num_programs(1) - 1)
    def _finalize():
        # Hoisted pooled-feature matmul: computed once per batch element, not per N tile.
        gb = gmax_ref[...].astype(jnp.bfloat16)                           # (1, 512)
        f1g = jnp.dot(gb, wc1b_ref[...], preferred_element_type=jnp.float32) + bc1_ref[...]
        f1g_ref[...] = f1g.reshape(f1g_ref.shape)


def _pme_head_kernel(
    x_ref,                               # (1, 3, TN) f32
    f1g_ref,                             # (1, 1, 512) f32  (= g @ wc1b + bc1)
    w1t_ref, b1_ref,                     # (64, 3) f32, (64, 1) f32
    w2_ref, b2_ref,                      # (64, 64) bf16, (1, 64) f32
    wc1a_ref,                            # (64, 512) bf16
    wc2_ref, bc2_ref,                    # (512, 128) bf16, (1, 128) f32
    wc3_ref, bc3_ref,                    # (128, 64) bf16, (1, 64) f32
    wp_ref, bp_ref,                      # (64, 1) f32, (1, 1) f32
    out_ref,                             # (1, 1, TN) f32 -- lane-dense output block
):
    h2b = _pointnet_h2(x_ref, w1t_ref, b1_ref, w2_ref, b2_ref)           # (TN, 64) bf16

    # fc1 on concat([h2, tile(g)]) as a split matmul; pooled part was precomputed.
    f1_pts = jnp.dot(h2b, wc1a_ref[...], preferred_element_type=jnp.float32)  # (TN, 512)
    f1 = _lrelu(f1_pts + f1g_ref[0]).astype(jnp.bfloat16)                 # (TN, 512) bf16
    f2 = _lrelu(
        jnp.dot(f1, wc2_ref[...], preferred_element_type=jnp.float32) + bc2_ref[...])
    f3 = _lrelu(
        jnp.dot(f2.astype(jnp.bfloat16), wc3_ref[...],
                preferred_element_type=jnp.float32)
        + bc3_ref[...])                                                    # (TN, 64) f32

    # fc_pmap (64 -> 1): transpose to channels-major, VPU multiply, sublane reduce.
    # Produces a lane-dense (1, TN) row directly (no masked 1-lane stores).
    f3_cm = f3.T                                                           # (64, TN)
    pm = jnp.sum(f3_cm * wp_ref[...], axis=0, keepdims=True)               # (1, TN)
    out_ref[...] = (pm + bp_ref[...]).reshape(out_ref.shape)


def _pick_n_tile(N, max_tile=2048):
    """Largest lane-aligned tile dividing N; falls back to the full axis."""
    if N % 128 == 0:
        t = min(max_tile, N)
        while t >= 128:
            if N % t == 0:
                return t
            t -= 128
    return N


def pme_estimator_forward(smpl_verts, params, *, n_tile=None,
                          start_features=None, encoder_features=None,
                          lp_features=None, gl_features=None):
    """smpl_verts: (B, N, 3) f32.  Returns (out_pmap (B, N) f32, out_contact=None)."""
    del start_features, encoder_features, lp_features, gl_features  # unused: indexing_mode=0
    B, N, D = smpl_verts.shape
    assert D == 3

    # Lane-dense vertex layout for the kernels: (B, 3, N) -> block (1, 3, TN).
    verts_t = jnp.swapaxes(smpl_verts, 1, 2)

    TN = _pick_n_tile(N) if n_tile is None else n_tile
    # TODO(synk): for SMPL N=6890 (no 128-aligned divisor) pad N to a TN multiple and
    #             mask padded rows to -inf in the phase-1 max-pool.
    assert N % TN == 0
    assert TN == N or TN % 128 == 0
    NT = N // TN

    def cspec(arr):  # full-array block, constant index map
        nd = arr.ndim
        return pl.BlockSpec(arr.shape, lambda b, n, _nd=nd: (0,) * _nd)

    verts_spec = pl.BlockSpec((1, 3, TN), lambda b, n: (b, 0, n))

    # ---- Phase 1: PointNet + per-batch max-pool + hoisted g @ wc1b + bc1 ----
    pool_weights = [params["w1t"], params["b1c"], params["w2"], params["b2"],
                    params["w3"], params["b3"], params["w4"], params["b4"],
                    params["wc1b"], params["bc1"]]
    f1_glb = pl.pallas_call(
        _pme_pool_kernel,
        out_shape=jax.ShapeDtypeStruct((B, 1, 512), jnp.float32),
        grid_spec=pltpu.PrefetchScalarGridSpec(
            num_scalar_prefetch=0,
            grid=(B, NT),
            in_specs=[verts_spec] + [cspec(w) for w in pool_weights],
            out_specs=pl.BlockSpec((1, 1, 512), lambda b, n: (b, 0, 0)),
            scratch_shapes=[pltpu.VMEM((1, 512), jnp.float32)]),
        compiler_params=pltpu.CompilerParams(
            dimension_semantics=("parallel", "arbitrary"),
            vmem_limit_bytes=48 * 1024 * 1024),   # <= v7x physical 64 MiB; safe on v5e/v6e
    )(verts_t, *pool_weights)

    # ---- Phase 2: recompute h1/h2 per tile, run the head, lane-dense output ----
    head_weights = [params["w1t"], params["b1c"], params["w2"], params["b2"],
                    params["wc1a"], params["wc2"], params["bc2"],
                    params["wc3"], params["bc3"], params["wp_col"], params["bp"]]
    out3 = pl.pallas_call(
        _pme_head_kernel,
        out_shape=jax.ShapeDtypeStruct((B, 1, N), jnp.float32),
        grid_spec=pltpu.PrefetchScalarGridSpec(
            num_scalar_prefetch=0,
            grid=(B, NT),
            in_specs=[verts_spec,
                      pl.BlockSpec((1, 1, 512), lambda b, n: (b, 0, 0))]
                     + [cspec(w) for w in head_weights],
            out_specs=pl.BlockSpec((1, 1, TN), lambda b, n: (b, 0, n))),
        compiler_params=pltpu.CompilerParams(
            dimension_semantics=("parallel", "parallel"),
            vmem_limit_bytes=48 * 1024 * 1024),
    )(verts_t, f1_glb, *head_weights)

    out_pmap = out3.reshape(B, N)
    out_contact = None  # use_contact=False
    return out_pmap, out_contact


def init_params(key):
    """PyTorch-style uniform(+-1/sqrt(fan_in)) init.  MXU weights stored in bf16."""
    def linear(k, fan_in, fan_out):
        kw, kb = jax.random.split(k)
        bound = 1.0 / math.sqrt(fan_in)
        w = jax.random.uniform(kw, (fan_in, fan_out), jnp.float32, -bound, bound)
        b = jax.random.uniform(kb, (1, fan_out), jnp.float32, -bound, bound)
        return w, b

    keys = jax.random.split(key, 8)
    p = {}
    w1, b1 = linear(keys[0], 3, 64)
    p["w1t"] = jnp.transpose(w1)                  # (64, 3) f32 -- VPU layer 1
    p["b1c"] = jnp.transpose(b1)                  # (64, 1) f32
    w2, p["b2"] = linear(keys[1], 64, 64);   p["w2"] = w2.astype(jnp.bfloat16)
    w3, p["b3"] = linear(keys[2], 64, 128);  p["w3"] = w3.astype(jnp.bfloat16)
    w4, p["b4"] = linear(keys[3], 128, 512); p["w4"] = w4.astype(jnp.bfloat16)
    wc1, p["bc1"] = linear(keys[4], 576, 512)     # fc1 on concat([h2(64), g(512)])
    p["wc1a"] = wc1[:64].astype(jnp.bfloat16)     # per-point part
    p["wc1b"] = wc1[64:].astype(jnp.bfloat16)     # pooled part (hoisted matmul)
    wc2, p["bc2"] = linear(keys[5], 512, 128); p["wc2"] = wc2.astype(jnp.bfloat16)
    wc3, p["bc3"] = linear(keys[6], 128, 64);  p["wc3"] = wc3.astype(jnp.bfloat16)
    wp, bp = linear(keys[7], 64, 1)
    p["wp_col"] = wp                              # (64, 1) f32 -- VPU/XLU epilogue
    p["bp"] = bp                                  # (1, 1) f32
    return p


def reference_forward(smpl_verts, params):
    """Pure-JAX reference mirroring the kernel's mixed precision (bf16 MXU, f32 acc)."""
    bf16 = jnp.bfloat16

    def mm(a, w):
        return jnp.matmul(a.astype(bf16), w, preferred_element_type=jnp.float32)

    x = smpl_verts                                      # (B, N, 3) f32
    w1t = params["w1t"]                                 # (64, 3) f32
    b1 = params["b1c"][:, 0]
    h1 = _lrelu(x[..., 0:1] * w1t[:, 0]
                + x[..., 1:2] * w1t[:, 1]
                + x[..., 2:3] * w1t[:, 2]
                + b1)                                   # (B, N, 64)
    h2 = _lrelu(mm(h1, params["w2"]) + params["b2"])
    h3 = _lrelu(mm(h2, params["w3"]) + params["b3"])
    h4 = _lrelu(mm(h3, params["w4"]) + params["b4"]).astype(bf16)
    g = jnp.max(h4, axis=1, keepdims=True)              # (B, 1, 512) bf16
    f1g = mm(g, params["wc1b"]) + params["bc1"]         # (B, 1, 512) f32
    f1 = _lrelu(mm(h2, params["wc1a"]) + f1g)
    f2 = _lrelu(mm(f1, params["wc2"]) + params["bc2"])
    f3 = _lrelu(mm(f2, params["wc3"]) + params["bc3"])  # (B, N, 64) f32
    wp = params["wp_col"][:, 0]                         # (64,)
    return jnp.sum(f3 * wp, axis=-1) + params["bp"][0, 0]


if __name__ == "__main__":
    # Small demo shapes: 2 batches x 256 vertices x 3D coords, N tile 128 so the
    # running-max accumulator and both parallel grid axes are exercised.
    B, N = 2, 256
    key = jax.random.PRNGKey(0)
    k_in, k_par = jax.random.split(key)
    smpl_verts = jax.random.normal(k_in, (B, N, 3), jnp.float32)
    # Unused for indexing_mode=0 but part of the module signature:
    # start_features, encoder_features, lp_features, gl_features.
    params = init_params(k_par)

    out_pmap, out_contact = pme_estimator_forward(smpl_verts, params, n_tile=128)
    out_pmap = jax.block_until_ready(out_pmap)

    ref = reference_forward(smpl_verts, params)
    max_diff = float(jnp.max(jnp.abs(out_pmap - ref)))

    assert out_pmap.shape == (B, N)
    assert out_pmap.dtype == jnp.float32
    assert out_contact is None
    assert max_diff < 5e-2, f"kernel vs reference max|diff| = {max_diff}"
    print("KERNEL_OK")
</pallas_src>

<mosaic_0001>
module attributes {stable_mosaic.version = 11 : i64} {
  func.func @_pme_pool_kernel(%arg0: i32, %arg1: i32, %arg2: memref<1x3x128xf32, #tpu.memory_space<vmem>>, %arg3: memref<64x3xf32, #tpu.memory_space<vmem>>, %arg4: memref<64x1xf32, #tpu.memory_space<vmem>>, %arg5: memref<64x64xbf16, #tpu.memory_space<vmem>>, %arg6: memref<1x64xf32, #tpu.memory_space<vmem>>, %arg7: memref<64x128xbf16, #tpu.memory_space<vmem>>, %arg8: memref<1x128xf32, #tpu.memory_space<vmem>>, %arg9: memref<128x512xbf16, #tpu.memory_space<vmem>>, %arg10: memref<1x512xf32, #tpu.memory_space<vmem>>, %arg11: memref<512x512xbf16, #tpu.memory_space<vmem>>, %arg12: memref<1x512xf32, #tpu.memory_space<vmem>>, %arg13: memref<1x1x512xf32, #tpu.memory_space<vmem>>, %arg14: memref<1x512xf32, #tpu.memory_space<vmem>>) attributes {dimension_semantics = [#tpu.dimension_semantics<parallel>, #tpu.dimension_semantics<arbitrary>], iteration_bounds = array<i64: 2, 2>, scalar_prefetch = 0 : i64, scratch_operands = 1 : i64, tpu.core_type = #tpu.core_type<tc>, window_params = [{transform_indices = @transform_0, window_bounds = array<i64: 1, 3, 128>}, {pipeline_mode = #tpu.pipeline_mode<synchronous>, transform_indices = @transform_1, window_bounds = array<i64: 64, 3>}, {pipeline_mode = #tpu.pipeline_mode<synchronous>, transform_indices = @transform_2, window_bounds = array<i64: 64, 1>}, {pipeline_mode = #tpu.pipeline_mode<synchronous>, transform_indices = @transform_3, window_bounds = array<i64: 64, 64>}, {pipeline_mode = #tpu.pipeline_mode<synchronous>, transform_indices = @transform_4, window_bounds = array<i64: 1, 64>}, {pipeline_mode = #tpu.pipeline_mode<synchronous>, transform_indices = @transform_5, window_bounds = array<i64: 64, 128>}, {pipeline_mode = #tpu.pipeline_mode<synchronous>, transform_indices = @transform_6, window_bounds = array<i64: 1, 128>}, {pipeline_mode = #tpu.pipeline_mode<synchronous>, transform_indices = @transform_7, window_bounds = array<i64: 128, 512>}, {pipeline_mode = #tpu.pipeline_mode<synchronous>, transform_indices = @transform_8, window_bounds = array<i64: 1, 512>}, {pipeline_mode = #tpu.pipeline_mode<synchronous>, transform_indices = @transform_9, window_bounds = array<i64: 512, 512>}, {pipeline_mode = #tpu.pipeline_mode<synchronous>, transform_indices = @transform_10, window_bounds = array<i64: 1, 512>}, {transform_indices = @transform_11, window_bounds = array<i64: 1, 1, 512>}]} {
    %c0_i32 = arith.constant 0 : i32
    %0 = arith.cmpi eq, %arg1, %c0_i32 : i32
    %1 = arith.extui %0 : i1 to i32
    %c0_i32_0 = arith.constant 0 : i32
    %2 = arith.cmpi ne, %1, %c0_i32_0 : i32
    scf.if %2 {
      %cst_35 = arith.constant 0xFF800000 : f32
      %87 = vector.broadcast %cst_35 : f32 to vector<1x512xf32>
      %c0_36 = arith.constant 0 : index
      %c0_37 = arith.constant 0 : index
      %88 = vector.load %arg14[%c0_36, %c0_37] : memref<1x512xf32, #tpu.memory_space<vmem>>, vector<1x512xf32>
      tpu.vector_store %arg14[%c0_36, %c0_37], %87 {strides = array<i32>} : memref<1x512xf32, #tpu.memory_space<vmem>>, vector<1x512xf32>,
    } else {
    }
    %c0 = arith.constant 0 : index
    %c0_1 = arith.constant 0 : index
    %c0_2 = arith.constant 0 : index
    %3 = vector.load %arg2[%c0, %c0_1, %c0_2] : memref<1x3x128xf32, #tpu.memory_space<vmem>>, vector<1x3x128xf32>
    %4 = vector.shape_cast %3 : vector<1x3x128xf32> to vector<3x128xf32>
    %c0_3 = arith.constant 0 : index
    %c0_4 = arith.constant 0 : index
    %5 = vector.load %arg3[%c0_3, %c0_4] : memref<64x3xf32, #tpu.memory_space<vmem>>, vector<64x3xf32>
    %c0_5 = arith.constant 0 : index
    %c0_6 = arith.constant 0 : index
    %6 = vector.load %arg4[%c0_5, %c0_6] : memref<64x1xf32, #tpu.memory_space<vmem>>, vector<64x1xf32>
    %7 = vector.extract_strided_slice %5 {offsets = [0, 0], sizes = [64, 1], strides = [1, 1]} : vector<64x3xf32> to vector<64x1xf32>
    %8 = vector.extract_strided_slice %4 {offsets = [0, 0], sizes = [1, 128], strides = [1, 1]} : vector<3x128xf32> to vector<1x128xf32>
    %9 = vector.broadcast %7 : vector<64x1xf32> to vector<64x128xf32>
    %10 = vector.broadcast %8 : vector<1x128xf32> to vector<64x128xf32>
    %11 = arith.mulf %9, %10 : vector<64x128xf32>
    %12 = vector.extract_strided_slice %5 {offsets = [0, 1], sizes = [64, 1], strides = [1, 1]} : vector<64x3xf32> to vector<64x1xf32>
    %13 = vector.extract_strided_slice %4 {offsets = [1, 0], sizes = [1, 128], strides = [1, 1]} : vector<3x128xf32> to vector<1x128xf32>
    %14 = vector.broadcast %12 : vector<64x1xf32> to vector<64x128xf32>
    %15 = vector.broadcast %13 : vector<1x128xf32> to vector<64x128xf32>
    %16 = arith.mulf %14, %15 : vector<64x128xf32>
    %17 = arith.addf %11, %16 : vector<64x128xf32>
    %18 = vector.extract_strided_slice %5 {offsets = [0, 2], sizes = [64, 1], strides = [1, 1]} : vector<64x3xf32> to vector<64x1xf32>
    %19 = vector.extract_strided_slice %4 {offsets = [2, 0], sizes = [1, 128], strides = [1, 1]} : vector<3x128xf32> to vector<1x128xf32>
    %20 = vector.broadcast %18 : vector<64x1xf32> to vector<64x128xf32>
    %21 = vector.broadcast %19 : vector<1x128xf32> to vector<64x128xf32>
    %22 = arith.mulf %20, %21 : vector<64x128xf32>
    %23 = arith.addf %17, %22 : vector<64x128xf32>
    %24 = vector.broadcast %6 : vector<64x1xf32> to vector<64x128xf32>
    %25 = arith.addf %23, %24 : vector<64x128xf32>
    %cst = arith.constant 0.000000e+00 : f32
    %26 = vector.broadcast %cst : f32 to vector<64x128xf32>
    %27 = arith.cmpf ogt, %25, %26 : vector<64x128xf32>
    %cst_7 = arith.constant 1.000000e-01 : f32
    %28 = vector.broadcast %cst_7 : f32 to vector<64x128xf32>
    %29 = arith.mulf %28, %25 : vector<64x128xf32>
    %30 = arith.select %27, %25, %29 : vector<64x128xi1>, vector<64x128xf32>
    %31 = tpu.transpose %30, [1, 0] : vector<64x128xf32> -> vector<128x64xf32>
    %32 = arith.truncf %31 : vector<128x64xf32> to vector<128x64xbf16>
    %c0_8 = arith.constant 0 : index
    %c0_9 = arith.constant 0 : index
    %33 = vector.load %arg5[%c0_8, %c0_9] : memref<64x64xbf16, #tpu.memory_space<vmem>>, vector<64x64xbf16>
    %cst_10 = arith.constant dense<0.000000e+00> : vector<128x64xf32>
    %34 = tpu.matmul %32, %33, %cst_10 {dimension_numbers = #tpu.dot_dimension_numbers<[1], [0], [0], [1], [0, 0, 1, 1], [], []>} : vector<128x64xbf16>, vector<64x64xbf16>, vector<128x64xf32> -> vector<128x64xf32>
    %c0_11 = arith.constant 0 : index
    %c0_12 = arith.constant 0 : index
    %35 = vector.load %arg6[%c0_11, %c0_12] : memref<1x64xf32, #tpu.memory_space<vmem>>, vector<1x64xf32>
    %36 = vector.broadcast %35 : vector<1x64xf32> to vector<128x64xf32>
    %37 = arith.addf %34, %36 : vector<128x64xf32>
    %cst_13 = arith.constant 0.000000e+00 : f32
    %38 = vector.broadcast %cst_13 : f32 to vector<128x64xf32>
    %39 = arith.cmpf ogt, %37, %38 : vector<128x64xf32>
    %cst_14 = arith.constant 1.000000e-01 : f32
    %40 = vector.broadcast %cst_14 : f32 to vector<128x64xf32>
    %41 = arith.mulf %40, %37 : vector<128x64xf32>
    %42 = arith.select %39, %37, %41 : vector<128x64xi1>, vector<128x64xf32>
    %43 = arith.truncf %42 : vector<128x64xf32> to vector<128x64xbf16>
    %c0_15 = arith.constant 0 : index
    %c0_16 = arith.constant 0 : index
    %44 = vector.load %arg7[%c0_15, %c0_16] : memref<64x128xbf16, #tpu.memory_space<vmem>>, vector<64x128xbf16>
    %cst_17 = arith.constant dense<0.000000e+00> : vector<128x128xf32>
    %45 = tpu.matmul %43, %44, %cst_17 {dimension_numbers = #tpu.dot_dimension_numbers<[1], [0], [0], [1], [0, 0, 1, 1], [], []>} : vector<128x64xbf16>, vector<64x128xbf16>, vector<128x128xf32> -> vector<128x128xf32>
    %c0_18 = arith.constant 0 : index
    %c0_19 = arith.constant 0 : index
    %46 = vector.load %arg8[%c0_18, %c0_19] : memref<1x128xf32, #tpu.memory_space<vmem>>, vector<1x128xf32>
    %47 = vector.broadcast %46 : vector<1x128xf32> to vector<128x128xf32>
    %48 = arith.addf %45, %47 : vector<128x128xf32>
    %cst_20 = arith.constant 0.000000e+00 : f32
    %49 = vector.broadcast %cst_20 : f32 to vector<128x128xf32>
    %50 = arith.cmpf ogt, %48, %49 : vector<128x128xf32>
    %cst_21 = arith.constant 1.000000e-01 : f32
    %51 = vector.broadcast %cst_21 : f32 to vector<128x128xf32>
    %52 = arith.mulf %51, %48 : vector<128x128xf32>
    %53 = arith.select %50, %48, %52 : vector<128x128xi1>, vector<128x128xf32>
    %54 = arith.truncf %53 : vector<128x128xf32> to vector<128x128xbf16>
    %c0_22 = arith.constant 0 : index
    %c0_23 = arith.constant 0 : index
    %55 = vector.load %arg9[%c0_22, %c0_23] : memref<128x512xbf16, #tpu.memory_space<vmem>>, vector<128x512xbf16>
    %cst_24 = arith.constant dense<0.000000e+00> : vector<128x512xf32>
    %56 = tpu.matmul %54, %55, %cst_24 {dimension_numbers = #tpu.dot_dimension_numbers<[1], [0], [0], [1], [0, 0, 1, 1], [], []>} : vector<128x128xbf16>, vector<128x512xbf16>, vector<128x512xf32> -> vector<128x512xf32>
    %c0_25 = arith.constant 0 : index
    %c0_26 = arith.constant 0 : index
    %57 = vector.load %arg10[%c0_25, %c0_26] : memref<1x512xf32, #tpu.memory_space<vmem>>, vector<1x512xf32>
    %58 = vector.broadcast %57 : vector<1x512xf32> to vector<128x512xf32>
    %59 = arith.addf %56, %58 : vector<128x512xf32>
    %cst_27 = arith.constant 0.000000e+00 : f32
    %60 = vector.broadcast %cst_27 : f32 to vector<128x512xf32>
    %61 = arith.cmpf ogt, %59, %60 : vector<128x512xf32>
    %cst_28 = arith.constant 1.000000e-01 : f32
    %62 = vector.broadcast %cst_28 : f32 to vector<128x512xf32>
    %63 = arith.mulf %62, %59 : vector<128x512xf32>
    %64 = arith.select %61, %59, %63 : vector<128x512xi1>, vector<128x512xf32>
    %65 = arith.truncf %64 : vector<128x512xf32> to vector<128x512xbf16>
    %66 = vector.extract_strided_slice %65 {offsets = [0, 0], sizes = [64, 512], strides = [1, 1]} : vector<128x512xbf16> to vector<64x512xbf16>
    %67 = vector.extract_strided_slice %65 {offsets = [64, 0], sizes = [64, 512], strides = [1, 1]} : vector<128x512xbf16> to vector<64x512xbf16>
    %68 = arith.maximumf %66, %67 : vector<64x512xbf16>
    %69 = vector.extract_strided_slice %68 {offsets = [0, 0], sizes = [32, 512], strides = [1, 1]} : vector<64x512xbf16> to vector<32x512xbf16>
    %70 = vector.extract_strided_slice %68 {offsets = [32, 0], sizes = [32, 512], strides = [1, 1]} : vector<64x512xbf16> to vector<32x512xbf16>
    %71 = arith.maximumf %69, %70 : vector<32x512xbf16>
    %72 = vector.extract_strided_slice %71 {offsets = [0, 0], sizes = [16, 512], strides = [1, 1]} : vector<32x512xbf16> to vector<16x512xbf16>
    %73 = vector.extract_strided_slice %71 {offsets = [16, 0], sizes = [16, 512], strides = [1, 1]} : vector<32x512xbf16> to vector<16x512xbf16>
    %74 = arith.maximumf %72, %73 : vector<16x512xbf16>
    %75 = vector.extract_strided_slice %74 {offsets = [0, 0], sizes = [8, 512], strides = [1, 1]} : vector<16x512xbf16> to vector<8x512xbf16>
    %76 = vector.extract_strided_slice %74 {offsets = [8, 0], sizes = [8, 512], strides = [1, 1]} : vector<16x512xbf16> to vector<8x512xbf16>
    %77 = arith.maximumf %75, %76 : vector<8x512xbf16>
    %78 = arith.extf %77 : vector<8x512xbf16> to vector<8x512xf32>
    %cst_29 = arith.constant dense<0xFF800000> : vector<512xf32>
    %79 = vector.multi_reduction <maximumf>, %78, %cst_29 [0] : vector<8x512xf32> to vector<512xf32>
    %80 = vector.shape_cast %79 : vector<512xf32> to vector<1x512xf32>
    %c0_30 = arith.constant 0 : index
    %c0_31 = arith.constant 0 : index
    %81 = vector.load %arg14[%c0_30, %c0_31] : memref<1x512xf32, #tpu.memory_space<vmem>>, vector<1x512xf32>
    %82 = arith.maximumf %81, %80 : vector<1x512xf32>
    %c0_32 = arith.constant 0 : index
    %c0_33 = arith.constant 0 : index
    %83 = vector.load %arg14[%c0_32, %c0_33] : memref<1x512xf32, #tpu.memory_space<vmem>>, vector<1x512xf32>
    tpu.vector_store %arg14[%c0_32, %c0_33], %82 {strides = array<i32>} : memref<1x512xf32, #tpu.memory_space<vmem>>, vector<1x512xf32>,
    %c1_i32 = arith.constant 1 : i32
    %84 = arith.cmpi eq, %arg1, %c1_i32 : i32
    %85 = arith.extui %84 : i1 to i32
    %c0_i32_34 = arith.constant 0 : i32
    %86 = arith.cmpi ne, %85, %c0_i32_34 : i32
    scf.if %86 {
      %c0_35 = arith.constant 0 : index
      %c0_36 = arith.constant 0 : index
      %87 = vector.load %arg14[%c0_35, %c0_36] : memref<1x512xf32, #tpu.memory_space<vmem>>, vector<1x512xf32>
      %88 = arith.truncf %87 : vector<1x512xf32> to vector<1x512xbf16>
      %c0_37 = arith.constant 0 : index
      %c0_38 = arith.constant 0 : index
      %89 = vector.load %arg11[%c0_37, %c0_38] : memref<512x512xbf16, #tpu.memory_space<vmem>>, vector<512x512xbf16>
      %cst_39 = arith.constant dense<0.000000e+00> : vector<1x512xf32>
      %90 = tpu.matmul %88, %89, %cst_39 {dimension_numbers = #tpu.dot_dimension_numbers<[1], [0], [0], [1], [0, 0, 1, 1], [], []>} : vector<1x512xbf16>, vector<512x512xbf16>, vector<1x512xf32> -> vector<1x512xf32>
      %c0_40 = arith.constant 0 : index
      %c0_41 = arith.constant 0 : index
      %91 = vector.load %arg12[%c0_40, %c0_41] : memref<1x512xf32, #tpu.memory_space<vmem>>, vector<1x512xf32>
      %92 = arith.addf %90, %91 : vector<1x512xf32>
      %93 = vector.shape_cast %92 : vector<1x512xf32> to vector<1x1x512xf32>
      %c0_42 = arith.constant 0 : index
      %c0_43 = arith.constant 0 : index
      %c0_44 = arith.constant 0 : index
      %94 = vector.load %arg13[%c0_42, %c0_43, %c0_44] : memref<1x1x512xf32, #tpu.memory_space<vmem>>, vector<1x1x512xf32>
      tpu.vector_store %arg13[%c0_42, %c0_43, %c0_44], %93 {strides = array<i32>} : memref<1x1x512xf32, #tpu.memory_space<vmem>>, vector<1x1x512xf32>,
    } else {
    }
    return
  }
  func.func @transform_0(%arg0: i32, %arg1: i32) -> (i32, i32, i32) {
    %c0_i32 = arith.constant 0 : i32
    %c0_i32_0 = arith.constant 0 : i32
    return %arg0, %c0_i32, %arg1 : i32, i32, i32
  }
  func.func @transform_1(%arg0: i32, %arg1: i32) -> (i32, i32) {
    %c0_i32 = arith.constant 0 : i32
    %c0_i32_0 = arith.constant 0 : i32
    %c0_i32_1 = arith.constant 0 : i32
    return %c0_i32, %c0_i32_0 : i32, i32
  }
  func.func @transform_2(%arg0: i32, %arg1: i32) -> (i32, i32) {
    %c0_i32 = arith.constant 0 : i32
    %c0_i32_0 = arith.constant 0 : i32
    %c0_i32_1 = arith.constant 0 : i32
    return %c0_i32, %c0_i32_0 : i32, i32
  }
  func.func @transform_3(%arg0: i32, %arg1: i32) -> (i32, i32) {
    %c0_i32 = arith.constant 0 : i32
    %c0_i32_0 = arith.constant 0 : i32
    %c0_i32_1 = arith.constant 0 : i32
    return %c0_i32, %c0_i32_0 : i32, i32
  }
  func.func @transform_4(%arg0: i32, %arg1: i32) -> (i32, i32) {
    %c0_i32 = arith.constant 0 : i32
    %c0_i32_0 = arith.constant 0 : i32
    %c0_i32_1 = arith.constant 0 : i32
    return %c0_i32, %c0_i32_0 : i32, i32
  }
  func.func @transform_5(%arg0: i32, %arg1: i32) -> (i32, i32) {
    %c0_i32 = arith.constant 0 : i32
    %c0_i32_0 = arith.constant 0 : i32
    %c0_i32_1 = arith.constant 0 : i32
    return %c0_i32, %c0_i32_0 : i32, i32
  }
  func.func @transform_6(%arg0: i32, %arg1: i32) -> (i32, i32) {
    %c0_i32 = arith.constant 0 : i32
    %c0_i32_0 = arith.constant 0 : i32
    %c0_i32_1 = arith.constant 0 : i32
    return %c0_i32, %c0_i32_0 : i32, i32
  }
  func.func @transform_7(%arg0: i32, %arg1: i32) -> (i32, i32) {
    %c0_i32 = arith.constant 0 : i32
    %c0_i32_0 = arith.constant 0 : i32
    %c0_i32_1 = arith.constant 0 : i32
    return %c0_i32, %c0_i32_0 : i32, i32
  }
  func.func @transform_8(%arg0: i32, %arg1: i32) -> (i32, i32) {
    %c0_i32 = arith.constant 0 : i32
    %c0_i32_0 = arith.constant 0 : i32
    %c0_i32_1 = arith.constant 0 : i32
    return %c0_i32, %c0_i32_0 : i32, i32
  }
  func.func @transform_9(%arg0: i32, %arg1: i32) -> (i32, i32) {
    %c0_i32 = arith.constant 0 : i32
    %c0_i32_0 = arith.constant 0 : i32
    %c0_i32_1 = arith.constant 0 : i32
    return %c0_i32, %c0_i32_0 : i32, i32
  }
  func.func @transform_10(%arg0: i32, %arg1: i32) -> (i32, i32) {
    %c0_i32 = arith.constant 0 : i32
    %c0_i32_0 = arith.constant 0 : i32
    %c0_i32_1 = arith.constant 0 : i32
    return %c0_i32, %c0_i32_0 : i32, i32
  }
  func.func @transform_11(%arg0: i32, %arg1: i32) -> (i32, i32, i32) {
    %c0_i32 = arith.constant 0 : i32
    %c0_i32_0 = arith.constant 0 : i32
    %c0_i32_1 = arith.constant 0 : i32
    return %arg0, %c0_i32, %c0_i32_0 : i32, i32, i32
  }
}

</mosaic_0001>

<bundles_post_ra>
// kernel: tpu_custom_call.1
= control target key start
LH: loop header
LB: loop body
LE: loop exit
PB: predicated region body
PF: predicated region fallthrough
CT: control target
= control target key end

     0   :  { %s4860_s0 = inlined_call_operand.vmem [shape: f32[2,3,256], index: 0, kind: input, shape index: {}]   ;;  %s4861_s1 = inlined_call_operand.vmem [shape: f32[64,3], index: 1, kind: input, shape index: {}]   ;;  %s4862_s2 = inlined_call_operand.vmem [shape: f32[64,1], index: 2, kind: input, shape index: {}]   ;;  %s4863_s3 = inlined_call_operand.vmem [shape: bf16[64,64], index: 3, kind: input, shape index: {}]   ;;  %s4864_s4 = inlined_call_operand.vmem [shape: f32[1,64], index: 4, kind: input, shape index: {}]   ;;  %s4865_s5 = inlined_call_operand.vmem [shape: bf16[64,128], index: 5, kind: input, shape index: {}]   ;;  %s4866_s6 = inlined_call_operand.vmem [shape: f32[1,128], index: 6, kind: input, shape index: {}]   ;;  %s4867_s7 = inlined_call_operand.hbm [shape: bf16[128,512], index: 7, kind: input, shape index: {}]   ;;  %s4868_s8 = inlined_call_operand.vmem [shape: f32[1,512], index: 8, kind: input, shape index: {}]   ;;  %s4869_s9 = inlined_call_operand.hbm [shape: bf16[512,512], index: 9, kind: input, shape index: {}]   ;;  %s4870_s10 = inlined_call_operand.vmem [shape: f32[1,512], index: 10, kind: input, shape index: {}]   ;;  %s4871_s11 = inlined_call_operand.hbm [shape: f32[2,1,512], index: 11, kind: output, shape index: {}]  }
   0x1   :  { %4880 = sst [smem:[#allocation19_spill]] %s4871_s11 }
   0x2   :  { %16 = vsyncpa [#allocation4], 0 }
   0x3   :  { %17 = vsyncpa [#allocation7], 0 }
   0x4   :  { %18 = vsyncpa [#allocation5], 0 }
   0x5   :  { %20 = vsyncpa [#allocation5 + $0x1], 0  ;;  %s4318_s17 = smov 0   ;;  %s4320_s18 = smov 0  }
   0x6   :  { %s4322_s19 = smov 0   ;;  %s4324_s20 = smov 0  }
   0x7   :  { %s4326_s21 = smov 0   ;;  %s4328_s22 = smov 0  }
   0x8   :  { %s4330_s23 = smov 0   ;;  %s4332_s24 = smov 0  }
   0x9 LB: > { %4881 = sst [smem:[#allocation12_spill]] %s4220_s17  ;;  %s3072_s25 = sadd.s32 4294967295, %s4248_s24   ;;  %s4248_s24 = sphi %s4332_s24, %s26_s24   ;;  %s4244_s23 = sphi %s4330_s23, %s4901_s23   ;;  %s4240_s22 = sphi %s4328_s22, %s4905_s22   ;;  %s4236_s21 = sphi %s4326_s21, %s4899_s21   ;;  %s4232_s20 = sphi %s4324_s20, %s4898_s20   ;;  %s4228_s19 = sphi %s4322_s19, %s4904_s19   ;;  %s4224_s18 = sphi %s4320_s18, %s4903_s18   ;;  %s4220_s17 = sphi %s4318_s17, %s4902_s17  }
   0xa   : > { %4882 = sst [smem:[#allocation13_spill]] %s4240_s22  ;;  %s3073_s26 = sadd.s32 4294967294, %s4248_s24  }
   0xb   : > { %4883 = sst [smem:[#allocation14_spill]] %s4244_s23  ;;  %s35_s27 = sadd.s32 1, %s4240_s22 }
   0xc   : > { %4884 = sst [smem:[#allocation15_spill]] %s4248_s24  ;;  %s38_s28 = sadd.s32 1, %s4244_s23 }
   0xd   : > { %p36_p0 = scmp.ge.s32.totalorder %s35_s27, 2  ;;  %s283_s29 = sadd.s32 1, %s4228_s19 }
   0xe   : > { %p293_p1 = scmp.ne.s32.totalorder %s4228_s19, %s4224_s18  ;;  %p294_p2 = scmp.eq.s32.totalorder %s3072_s25, 3 }
   0xf   : > { %s4907_s27 = smov (%p36_p0, %s35_s27), 0  ;;  %s4909_s28 = smov (!%p36_p0, %s38_s28), %s4244_s23 }
  0x10   : > { %4885 = sst [smem:[#allocation16_spill]] %s4907_s27  ;;  %p4368_p3 = por %p294_p2, %p293_p1 }
  0x11   : > { %p299_p4 = scmp.ne.s32.totalorder %s4224_s18, %s4220_s17  ;;  %p40_p5 = scmp.ge.s32.totalorder %s4909_s28, 2 }
  0x12   : > { %p300_p6 = scmp.eq.s32.totalorder %s3073_s26, 3  ;;  %p3074_p7 = scmp.ge.s32.totalorder %s4248_s24, 1 }
  0x13   : > { %p307_p8 = scmp.lt.s32.totalorder %s4248_s24, 5  ;;  %s4911_s28 = smov (%p40_p5, %s4909_s28), 0 }
  0x14   : > { %4887 = sst [smem:[#allocation17_spill]] %s4911_s28  ;;  %p4378_p9 = por %p300_p6, %p299_p4 }
  0x15   : > { %p4382_p10 = pnand %p3074_p7, %p307_p8  ;;  %s280_s14 = ssub.s32 %s4244_s23, %s4911_s28 }
  0x16   : > { %s4888_s12 = scalar_select %p4378_p9, 1, 0 }
  0x17   : > { %p281_p11 = scmp.eq.s32.totalorder %s280_s14, 0  ;;  %p3972_p12 = pneg %p4382_p10 }
  0x18   : > { %4889 = sst [smem:[#allocation18_spill]] %s4888_s12  ;;  %p4390_p13 = scmp.eq.s32.totalorder %s3072_s25, 0 }
  0x19   : > { %s336_s27 = sshll.u32 %s4867_s7, 4  ;;  %s4250_s12 = smov [#allocation3]   ;;  %s337_s27 = int_to_ptr.hbm [resolvable:$true] %s336_s27 }
  0x1a   : > { %s4398_s22 = scalar_select %p281_p11, %s4228_s19, %s283_s29  }
  0x1b   : > { %s338_s17 = sshll.u32 %s4250_s12, 4  ;;  %p3973_p0 = pnand %p4390_p13, %p3972_p12  ;;  %s339_s17 = int_to_ptr.vmem [resolvable:$true] %s338_s17 }
  0x1c   : > { %s4251_s14 = smov 256   ;;  %s4252_s28 = smov 16  }
  0x1d   : > { %3975 = dma.hbm_to_vmem [thread:$0]  (!%p3973_p0), %s337_s27, 4096, %s339_s17, [#allocation4], %s4251_s14, %s4251_s14, %s4252_s28  }
  0x1e   : > { %s353_s24 = sshll.u32 %s4869_s9, 4  ;;  %s4253_s11 = smov [#allocation6]   ;;  %s354_s24 = int_to_ptr.hbm [resolvable:$true] %s353_s24 }
  0x1f   : > { %s355_s16 = sshll.u32 %s4253_s11, 4  ;;  %385 = sbr.rel (%p4382_p10) target bundleno = 1277 (0x4fd), region = 64  ;;  %s356_s16 = int_to_ptr.vmem [resolvable:$true] %s355_s16 }
  0x20   : > { %3978 = dma.hbm_to_vmem [thread:$0]  (!%p3973_p0), %s354_s24, 16384, %s356_s16, [#allocation7], %s4251_s14, %s4251_s14, %s4252_s28  }
  0x24   : > { %4207 = dma.done.wait (%p4390_p13), [#allocation4], 4096  }
  0x25   : > { %4209 = vsyncadd (%p4390_p13), [#allocation4], 4294963200 }
  0x26   : > { %4211 = dma.done.wait (%p4390_p13), [#allocation7], 16384  }
  0x27   : > { %4213 = vsyncadd (%p4390_p13), [#allocation7], 4294950912  ;;  %s431_s11 = sand.u32 1, %s4224_s18   ;;  %p434_p1 = scmp.lt.s32.totalorder %s4236_s21, 1 }
  0x28   : > { %s4419_s17 = sshll.u32 %s431_s11, 2  ;;  %p436_p2 = scmp.lt.s32.totalorder %s4232_s20, 1 }
  0x29   : > { %s435_s23 = scalar_select %p434_p1, %s4236_s21, 1 }
  0x2a   : > { %s437_s24 = scalar_select %p436_p2, %s4232_s20, 1 }
  0x2b   : > { %s3082_s27 = sshll.u32 %s435_s23, 1  ;;  %s433_s26 = scalar_lea.vmem [#allocation8], %s4419_s17 }
  0x2c   : > { %s439_s28 = sadd.s32 %s3082_s27, %s437_s24  ;;  %p3084_p4 = scmp.ne.s32.totalorder %s4232_s20, 0 }
  0x2d   : > { %s3083_s29 = sshll.u32 %s439_s28, 2 }
  0x2e   : > { %s4427_s15 = scalar_lea.vmem %s4860_s0, %s3083_s29  ;;  %446 = sbr.rel (%p3084_p4) target bundleno = 55 (0x37), region = 76 }
  0x33   : > { %v447_v0 = vlaneseq  ;;  %v4254_v1 = vmov -inf  }
  0x35   : > { %vm449_vm0 = vcmp.lt.s32.totalorder %v447_v0, 512 }
  0x36   : > { %451 = vst.msk [vmem:[#allocation2] sm:$0xf] %vm449_vm0, %v4254_v1 }
  0x37 PF: > { %v456_v2 = vld [vmem:[%s4861_s1 + $0x18] sm:$0xff]  ;;  %v454_v3 = vld [vmem:[%s4861_s1 + $0x8] sm:$0xff]  ;;  %v453_v4 = vld [vmem:[%s4861_s1] sm:$0xff]  ;;  %v4255_v5 = vmov 2   ;;  %v4256_v6 = vmov 1   ;;  %v4257_v7 = vmov 0  }
  0x38   : > { %4069 = vset.pattern.permute.xlu0 %v4255_v5  ;;  %4061 = vset.pattern.permute.xlu1 %v4255_v5  ;;  %v459_v8 = vld [vmem:[%s4861_s1 + $0x30] sm:$0xff]  ;;  %v461_v10 = vld [vmem:[%s4862_s2] sm:$0xff]  ;;  %v462_v11 = vld [vmem:[%s4862_s2 + $0x8] sm:$0xff]  ;;  %vm764_vm9 = vcmask 523264   ;;  %p3261_p5 = scmp.ne.s32.totalorder %s4232_s20, 1 }
  0x39   : > { %4063 = vset.pattern.permute.xlu2 %v4256_v6  ;;  %580 = vperm.xlu0 %4069, %v456_v2   ;;  %v455_v9 = vld [vmem:[%s4861_s1 + $0x10] sm:$0xff]  ;;  %v458_v12 = vld [vmem:[%s4861_s1 + $0x28] sm:$0xff]  ;;  %v457_v13 = vld [vmem:[%s4861_s1 + $0x20] sm:$0xff] }
  0x3a   : > { %523 = vperm.xlu2 %4063, %v454_v3   ;;  %568 = vperm.xlu1 %4061, %v453_v4   ;;  %v466_v14 = vld [vmem:[%s4862_s2 + $0x28] sm:$0xff]  ;;  %v463_v15 = vld [vmem:[%s4862_s2 + $0x10] sm:$0xff]  ;;  %v464_v16 = vld [vmem:[%s4862_s2 + $0x18] sm:$0xff] }
  0x3b   : > { %v465_v17 = vld [vmem:[%s4862_s2 + $0x20] sm:$0xff]  ;;  %v460_v18 = vld [vmem:[%s4861_s1 + $0x38] sm:$0xff]  ;;  %v467_v19 = vld [vmem:[%s4862_s2 + $0x30] sm:$0xff] }
  0x3c   : > { %v468_v21 = vld [vmem:[%s4862_s2 + $0x38] sm:$0xff]  ;;  %v452_v32 = vld [vmem:[%s4427_s15] sm:$0x7] }
  0x3d   : > { %v4490_v33 = vperm.slane %v452_v32, 0  ;;  %v4492_v34 = vperm.slane %v452_v32, 1  ;;  %v4494_v37 = vperm.slane %v452_v32, 2 }
  0x41   : > { %4070 = vset.pattern.permute.xlu0 %v4256_v6 }
  0x42   : > { %4064 = vset.pattern.permute.xlu2 %v4255_v5  ;;  %4062 = vset.pattern.permute.xlu1 %v4257_v7 }
  0x43   : > { %572 = vperm.xlu2 %4064, %v454_v3   ;;  %519 = vperm.xlu0 %4070, %v453_v4  }
  0x44   : > { %476 = vperm.xlu1 %4062, %v454_v3  }
  0x4b   : > { %4065 = vset.pattern.permute.xlu2 %v4256_v6  ;;  %543 = vperm.xlu0 %4070, %v459_v8  }
  0x4c   : > { %481 = vperm.xlu1 %4062, %v455_v9   ;;  %527 = vperm.xlu2 %4065, %v455_v9  }
  0x53   : > { %4077 = vset.pattern.permute.xlu0 %v4257_v7 }
  0x54   : > { %4066 = vset.pattern.permute.xlu1 %v4255_v5  ;;  %4067 = vset.pattern.permute.xlu2 %v4257_v7 }
  0x55   : > { %471 = vperm.xlu0 %4077, %v453_v4   ;;  %576 = vperm.xlu1 %4066, %v455_v9  }
  0x56   : > { %486 = vperm.xlu2 %4067, %v456_v2  }
  0x5d   : > { %618 = vperm.xlu0 %4077, %v461_v10   ;;  %4068 = vset.pattern.permute.xlu1 %v4256_v6 }
  0x5e   : > { %623 = vperm.xlu2 %4067, %v462_v11   ;;  %531 = vperm.xlu1 %4068, %v456_v2  }
  0x65   : > { %496 = vperm.xlu0 %4077, %v458_v12  }
  0x66   : > { %4072 = vset.pattern.permute.xlu2 %v4256_v6  ;;  %4071 = vset.pattern.permute.xlu1 %v4257_v7 }
  0x67   : > { %535 = vperm.xlu2 %4072, %v457_v13   ;;  %491 = vperm.xlu1 %4071, %v457_v13  }
  0x6d   : > { %643 = vperm.xlu0 %4077, %v466_v14  }
  0x6f   : > { %4073 = vset.pattern.permute.xlu2 %v4255_v5  ;;  %628 = vperm.xlu1 %4071, %v463_v15  }
  0x70   : > { %584 = vperm.xlu2 %4073, %v457_v13  }
  0x77   : > { %4074 = vset.pattern.permute.xlu1 %v4256_v6 }
  0x78   : > { %4075 = vset.pattern.permute.xlu2 %v4257_v7  ;;  %539 = vperm.xlu1 %4074, %v458_v12  }
  0x79   : > { %633 = vperm.xlu2 %4075, %v464_v16  }
  0x80   : > { %4076 = vset.pattern.permute.xlu1 %v4255_v5 }
  0x81   : > { %501 = vperm.xlu2 %4075, %v459_v8   ;;  %588 = vperm.xlu1 %4076, %v458_v12  }
  0x89   : > { %4079 = vset.pattern.permute.xlu2 %v4255_v5  ;;  %4078 = vset.pattern.permute.xlu1 %v4257_v7 }
  0x8a   : > { %592 = vperm.xlu2 %4079, %v459_v8   ;;  %638 = vperm.xlu1 %4078, %v465_v17  }
  0x92   : > { %4080 = vset.pattern.permute.xlu2 %v4256_v6  ;;  %506 = vperm.xlu1 %4078, %v460_v18  }
  0x93   : > { %547 = vperm.xlu2 %4080, %v460_v18  }
  0x94   : > { %v524_v20 = vpop.permute.xlu2 %523 }
  0x95   : > { %v552_v41 = vmul.f32 %v4492_v34, %v524_v20 }
  0x9a   : > { %4081 = vset.pattern.permute.xlu1 %v4255_v5 }
  0x9b   : > { %4082 = vset.pattern.permute.xlu2 %v4257_v7  ;;  %596 = vperm.xlu1 %4081, %v460_v18  }
  0x9c   : > { %648 = vperm.xlu2 %4082, %v467_v19  }
  0x9d   : > { %v573_v22 = vpop.permute.xlu2 %572 }
  0x9e   : > { %v601_v46 = vmul.f32 %v4494_v37, %v573_v22 }
  0xa3   : > { %4083 = vset.pattern.permute.xlu1 %v4257_v7 }
  0xa4   : > { %653 = vperm.xlu1 %4083, %v468_v21  }
  0xa6   : > { %v528_v25 = vpop.permute.xlu2 %527 }
  0xa7   : > { %v553_v58 = vmul.f32 %v4492_v34, %v528_v25 }
  0xab   : > { %v581_v23 = vpop.permute.xlu0 %580 }
  0xac   : > { %v569_v24 = vpop.permute.xlu1 %568  ;;  %v603_v2 = vmul.f32 %v4494_v37, %v581_v23 }
  0xad   : > { %v600_v43 = vmul.f32 %v4494_v37, %v569_v24 }
  0xb0   : > { %v487_v28 = vpop.permute.xlu2 %486 }
  0xb1   : > { %v513_v61 = vmul.f32 %v4490_v33, %v487_v28 }
  0xb5   : > { %v520_v26 = vpop.permute.xlu0 %519 }
  0xb6   : > { %v477_v27 = vpop.permute.xlu1 %476  ;;  %v551_v39 = vmul.f32 %v4492_v34, %v520_v26 }
  0xb7   : > { %v511_v38 = vmul.f32 %v4490_v33, %v477_v27 }
  0xb8   : > { %v624_v31 = vpop.permute.xlu2 %623 }
  0xb9   : > { %v560_v44 = vadd.f32 %v552_v41, %v511_v38 }
  0xbb   : > { %v609_v49 = vadd.f32 %v601_v46, %v560_v44 }
  0xbd   : > { %v4487_v29 = vpop.permute.xlu0 %543  ;;  %v657_v53 = vadd.f32 %v624_v31, %v609_v49 }
  0xbe   : > { %v482_v30 = vpop.permute.xlu1 %481 }
  0xbf   : > { %v673_v56 = vmul.f32 0.1, %v657_v53  ;;  %vm665_vm2 = vcmp.gt.f32.partialorder %v657_v53, 0.0  ;;  %v512_v59 = vmul.f32 %v4490_v33, %v482_v30  ;;  %v3781_v30 = vld [vmem:[%s4863_s3 + $0x18] sm:$0xff] }
  0xc0   : > { %793 = vmatpush.bf16.msra.mxu0 %v3781_v30  ;;  %3946 = vmatpush.bf16.msra.mxu2 %v3781_v30 }
  0xc1   : > { %v536_v45 = vpop.permute.xlu2 %535  ;;  %v681_v63 = vsel %vm665_vm2, %v657_v53, %v673_v56  ;;  %v561_v0 = vadd.f32 %v553_v58, %v512_v59 }
  0xc2   : > { %v555_v15 = vmul.f32 %v4492_v34, %v536_v45 }
  0xc7   : > { %v472_v35 = vpop.permute.xlu0 %471  ;;  %v577_v36 = vpop.permute.xlu1 %576 }
  0xc8   : > { %v510_v40 = vmul.f32 %v4490_v33, %v472_v35  ;;  %v602_v62 = vmul.f32 %v4494_v37, %v577_v36  ;;  %v3780_v35 = vld [vmem:[%s4863_s3 + $0x10] sm:$0xff] }
  0xc9   : > { %794 = vmatpush.bf16.msra.mxu0 %v3780_v35  ;;  %3947 = vmatpush.bf16.msra.mxu2 %v3780_v35 }
  0xca   : > { %v559_v42 = vadd.f32 %v551_v39, %v510_v40  ;;  %v585_v55 = vpop.permute.xlu2 %584  ;;  %v610_v4 = vadd.f32 %v602_v62, %v561_v0  ;;  %v3779_v62 = vld [vmem:[%s4863_s3 + $0x8] sm:$0xff] }
  0xcb   : > { %v604_v20 = vmul.f32 %v4494_v37, %v585_v55 }
  0xcc   : > { %v608_v47 = vadd.f32 %v600_v43, %v559_v42  ;;  %v557_v42 = vmul.f32 %v4492_v34, %v4487_v29 }
  0xcd   : > { %795 = vmatpush.bf16.msra.mxu0 %v3779_v62  ;;  %3948 = vmatpush.bf16.msra.mxu2 %v3779_v62 }
  0xcf   : > { %v619_v48 = vpop.permute.xlu0 %618 }
  0xd0   : > { %v656_v50 = vadd.f32 %v619_v48, %v608_v47  ;;  %v532_v51 = vpop.permute.xlu1 %531 }
  0xd1   : > { %v554_v60 = vmul.f32 %v4492_v34, %v532_v51 }
  0xd2   : > { %v672_v52 = vmul.f32 0.1, %v656_v50  ;;  %vm664_vm1 = vcmp.gt.f32.partialorder %v656_v50, 0.0 }
  0xd3   : > { %v562_v1 = vadd.f32 %v554_v60, %v513_v61  ;;  %v634_v3 = vpop.permute.xlu2 %633 }
  0xd4   : > { %v680_v54 = vsel %vm664_vm1, %v656_v50, %v672_v52 }
  0xd5   : > { %688 = vxpose.xlu2.b32.start [1/8] (short) %v680_v54, 128  ;;  %v611_v6 = vadd.f32 %v603_v2, %v562_v1 }
  0xd7   : > { %v659_v9 = vadd.f32 %v634_v3, %v611_v6  ;;  %v497_v19 = vpop.permute.xlu0 %496 }
  0xd8   : > { %v515_v23 = vmul.f32 %v4490_v33, %v497_v19  ;;  %v3784_v19 = vld [vmem:[%s4865_s5 + $0x10] sm:$0xff] }
  0xd9   : > { %v492_v57 = vpop.permute.xlu1 %491  ;;  %v675_v11 = vmul.f32 0.1, %v659_v9  ;;  %vm667_vm4 = vcmp.gt.f32.partialorder %v659_v9, 0.0 }
  0xda   : > { %v514_v16 = vmul.f32 %v4490_v33, %v492_v57 }
  0xdb   : > { %v502_v12 = vpop.permute.xlu2 %501  ;;  %v683_v14 = vsel %vm667_vm4, %v659_v9, %v675_v11 }
  0xdc   : > { %v563_v21 = vadd.f32 %v555_v15, %v514_v16  ;;  %v516_v39 = vmul.f32 %v4490_v33, %v502_v12  ;;  %v3785_v16 = vld [vmem:[%s4865_s5 + $0x18] sm:$0xff] }
  0xdd   : > { %689 = vxpose.xlu2.b32.cont [2/8] (short) %v681_v63, 128  ;;  %958 = vmatpush.bf16.msra.mxu1 %v3785_v16 }
  0xde   : > { %v612_v26 = vadd.f32 %v604_v20, %v563_v21  ;;  %v565_v45 = vadd.f32 %v557_v42, %v516_v39  ;;  %3950 = vmatpush.bf16.msra.mxu3 %v3785_v16  ;;  %v3783_v20 = vld [vmem:[%s4865_s5 + $0x8] sm:$0xff]  ;;  %v3817_v16 = vld [vmem:[#allocation3 + $0xf4] sm:$0xf0] }
  0xdf   : > { %v644_v38 = vpop.permute.xlu0 %643 }
  0xe1   : > { %v629_v5 = vpop.permute.xlu1 %628  ;;  %959 = vmatpush.bf16.msra.mxu1 %v3784_v19 }
  0xe2   : > { %v658_v7 = vadd.f32 %v629_v5, %v610_v4  ;;  %3951 = vmatpush.bf16.msra.mxu3 %v3784_v19  ;;  %v3257_v19 = vld [vmem:[#allocation3 + $0xf8] sm:$0xf0] }
  0xe4   : > { %vm666_vm3 = vcmp.gt.f32.partialorder %v658_v7, 0.0  ;;  %v674_v8 = vmul.f32 0.1, %v658_v7  ;;  %v593_v18 = vpop.permute.xlu2 %592 }
  0xe5   : > { %v606_v43 = vmul.f32 %v4494_v37, %v593_v18  ;;  %960 = vmatpush.bf16.msra.mxu1 %v3783_v20 }
  0xe6   : > { %v682_v10 = vsel %vm666_vm3, %v658_v7, %v674_v8  ;;  %3952 = vmatpush.bf16.msra.mxu3 %v3783_v20 }
  0xe7   : > { %690 = vxpose.xlu2.b32.cont [3/8] (short) %v682_v10, 128  ;;  %v614_v48 = vadd.f32 %v606_v43, %v565_v45 }
  0xea   : > { %v540_v13 = vpop.permute.xlu1 %539 }
  0xeb   : > { %v556_v22 = vmul.f32 %v4492_v34, %v540_v13 }
  0xed   : > { %v564_v25 = vadd.f32 %v556_v22, %v515_v23  ;;  %v548_v27 = vpop.permute.xlu2 %547  ;;  %v3782_v22 = vld [vmem:[%s4865_s5] sm:$0xff] }
  0xee   : > { %v558_v53 = vmul.f32 %v4492_v34, %v548_v27  ;;  %961 = vmatpush.bf16.msra.mxu1 %v3782_v22  ;;  %3953 = vmatpush.bf16.msra.mxu3 %v3782_v22 }
  0xef   : > { %691 = vxpose.xlu2.b32.cont [4/8] (short) %v683_v14, 128 }
  0xf3   : > { %v589_v17 = vpop.permute.xlu1 %588 }
  0xf4   : > { %v605_v24 = vmul.f32 %v4494_v37, %v589_v17 }
  0xf6   : > { %v613_v31 = vadd.f32 %v605_v24, %v564_v25  ;;  %v649_v47 = vpop.permute.xlu2 %648 }
  0xf7   : > { %v662_v49 = vadd.f32 %v649_v47, %v614_v48 }
  0xf8   : > { %v661_v40 = vadd.f32 %v644_v38, %v613_v31 }
  0xf9   : > { %v678_v51 = vmul.f32 0.1, %v662_v49  ;;  %vm670_vm7 = vcmp.gt.f32.partialorder %v662_v49, 0.0 }
  0xfa   : > { %v677_v46 = vmul.f32 0.1, %v661_v40  ;;  %vm669_vm6 = vcmp.gt.f32.partialorder %v661_v40, 0.0 }
  0xfb   : > { %v686_v55 = vsel %vm670_vm7, %v662_v49, %v678_v51 }
  0xfc   : > { %v639_v28 = vpop.permute.xlu1 %638  ;;  %v685_v50 = vsel %vm669_vm6, %v661_v40, %v677_v46 }
  0xfd   : > { %v660_v32 = vadd.f32 %v639_v28, %v612_v26  ;;  %v4556_v26 = vld [vmem:[%s4864_s4] ss:$0 sm:$0xff] }
  0xff   : > { %vm668_vm5 = vcmp.gt.f32.partialorder %v660_v32, 0.0  ;;  %v676_v36 = vmul.f32 0.1, %v660_v32 }
 0x101   : > { %v684_v41 = vsel %vm668_vm5, %v660_v32, %v676_v36 }
 0x102   : > { %692 = vxpose.xlu2.b32.cont [5/8] (short) %v684_v41, 128 }
 0x104   : > { %v507_v44 = vpop.permute.xlu1 %506 }
 0x105   : > { %v517_v54 = vmul.f32 %v4490_v33, %v507_v44  ;;  %v3778_v33 = vld [vmem:[%s4863_s3] sm:$0xff] }
 0x106   : > { %796 = vmatpush.bf16.msra.mxu0 %v3778_v33  ;;  %3949 = vmatpush.bf16.msra.mxu2 %v3778_v33 }
 0x107   : > { %v566_v56 = vadd.f32 %v558_v53, %v517_v54 }
 0x10a   : > { %693 = vxpose.xlu2.b32.cont [6/8] (short) %v685_v50, 128 }
 0x10d   : > { %v597_v52 = vpop.permute.xlu1 %596 }
 0x10e   : > { %v607_v29 = vmul.f32 %v4494_v37, %v597_v52 }
 0x110   : > { %v615_v57 = vadd.f32 %v607_v29, %v566_v56 }
 0x112   : > { %694 = vxpose.xlu2.b32.cont [7/8] (short) %v686_v55, 128 }
 0x116   : > { %v654_v58 = vpop.permute.xlu1 %653 }
 0x117   : > { %v663_v59 = vadd.f32 %v654_v58, %v615_v57 }
 0x119   : > { %vm671_vm8 = vcmp.gt.f32.partialorder %v663_v59, 0.0  ;;  %v679_v60 = vmul.f32 0.1, %v663_v59 }
 0x11b   : > { %v687_v61 = vsel %vm671_vm8, %v663_v59, %v679_v60 }
 0x11c   : > { %695 = vxpose.xlu2.b32.end [8/8] (short) %v687_v61, 128 }
 0x17d   : > { %v704_v34 = vpop.trf.xlu2 }
 0x185   : > { %v705_v37 = vpop.trf.xlu2 }
 0x186   : > { %v720_v63 = vpack.c.bf16 %v705_v37, %v704_v34 }
 0x188   : > { %3101 = vmatmul.msk.bf16.vlgmr.msra.gmra.mxu0 %vm764_vm9, %v720_v63 }
 0x18d   : > { %v706_v0 = vpop.trf.xlu2 }
 0x195   : > { %v707_v1 = vpop.trf.xlu2 }
 0x196   : > { %v721_v2 = vpack.c.bf16 %v707_v1, %v706_v0 }
 0x198   : > { %3102 = vmatmul.msk.bf16.gmra.mxu0 %vm764_vm9, %v721_v2 }
 0x19d   : > { %v708_v3 = vpop.trf.xlu2 }
 0x1a5   : > { %v709_v4 = vpop.trf.xlu2 }
 0x1a6   : > { %v722_v5 = vpack.c.bf16 %v709_v4, %v708_v3 }
 0x1a8   : > { %3103 = vmatmul.msk.bf16.gmra.mxu0 %vm764_vm9, %v722_v5 }
 0x1ad   : > { %v710_v6 = vpop.trf.xlu2 }
 0x1b5   : > { %v711_v7 = vpop.trf.xlu2 }
 0x1b6   : > { %v723_v8 = vpack.c.bf16 %v711_v7, %v710_v6 }
 0x1b8   : > { %3104 = vmatmul.msk.bf16.gmra.mxu0 %vm764_vm9, %v723_v8  ;;  %v3247_v8 = vld [vmem:[#allocation3 + $0xe0] sm:$0xf] }
 0x1bd   : > { %v712_v9 = vpop.trf.xlu2 }
 0x1c5   : > { %v713_v10 = vpop.trf.xlu2 }
 0x1c6   : > { %v724_v11 = vpack.c.bf16 %v713_v10, %v712_v9  ;;  %v3816_v10 = vld [vmem:[#allocation3 + $0xec] sm:$0xf0] }
 0x1c8   : > { %3105 = vmatmul.msk.bf16.gmra.mxu0 %vm764_vm9, %v724_v11  ;;  %v3814_v11 = vld [vmem:[#allocation3 + $0xe4] sm:$0xf] }
 0x1cd   : > { %v714_v12 = vpop.trf.xlu2 }
 0x1d5   : > { %v715_v13 = vpop.trf.xlu2 }
 0x1d6   : > { %v725_v14 = vpack.c.bf16 %v715_v13, %v714_v12  ;;  %v3249_v12 = vld [vmem:[#allocation3 + $0xf0] sm:$0xf0]  ;;  %v3248_v13 = vor.u32 %v3816_v10, %v3247_v8  ;;  %v3191_v8 = vld [vmem:[#allocation3 + $0x68] sm:$0xf] }
 0x1d8   : > { %3106 = vmatmul.msk.bf16.vlgmr.msra.gmra.mxu2 %vm764_vm9, %v725_v14  ;;  %v3252_v14 = vor.u32 %v3814_v11, %v3249_v12  ;;  %v3799_v12 = vld [vmem:[#allocation3 + $0x6c] sm:$0xf] }
 0x1d9   : > { %1261 = vmatpush.bf16.msrb.mxu2 %v3248_v13  ;;  %v3193_v13 = vld [vmem:[#allocation3 + $0x78] sm:$0xf0] }
 0x1da   : > { %1310 = vmatpush.bf16.msrb.mxu3 %v3252_v14 }
 0x1dd   : > { %v716_v15 = vpop.trf.xlu2 }
 0x1e5   : > { %v717_v17 = vpop.trf.xlu2 }
 0x1e6   : > { %v726_v18 = vpack.c.bf16 %v717_v17, %v716_v15  ;;  %v3255_v15 = vld [vmem:[#allocation3 + $0xe8] sm:$0xf]  ;;  %v3815_v17 = vld [vmem:[#allocation3 + $0xec] sm:$0xf] }
 0x1e7   : > { %v3260_v20 = vor.u32 %v3815_v17, %v3257_v19  ;;  %v3167_v19 = vld [vmem:[#allocation3 + $0x40] sm:$0xf] }
 0x1e8   : > { %3107 = vmatmul.msk.bf16.gmra.mxu2 %vm764_vm9, %v726_v18  ;;  %v4574_v18 = vor.u32 %v3817_v16, %v3255_v15  ;;  %v3196_v16 = vor.u32 %v3799_v12, %v3193_v13 }
 0x1e9   : > { %1408 = vmatpush.bf16.msrb.mxu1 %v3260_v20  ;;  %v3796_v20 = vld [vmem:[#allocation3 + $0x4c] sm:$0xf0] }
 0x1ea   : > { %1359 = vmatpush.bf16.msrb.mxu0 %v4574_v18 }
 0x1ed   : > { %v718_v21 = vpop.trf.xlu2 }
 0x1f5   : > { %v719_v23 = vpop.trf.xlu2 }
 0x1f6   : > { %v727_v24 = vpack.c.bf16 %v719_v23, %v718_v21 }
 0x1f8   : > { %3108 = vmatmul.msk.bf16.gmra.mxu2 %vm764_vm9, %v727_v24  ;;  %v3231_v24 = vld [vmem:[#allocation3 + $0xc0] sm:$0xf] }
 0x205   : > { %v798_v25 = vpop.f32.mrf.mxu0 }
 0x206   : > { %v799_v27 = vadd.f32 %v4556_v26, %v798_v25  ;;  %v3812_v25 = vld [vmem:[#allocation3 + $0xcc] sm:$0xf0] }
 0x208   : > { %v854_v30 = vmul.f32 0.1, %v799_v27  ;;  %vm838_vm10 = vcmp.gt.f32.partialorder %v799_v27, 0.0 }
 0x20a   : > { %v870_v35 = vsel %vm838_vm10, %v799_v27, %v854_v30  ;;  %v3810_v27 = vld [vmem:[#allocation3 + $0xc4] sm:$0xf]  ;;  %v3233_v30 = vld [vmem:[#allocation3 + $0xd0] sm:$0xf0] }
 0x20d   : > { %v800_v28 = vpop.f32.mrf.mxu0 }
 0x20e   : > { %v801_v31 = vadd.f32 %v4556_v26, %v800_v28  ;;  %v3232_v28 = vor.u32 %v3812_v25, %v3231_v24  ;;  %v3175_v24 = vld [vmem:[#allocation3 + $0x48] sm:$0xf]  ;;  %v3797_v25 = vld [vmem:[#allocation3 + $0x54] sm:$0xf0] }
 0x210   : > { %vm839_vm11 = vcmp.gt.f32.partialorder %v801_v31, 0.0  ;;  %v855_v32 = vmul.f32 0.1, %v801_v31  ;;  %1262 = vmatpush.bf16.msrb.mxu2 %v3232_v28 }
 0x212   : > { %v871_v36 = vsel %vm839_vm11, %v801_v31, %v855_v32  ;;  %v3239_v31 = vld [vmem:[#allocation3 + $0xc8] sm:$0xf]  ;;  %v3813_v32 = vld [vmem:[#allocation3 + $0xd4] sm:$0xf0] }
 0x213   : > { %v886_v38 = vpack.c.bf16 %v871_v36, %v870_v35  ;;  %v3236_v36 = vor.u32 %v3810_v27, %v3233_v30  ;;  %v3176_v30 = vor.u32 %v3797_v25, %v3175_v24 }
 0x215   : > { %v803_v39 = vpop.f32.mrf.mxu0  ;;  %3125 = vmatmul.msk.bf16.vlgmr.msra.gmra.mxu1 %vm764_vm9, %v886_v38  ;;  %v4578_v38 = vor.u32 %v3813_v32, %v3239_v31  ;;  %1311 = vmatpush.bf16.msrb.mxu3 %v3236_v36  ;;  %v3795_v31 = vld [vmem:[#allocation3 + $0x4c] sm:$0xf]  ;;  %v3177_v32 = vld [vmem:[#allocation3 + $0x58] sm:$0xf0] }
 0x216   : > { %v804_v40 = vadd.f32 %v4556_v26, %v803_v39  ;;  %v3811_v39 = vld [vmem:[#allocation3 + $0xcc] sm:$0xf] }
 0x217   : > { %1360 = vmatpush.bf16.msrb.mxu0 %v4578_v38 }
 0x218   : > { %v856_v42 = vmul.f32 0.1, %v804_v40  ;;  %vm840_vm12 = vcmp.gt.f32.partialorder %v804_v40, 0.0 }
 0x21a   : > { %v872_v45 = vsel %vm840_vm12, %v804_v40, %v856_v42  ;;  %v3215_v42 = vld [vmem:[#allocation3 + $0xa0] sm:$0xf] }
 0x21d   : > { %v805_v41 = vpop.f32.mrf.mxu0 }
 0x21e   : > { %v806_v43 = vadd.f32 %v4556_v26, %v805_v41  ;;  %v3241_v41 = vld [vmem:[#allocation3 + $0xd8] sm:$0xf0] }
 0x220   : > { %vm841_vm13 = vcmp.gt.f32.partialorder %v806_v43, 0.0  ;;  %v857_v44 = vmul.f32 0.1, %v806_v43 }
 0x222   : > { %v873_v46 = vsel %vm841_vm13, %v806_v43, %v857_v44  ;;  %v3808_v43 = vld [vmem:[#allocation3 + $0xac] sm:$0xf0] }
 0x223   : > { %v887_v47 = vpack.c.bf16 %v873_v46, %v872_v45  ;;  %v3244_v45 = vor.u32 %v3811_v39, %v3241_v41  ;;  %v3216_v46 = vor.u32 %v3808_v43, %v3215_v42  ;;  %v3180_v39 = vor.u32 %v3795_v31, %v3177_v32  ;;  %v3792_v41 = vld [vmem:[#allocation3 + $0x2c] sm:$0xf0]  ;;  %v3790_v42 = vld [vmem:[#allocation3 + $0x24] sm:$0xf] }
 0x225   : > { %v808_v48 = vpop.f32.mrf.mxu0  ;;  %3126 = vmatmul.msk.bf16.gmra.mxu1 %vm764_vm9, %v887_v47  ;;  %v3806_v47 = vld [vmem:[#allocation3 + $0xa4] sm:$0xf]  ;;  %1263 = vmatpush.bf16.msrb.mxu2 %v3216_v46  ;;  %v3159_v46 = vld [vmem:[#allocation3 + $0x28] sm:$0xf] }
 0x226   : > { %v809_v49 = vadd.f32 %v4556_v26, %v808_v48  ;;  %v3217_v48 = vld [vmem:[#allocation3 + $0xb0] sm:$0xf0]  ;;  %1409 = vmatpush.bf16.msrb.mxu1 %v3244_v45 }
 0x227   : > { %v3153_v45 = vld [vmem:[#allocation3 + $0x30] sm:$0xf0] }
 0x228   : > { %v858_v51 = vmul.f32 0.1, %v809_v49  ;;  %vm842_vm14 = vcmp.gt.f32.partialorder %v809_v49, 0.0 }
 0x22a   : > { %v874_v54 = vsel %vm842_vm14, %v809_v49, %v858_v51  ;;  %v3223_v49 = vld [vmem:[#allocation3 + $0xa8] sm:$0xf]  ;;  %v3220_v51 = vor.u32 %v3806_v47, %v3217_v48  ;;  %v3793_v47 = vld [vmem:[#allocation3 + $0x34] sm:$0xf0]  ;;  %v3156_v48 = vor.u32 %v3790_v42, %v3153_v45 }
 0x22c   : > { %1312 = vmatpush.bf16.msrb.mxu3 %v3220_v51  ;;  %v3161_v51 = vld [vmem:[#allocation3 + $0x38] sm:$0xf0] }
 0x22d   : > { %v810_v50 = vpop.f32.mrf.mxu0 }
 0x22e   : > { %v811_v52 = vadd.f32 %v4556_v26, %v810_v50 }
 0x230   : > { %vm843_vm15 = vcmp.gt.f32.partialorder %v811_v52, 0.0  ;;  %v859_v53 = vmul.f32 0.1, %v811_v52 }
 0x232   : > { %v875_v29 = vsel %vm843_vm15, %v811_v52, %v859_v53  ;;  %v3809_v52 = vld [vmem:[#allocation3 + $0xb4] sm:$0xf0]  ;;  %v3807_v53 = vld [vmem:[#allocation3 + $0xac] sm:$0xf] }
 0x233   : > { %v888_v55 = vpack.c.bf16 %v875_v29, %v874_v54  ;;  %v3225_v54 = vld [vmem:[#allocation3 + $0xb8] sm:$0xf0]  ;;  %v4582_v29 = vor.u32 %v3809_v52, %v3223_v49  ;;  %v3160_v49 = vor.u32 %v3793_v47, %v3159_v46 }
 0x235   : > { %v813_v56 = vpop.f32.mrf.mxu0  ;;  %3127 = vmatmul.msk.bf16.gmra.mxu1 %vm764_vm9, %v888_v55  ;;  %v3228_v55 = vor.u32 %v3807_v53, %v3225_v54  ;;  %1361 = vmatpush.bf16.msrb.mxu0 %v4582_v29  ;;  %v3135_v54 = vld [vmem:[#allocation3] sm:$0xf] }
 0x236   : > { %v814_v57 = vadd.f32 %v4556_v26, %v813_v56 }
 0x237   : > { %1410 = vmatpush.bf16.msrb.mxu1 %v3228_v55  ;;  %v3788_v55 = vld [vmem:[#allocation3 + $0xc] sm:$0xf0] }
 0x238   : > { %v860_v59 = vmul.f32 0.1, %v814_v57  ;;  %vm844_vm0 = vcmp.gt.f32.partialorder %v814_v57, 0.0 }
 0x23a   : > { %v876_v62 = vsel %vm844_vm0, %v814_v57, %v860_v59  ;;  %v3199_v57 = vld [vmem:[#allocation3 + $0x80] sm:$0xf]  ;;  %v3802_v59 = vld [vmem:[#allocation3 + $0x84] sm:$0xf] }
 0x23d   : > { %v815_v58 = vpop.f32.mrf.mxu0 }
 0x23e   : > { %v816_v60 = vadd.f32 %v4556_v26, %v815_v58  ;;  %v3804_v58 = vld [vmem:[#allocation3 + $0x8c] sm:$0xf0] }
 0x240   : > { %vm845_vm1 = vcmp.gt.f32.partialorder %v816_v60, 0.0  ;;  %v861_v61 = vmul.f32 0.1, %v816_v60 }
 0x242   : > { %v877_v33 = vsel %vm845_vm1, %v816_v60, %v861_v61  ;;  %v3200_v60 = vor.u32 %v3804_v58, %v3199_v57  ;;  %v3201_v61 = vld [vmem:[#allocation3 + $0x90] sm:$0xf0]  ;;  %v3136_v57 = vor.u32 %v3788_v55, %v3135_v54 }
 0x243   : > { %v889_v34 = vpack.c.bf16 %v877_v33, %v876_v62  ;;  %v3207_v62 = vld [vmem:[#allocation3 + $0x88] sm:$0xf]  ;;  %v3805_v33 = vld [vmem:[#allocation3 + $0x94] sm:$0xf0]  ;;  %v3137_v58 = vld [vmem:[#allocation3 + $0x10] sm:$0xf0] }
 0x244   : > { %1264 = vmatpush.bf16.msrb.mxu2 %v3200_v60  ;;  %v3789_v60 = vld [vmem:[#allocation3 + $0x14] sm:$0xf0] }
 0x245   : > { %v818_v37 = vpop.f32.mrf.mxu0  ;;  %3128 = vmatmul.msk.bf16.gmra.mxu1 %vm764_vm9, %v889_v34  ;;  %v3204_v34 = vor.u32 %v3802_v59, %v3201_v61  ;;  %v3143_v59 = vld [vmem:[#allocation3 + $0x8] sm:$0xf] }
 0x246   : > { %v819_v63 = vadd.f32 %v4556_v26, %v818_v37  ;;  %v4586_v37 = vor.u32 %v3805_v33, %v3207_v62  ;;  %v3144_v62 = vor.u32 %v3789_v60, %v3143_v59  ;;  %v3787_v33 = vld [vmem:[#allocation3 + $0xc] sm:$0xf] }
 0x247   : > { %1313 = vmatpush.bf16.msrb.mxu3 %v3204_v34  ;;  %v3145_v34 = vld [vmem:[#allocation3 + $0x18] sm:$0xf0] }
 0x248   : > { %v862_v1 = vmul.f32 0.1, %v819_v63  ;;  %vm846_vm2 = vcmp.gt.f32.partialorder %v819_v63, 0.0  ;;  %1362 = vmatpush.bf16.msrb.mxu0 %v4586_v37 }
 0x24a   : > { %v878_v4 = vsel %vm846_vm2, %v819_v63, %v862_v1  ;;  %v3803_v63 = vld [vmem:[#allocation3 + $0x8c] sm:$0xf] }
 0x24d   : > { %v820_v0 = vpop.f32.mrf.mxu0 }
 0x24e   : > { %v821_v2 = vadd.f32 %v4556_v26, %v820_v0  ;;  %v3209_v0 = vld [vmem:[#allocation3 + $0x98] sm:$0xf0] }
 0x24f   : > { %v3212_v1 = vor.u32 %v3803_v63, %v3209_v0  ;;  %v3148_v0 = vor.u32 %v3787_v33, %v3145_v34 }
 0x250   : > { %vm847_vm3 = vcmp.gt.f32.partialorder %v821_v2, 0.0  ;;  %v863_v3 = vmul.f32 0.1, %v821_v2 }
 0x251   : > { %1411 = vmatpush.bf16.msrb.mxu1 %v3212_v1 }
 0x252   : > { %v879_v5 = vsel %vm847_vm3, %v821_v2, %v863_v3  ;;  %v3183_v3 = vld [vmem:[#allocation3 + $0x60] sm:$0xf] }
 0x253   : > { %v890_v6 = vpack.c.bf16 %v879_v5, %v878_v4  ;;  %v3800_v4 = vld [vmem:[#allocation3 + $0x6c] sm:$0xf0]  ;;  %v3798_v5 = vld [vmem:[#allocation3 + $0x64] sm:$0xf] }
 0x255   : > { %3129 = vmatmul.msk.bf16.vlgmr.msra.gmra.mxu3 %vm764_vm9, %v890_v6  ;;  %v3184_v6 = vor.u32 %v3800_v4, %v3183_v3  ;;  %1412 = vmatpush.bf16.msrb.mxu1 %v3196_v16 }
 0x257   : > { %1265 = vmatpush.bf16.msrb.mxu2 %v3184_v6 }
 0x259   : > { %1413 = vmatpush.bf16.msrb.mxu1 %v3180_v39 }
 0x25b   : > { %v823_v7 = vpop.f32.mrf.mxu2 }
 0x25c   : > { %v824_v9 = vadd.f32 %v4556_v26, %v823_v7  ;;  %v3185_v7 = vld [vmem:[#allocation3 + $0x70] sm:$0xf0] }
 0x25d   : > { %v3188_v10 = vor.u32 %v3798_v5, %v3185_v7 }
 0x25e   : > { %vm848_vm4 = vcmp.gt.f32.partialorder %v824_v9, 0.0  ;;  %v864_v21 = vmul.f32 0.1, %v824_v9 }
 0x25f   : > { %1314 = vmatpush.bf16.msrb.mxu3 %v3188_v10 }
 0x260   : > { %v880_v40 = vsel %vm848_vm4, %v824_v9, %v864_v21  ;;  %v3801_v9 = vld [vmem:[#allocation3 + $0x74] sm:$0xf0]  ;;  %v3794_v21 = vld [vmem:[#allocation3 + $0x44] sm:$0xf] }
 0x261   : > { %v4590_v11 = vor.u32 %v3801_v9, %v3191_v8 }
 0x263   : > { %v825_v22 = vpop.f32.mrf.mxu2  ;;  %1363 = vmatpush.bf16.msrb.mxu0 %v4590_v11 }
 0x264   : > { %v826_v23 = vadd.f32 %v4556_v26, %v825_v22  ;;  %v3168_v22 = vor.u32 %v3796_v20, %v3167_v19 }
 0x266   : > { %vm849_vm5 = vcmp.gt.f32.partialorder %v826_v23, 0.0  ;;  %v865_v35 = vmul.f32 0.1, %v826_v23  ;;  %1266 = vmatpush.bf16.msrb.mxu2 %v3168_v22 }
 0x267   : > { %1364 = vmatpush.bf16.msrb.mxu0 %v3176_v30 }
 0x268   : > { %v881_v44 = vsel %vm849_vm5, %v826_v23, %v865_v35  ;;  %v3169_v23 = vld [vmem:[#allocation3 + $0x50] sm:$0xf0] }
 0x269   : > { %v891_v50 = vpack.c.bf16 %v881_v44, %v880_v40  ;;  %v3172_v28 = vor.u32 %v3794_v21, %v3169_v23  ;;  %v3151_v40 = vld [vmem:[#allocation3 + $0x20] sm:$0xf] }
 0x26a   : > { %v3152_v44 = vor.u32 %v3792_v41, %v3151_v40 }
 0x26b   : > { %v828_v56 = vpop.f32.mrf.mxu2  ;;  %3130 = vmatmul.msk.bf16.gmra.mxu3 %vm764_vm9, %v891_v50  ;;  %v3791_v50 = vld [vmem:[#allocation3 + $0x2c] sm:$0xf]  ;;  %1365 = vmatpush.bf16.msrb.mxu0 %v3160_v49 }
 0x26c   : > { %v829_v2 = vadd.f32 %v4556_v26, %v828_v56  ;;  %1315 = vmatpush.bf16.msrb.mxu3 %v3172_v28  ;;  %1267 = vmatpush.bf16.msrb.mxu2 %v3152_v44  ;;  %v3164_v53 = vor.u32 %v3791_v50, %v3161_v51  ;;  %v3786_v56 = vld [vmem:[#allocation3 + $0x4] sm:$0xf] }
 0x26d   : > { %v3140_v61 = vor.u32 %v3786_v56, %v3137_v58 }
 0x26e   : > { %vm850_vm6 = vcmp.gt.f32.partialorder %v829_v2, 0.0  ;;  %v866_v14 = vmul.f32 0.1, %v829_v2  ;;  %1414 = vmatpush.bf16.msrb.mxu1 %v3164_v53 }
 0x26f   : > { %1366 = vmatpush.bf16.msrb.mxu0 %v3144_v62 }
 0x270   : > { %v882_v35 = vsel %vm850_vm6, %v829_v2, %v866_v14  ;;  %1316 = vmatpush.bf16.msrb.mxu3 %v3156_v48  ;;  %1268 = vmatpush.bf16.msrb.mxu2 %v3136_v57 }
 0x272   : > { %1415 = vmatpush.bf16.msrb.mxu1 %v3148_v0 }
 0x273   : > { %v830_v15 = vpop.f32.mrf.mxu2 }
 0x274   : > { %v831_v17 = vadd.f32 %v4556_v26, %v830_v15  ;;  %1317 = vmatpush.bf16.msrb.mxu3 %v3140_v61  ;;  %3954 = vmatpush.bf16.msra.mxu2 %v4574_v18 }
 0x276   : > { %vm851_vm7 = vcmp.gt.f32.partialorder %v831_v17, 0.0  ;;  %v867_v27 = vmul.f32 0.1, %v831_v17 }
 0x278   : > { %v883_v36 = vsel %vm851_vm7, %v831_v17, %v867_v27  ;;  %3955 = vmatpush.bf16.msra.mxu2 %v4578_v38 }
 0x279   : > { %v892_v43 = vpack.c.bf16 %v883_v36, %v882_v35 }
 0x27b   : > { %v833_v52 = vpop.f32.mrf.mxu2  ;;  %3131 = vmatmul.msk.bf16.gmra.mxu3 %vm764_vm9, %v892_v43 }
 0x27c   : > { %v834_v63 = vadd.f32 %v4556_v26, %v833_v52  ;;  %3956 = vmatpush.bf16.msra.mxu2 %v4582_v29 }
 0x27e   : > { %v868_v2 = vmul.f32 0.1, %v834_v63  ;;  %vm852_vm8 = vcmp.gt.f32.partialorder %v834_v63, 0.0 }
 0x280   : > { %v884_v5 = vsel %vm852_vm8, %v834_v63, %v868_v2  ;;  %3957 = vmatpush.bf16.msra.mxu2 %v4586_v37 }
 0x283   : > { %v835_v1 = vpop.f32.mrf.mxu2 }
 0x284   : > { %v836_v3 = vadd.f32 %v4556_v26, %v835_v1  ;;  %3958 = vmatpush.bf16.msra.mxu2 %v4590_v11  ;;  %v4607_v26 = vld [vmem:[%s4866_s6] ss:$0 sm:$0xff] }
 0x286   : > { %vm853_vm10 = vcmp.gt.f32.partialorder %v836_v3, 0.0  ;;  %v869_v4 = vmul.f32 0.1, %v836_v3 }
 0x288   : > { %v885_v6 = vsel %vm853_vm10, %v836_v3, %v869_v4  ;;  %3959 = vmatpush.bf16.msra.mxu2 %v3176_v30 }
 0x289   : > { %v893_v7 = vpack.c.bf16 %v885_v6, %v884_v5 }
 0x28b   : > { %3132 = vmatmul.msk.bf16.gmra.mxu3 %vm764_vm9, %v893_v7 }
 0x28c   : > { %3960 = vmatpush.bf16.msra.mxu2 %v3160_v49 }
 0x290   : > { %3961 = vmatpush.bf16.msra.mxu2 %v3144_v62 }
 0x292   : > { %v963_v18 = vpop.f32.mrf.mxu1 }
 0x293   : > { %v964_v38 = vadd.f32 %v4607_v26, %v963_v18 }
 0x295   : > { %v1019_v9 = vmul.f32 0.1, %v964_v38  ;;  %vm1003_vm11 = vcmp.gt.f32.partialorder %v964_v38, 0.0 }
 0x297   : > { %v1035_v37 = vsel %vm1003_vm11, %v964_v38, %v1019_v9 }
 0x29a   : > { %v965_v8 = vpop.f32.mrf.mxu1 }
 0x29b   : > { %v966_v29 = vadd.f32 %v4607_v26, %v965_v8 }
 0x29d   : > { %vm1004_vm9 = vcmp.gt.f32.partialorder %v966_v29, 0.0  ;;  %v1020_v10 = vmul.f32 0.1, %v966_v29 }
 0x29f   : > { %v1036_v11 = vsel %vm1004_vm9, %v966_v29, %v1020_v10 }
 0x2a0   : > { %v1051_v12 = vpack.c.bf16 %v1036_v11, %v1035_v37 }
 0x2a2   : > { %v968_v13 = vpop.f32.mrf.mxu1  ;;  %1269 = vmatmul.bf16.vlgmr.msrb.gmra.mxu2 %v1051_v12  ;;  %1318 = vmatmul.bf16.vlgmr.msrb.gmra.mxu3 %v1051_v12 }
 0x2a3   : > { %1367 = vmatmul.bf16.vlgmr.msrb.gmra.mxu0 %v1051_v12  ;;  %1416 = vmatmul.bf16.vlgmr.msrb.gmra.mxu1 %v1051_v12  ;;  %v969_v14 = vadd.f32 %v4607_v26, %v968_v13  ;;  %v1091_v13 = vld [vmem:[%s4868_s8] sm:$0xf] }
 0x2a5   : > { %v1021_v16 = vmul.f32 0.1, %v969_v14  ;;  %vm1005_vm12 = vcmp.gt.f32.partialorder %v969_v14, 0.0 }
 0x2a7   : > { %v1037_v20 = vsel %vm1005_vm12, %v969_v14, %v1021_v16  ;;  %v4628_v14 = vperm.slane %v1091_v13, 2  ;;  %v4630_v16 = vperm.slane %v1091_v13, 3 }
 0x2aa   : > { %v970_v15 = vpop.f32.mrf.mxu1 }
 0x2ab   : > { %v971_v17 = vadd.f32 %v4607_v26, %v970_v15 }
 0x2ad   : > { %vm1006_vm13 = vcmp.gt.f32.partialorder %v971_v17, 0.0  ;;  %v1022_v19 = vmul.f32 0.1, %v971_v17 }
 0x2af   : > { %v1038_v21 = vsel %vm1006_vm13, %v971_v17, %v1022_v19 }
 0x2b0   : > { %v1052_v22 = vpack.c.bf16 %v1038_v21, %v1037_v20  ;;  %v4634_v20 = vperm.slane %v1091_v13, 0 }
 0x2b2   : > { %v973_v23 = vpop.f32.mrf.mxu1  ;;  %1274 = vmatmul.bf16.gmra.mxu2 %v1052_v22  ;;  %1323 = vmatmul.bf16.gmra.mxu3 %v1052_v22 }
 0x2b3   : > { %1372 = vmatmul.bf16.gmra.mxu0 %v1052_v22  ;;  %1421 = vmatmul.bf16.gmra.mxu1 %v1052_v22  ;;  %v974_v24 = vadd.f32 %v4607_v26, %v973_v23  ;;  %v4636_v22 = vperm.slane %v1091_v13, 1 }
 0x2b5   : > { %v1023_v27 = vmul.f32 0.1, %v974_v24  ;;  %vm1007_vm14 = vcmp.gt.f32.partialorder %v974_v24, 0.0 }
 0x2b7   : > { %v1039_v31 = vsel %vm1007_vm14, %v974_v24, %v1023_v27 }
 0x2ba   : > { %v975_v25 = vpop.f32.mrf.mxu1 }
 0x2bb   : > { %v976_v28 = vadd.f32 %v4607_v26, %v975_v25 }
 0x2bd   : > { %vm1008_vm15 = vcmp.gt.f32.partialorder %v976_v28, 0.0  ;;  %v1024_v30 = vmul.f32 0.1, %v976_v28 }
 0x2bf   : > { %v1040_v32 = vsel %vm1008_vm15, %v976_v28, %v1024_v30 }
 0x2c0   : > { %v1053_v35 = vpack.c.bf16 %v1040_v32, %v1039_v31 }
 0x2c2   : > { %v978_v36 = vpop.f32.mrf.mxu1  ;;  %1279 = vmatmul.bf16.gmra.mxu2 %v1053_v35  ;;  %1328 = vmatmul.bf16.gmra.mxu3 %v1053_v35 }
 0x2c3   : > { %1377 = vmatmul.bf16.gmra.mxu0 %v1053_v35  ;;  %1426 = vmatmul.bf16.gmra.mxu1 %v1053_v35  ;;  %v979_v39 = vadd.f32 %v4607_v26, %v978_v36 }
 0x2c5   : > { %v1025_v41 = vmul.f32 0.1, %v979_v39  ;;  %vm1009_vm0 = vcmp.gt.f32.partialorder %v979_v39, 0.0 }
 0x2c7   : > { %v1041_v44 = vsel %vm1009_vm0, %v979_v39, %v1025_v41 }
 0x2ca   : > { %v980_v40 = vpop.f32.mrf.mxu1 }
 0x2cb   : > { %v981_v42 = vadd.f32 %v4607_v26, %v980_v40 }
 0x2cd   : > { %vm1010_vm1 = vcmp.gt.f32.partialorder %v981_v42, 0.0  ;;  %v1026_v43 = vmul.f32 0.1, %v981_v42 }
 0x2cf   : > { %v1042_v45 = vsel %vm1010_vm1, %v981_v42, %v1026_v43 }
 0x2d0   : > { %v1054_v46 = vpack.c.bf16 %v1042_v45, %v1041_v44 }
 0x2d2   : > { %1284 = vmatmul.bf16.gmra.mxu2 %v1054_v46  ;;  %1333 = vmatmul.bf16.gmra.mxu3 %v1054_v46 }
 0x2d3   : > { %1382 = vmatmul.bf16.gmra.mxu0 %v1054_v46  ;;  %1431 = vmatmul.bf16.gmra.mxu1 %v1054_v46 }
 0x2d8   : > { %v983_v47 = vpop.f32.mrf.mxu3 }
 0x2d9   : > { %v984_v48 = vadd.f32 %v4607_v26, %v983_v47 }
 0x2db   : > { %v1027_v50 = vmul.f32 0.1, %v984_v48  ;;  %vm1011_vm2 = vcmp.gt.f32.partialorder %v984_v48, 0.0 }
 0x2dd   : > { %v1043_v53 = vsel %vm1011_vm2, %v984_v48, %v1027_v50 }
 0x2e0   : > { %v985_v49 = vpop.f32.mrf.mxu3 }
 0x2e1   : > { %v986_v51 = vadd.f32 %v4607_v26, %v985_v49 }
 0x2e3   : > { %vm1012_vm3 = vcmp.gt.f32.partialorder %v986_v51, 0.0  ;;  %v1028_v52 = vmul.f32 0.1, %v986_v51 }
 0x2e5   : > { %v1044_v54 = vsel %vm1012_vm3, %v986_v51, %v1028_v52 }
 0x2e6   : > { %v1055_v55 = vpack.c.bf16 %v1044_v54, %v1043_v53 }
 0x2e8   : > { %1289 = vmatmul.bf16.gmra.mxu2 %v1055_v55  ;;  %1338 = vmatmul.bf16.gmra.mxu3 %v1055_v55 }
 0x2e9   : > { %1387 = vmatmul.bf16.gmra.mxu0 %v1055_v55  ;;  %1436 = vmatmul.bf16.gmra.mxu1 %v1055_v55 }
 0x2ee   : > { %v988_v56 = vpop.f32.mrf.mxu3 }
 0x2ef   : > { %v989_v57 = vadd.f32 %v4607_v26, %v988_v56 }
 0x2f1   : > { %v1029_v59 = vmul.f32 0.1, %v989_v57  ;;  %vm1013_vm4 = vcmp.gt.f32.partialorder %v989_v57, 0.0 }
 0x2f3   : > { %v1045_v62 = vsel %vm1013_vm4, %v989_v57, %v1029_v59 }
 0x2f6   : > { %v990_v58 = vpop.f32.mrf.mxu3 }
 0x2f7   : > { %v991_v60 = vadd.f32 %v4607_v26, %v990_v58 }
 0x2f9   : > { %vm1014_vm5 = vcmp.gt.f32.partialorder %v991_v60, 0.0  ;;  %v1030_v61 = vmul.f32 0.1, %v991_v60 }
 0x2fb   : > { %v1046_v33 = vsel %vm1014_vm5, %v991_v60, %v1030_v61 }
 0x2fc   : > { %v1056_v34 = vpack.c.bf16 %v1046_v33, %v1045_v62 }
 0x2fe   : > { %v993_v63 = vpop.f32.mrf.mxu3  ;;  %1294 = vmatmul.bf16.gmra.mxu2 %v1056_v34  ;;  %1343 = vmatmul.bf16.gmra.mxu3 %v1056_v34 }
 0x2ff   : > { %1392 = vmatmul.bf16.gmra.mxu0 %v1056_v34  ;;  %1441 = vmatmul.bf16.gmra.mxu1 %v1056_v34  ;;  %v994_v0 = vadd.f32 %v4607_v26, %v993_v63 }
 0x301   : > { %v1031_v2 = vmul.f32 0.1, %v994_v0  ;;  %vm1015_vm6 = vcmp.gt.f32.partialorder %v994_v0, 0.0 }
 0x303   : > { %v1047_v5 = vsel %vm1015_vm6, %v994_v0, %v1031_v2 }
 0x306   : > { %v995_v1 = vpop.f32.mrf.mxu3 }
 0x307   : > { %v996_v3 = vadd.f32 %v4607_v26, %v995_v1 }
 0x309   : > { %vm1016_vm7 = vcmp.gt.f32.partialorder %v996_v3, 0.0  ;;  %v1032_v4 = vmul.f32 0.1, %v996_v3 }
 0x30b   : > { %v1048_v6 = vsel %vm1016_vm7, %v996_v3, %v1032_v4 }
 0x30c   : > { %v1057_v7 = vpack.c.bf16 %v1048_v6, %v1047_v5 }
 0x30e   : > { %v998_v18 = vpop.f32.mrf.mxu3  ;;  %1299 = vmatmul.bf16.gmra.mxu2 %v1057_v7  ;;  %1348 = vmatmul.bf16.gmra.mxu3 %v1057_v7 }
 0x30f   : > { %1397 = vmatmul.bf16.gmra.mxu0 %v1057_v7  ;;  %1446 = vmatmul.bf16.gmra.mxu1 %v1057_v7  ;;  %v999_v38 = vadd.f32 %v4607_v26, %v998_v18 }
 0x311   : > { %v1033_v9 = vmul.f32 0.1, %v999_v38  ;;  %vm1017_vm8 = vcmp.gt.f32.partialorder %v999_v38, 0.0 }
 0x313   : > { %v1049_v37 = vsel %vm1017_vm8, %v999_v38, %v1033_v9 }
 0x316   : > { %v1000_v8 = vpop.f32.mrf.mxu3 }
 0x317   : > { %v1001_v29 = vadd.f32 %v4607_v26, %v1000_v8 }
 0x319   : > { %vm1018_vm10 = vcmp.gt.f32.partialorder %v1001_v29, 0.0  ;;  %v1034_v10 = vmul.f32 0.1, %v1001_v29 }
 0x31b   : > { %v1050_v11 = vsel %vm1018_vm10, %v1001_v29, %v1034_v10 }
 0x31c   : > { %v1058_v12 = vpack.c.bf16 %v1050_v11, %v1049_v37 }
 0x31e   : > { %1304 = vmatmul.bf16.gmra.mxu2 %v1058_v12  ;;  %1353 = vmatmul.bf16.gmra.mxu3 %v1058_v12 }
 0x31f   : > { %1451 = vmatmul.bf16.gmra.mxu1 %v1058_v12 }
 0x320   : > { %v1368_v15 = vpop.f32.mrf.mxu0  ;;  %v1417_v17 = vpop.f32.mrf.mxu1 }
 0x321   : > { %v1369_v26 = vadd.f32 %v1368_v15, %v4628_v14  ;;  %v1418_v19 = vadd.f32 %v1417_v17, %v4630_v16 }
 0x323   : > { %vm1459_vm11 = vcmp.gt.f32.partialorder %v1369_v26, 0.0  ;;  %v1523_v24 = vmul.f32 0.1, %v1369_v26  ;;  %vm1460_vm9 = vcmp.gt.f32.partialorder %v1418_v19, 0.0  ;;  %v1524_v25 = vmul.f32 0.1, %v1418_v19 }
 0x325   : > { %v1270_v21 = vpop.f32.mrf.mxu2  ;;  %v1319_v23 = vpop.f32.mrf.mxu3  ;;  %v1587_v40 = vsel %vm1459_vm11, %v1369_v26, %v1523_v24  ;;  %v1588_v41 = vsel %vm1460_vm9, %v1418_v19, %v1524_v25 }
 0x326   : > { %v1271_v30 = vadd.f32 %v1270_v21, %v4634_v20  ;;  %v1320_v31 = vadd.f32 %v1319_v23, %v4636_v22 }
 0x328   : > { %v1370_v27 = vpop.f32.mrf.mxu0  ;;  %v1419_v28 = vpop.f32.mrf.mxu1  ;;  %v1521_v42 = vmul.f32 0.1, %v1271_v30  ;;  %v1522_v43 = vmul.f32 0.1, %v1320_v31  ;;  %vm1457_vm14 = vcmp.gt.f32.partialorder %v1271_v30, 0.0  ;;  %vm1458_vm15 = vcmp.gt.f32.partialorder %v1320_v31, 0.0 }
 0x329   : > { %v1371_v32 = vadd.f32 %v1370_v27, %v4628_v14  ;;  %v1420_v35 = vadd.f32 %v1419_v28, %v4630_v16 }
 0x32a   : > { %v1585_v58 = vsel %vm1457_vm14, %v1271_v30, %v1521_v42  ;;  %v1586_v59 = vsel %vm1458_vm15, %v1320_v31, %v1522_v43 }
 0x32b   : > { %vm1463_vm12 = vcmp.gt.f32.partialorder %v1371_v32, 0.0  ;;  %v1527_v36 = vmul.f32 0.1, %v1371_v32  ;;  %vm1464_vm13 = vcmp.gt.f32.partialorder %v1420_v35, 0.0  ;;  %v1528_v39 = vmul.f32 0.1, %v1420_v35 }
 0x32d   : > { %v1591_v44 = vsel %vm1463_vm12, %v1371_v32, %v1527_v36  ;;  %v1592_v45 = vsel %vm1464_vm13, %v1420_v35, %v1528_v39  ;;  %v1272_v46 = vpop.f32.mrf.mxu2  ;;  %v1321_v47 = vpop.f32.mrf.mxu3 }
 0x32e   : > { %v1747_v48 = vmax.f32 %v1587_v40, %v1591_v44  ;;  %v1748_v49 = vmax.f32 %v1588_v41, %v1592_v45  ;;  %v1273_v50 = vadd.f32 %v1272_v46, %v4634_v20  ;;  %v1322_v51 = vadd.f32 %v1321_v47, %v4636_v22  ;;  %1402 = vmatmul.bf16.vlgmr.msra.gmra.mxu2 %v1058_v12 }
 0x330   : > { %vm1461_vm0 = vcmp.gt.f32.partialorder %v1273_v50, 0.0  ;;  %v1525_v52 = vmul.f32 0.1, %v1273_v50  ;;  %vm1462_vm1 = vcmp.gt.f32.partialorder %v1322_v51, 0.0  ;;  %v1526_v53 = vmul.f32 0.1, %v1322_v51  ;;  %v1373_v54 = vpop.f32.mrf.mxu0  ;;  %v1422_v55 = vpop.f32.mrf.mxu1 }
 0x331   : > { %v1374_v56 = vadd.f32 %v1373_v54, %v4628_v14  ;;  %v1423_v57 = vadd.f32 %v1422_v55, %v4630_v16 }
 0x332   : > { %v1589_v60 = vsel %vm1461_vm0, %v1273_v50, %v1525_v52  ;;  %v1590_v61 = vsel %vm1462_vm1, %v1322_v51, %v1526_v53 }
 0x333   : > { %v1745_v62 = vmax.f32 %v1585_v58, %v1589_v60  ;;  %v1746_v33 = vmax.f32 %v1586_v59, %v1590_v61  ;;  %vm1467_vm2 = vcmp.gt.f32.partialorder %v1374_v56, 0.0  ;;  %v1531_v34 = vmul.f32 0.1, %v1374_v56 }
 0x334   : > { %vm1468_vm3 = vcmp.gt.f32.partialorder %v1423_v57, 0.0  ;;  %v1532_v63 = vmul.f32 0.1, %v1423_v57 }
 0x335   : > { %v1595_v0 = vsel %vm1467_vm2, %v1374_v56, %v1531_v34  ;;  %v1275_v1 = vpop.f32.mrf.mxu2  ;;  %v1324_v2 = vpop.f32.mrf.mxu3 }
 0x336   : > { %v4646_v3 = vmax.f32 %v1595_v0, %v1747_v48  ;;  %v1596_v4 = vsel %vm1468_vm3, %v1423_v57, %v1532_v63  ;;  %v1276_v5 = vadd.f32 %v1275_v1, %v4634_v20  ;;  %v1325_v6 = vadd.f32 %v1324_v2, %v4636_v22 }
 0x337   : > { %v1752_v7 = vmax.f32 %v1596_v4, %v1748_v49 }
 0x338   : > { %vm1465_vm4 = vcmp.gt.f32.partialorder %v1276_v5, 0.0  ;;  %v1529_v18 = vmul.f32 0.1, %v1276_v5  ;;  %vm1466_vm5 = vcmp.gt.f32.partialorder %v1325_v6, 0.0  ;;  %v1530_v38 = vmul.f32 0.1, %v1325_v6  ;;  %v1424_v8 = vpop.f32.mrf.mxu1  ;;  %v1375_v50 = vpop.f32.mrf.mxu0 }
 0x339   : > { %v1425_v9 = vadd.f32 %v1424_v8, %v4630_v16 }
 0x33a   : > { %v1593_v29 = vsel %vm1465_vm4, %v1276_v5, %v1529_v18  ;;  %v1594_v10 = vsel %vm1466_vm5, %v1325_v6, %v1530_v38 }
 0x33b   : > { %v1749_v37 = vmax.f32 %v1593_v29, %v1745_v62  ;;  %v1750_v11 = vmax.f32 %v1594_v10, %v1746_v33  ;;  %vm1472_vm6 = vcmp.gt.f32.partialorder %v1425_v9, 0.0  ;;  %v1536_v12 = vmul.f32 0.1, %v1425_v9 }
 0x33d   : > { %v1277_v13 = vpop.f32.mrf.mxu2  ;;  %v1326_v15 = vpop.f32.mrf.mxu3  ;;  %v1600_v17 = vsel %vm1472_vm6, %v1425_v9, %v1536_v12 }
 0x33e   : > { %v1278_v26 = vadd.f32 %v1277_v13, %v4634_v20  ;;  %v1327_v19 = vadd.f32 %v1326_v15, %v4636_v22  ;;  %v1756_v21 = vmax.f32 %v1600_v17, %v1752_v7 }
 0x340   : > { %vm1469_vm7 = vcmp.gt.f32.partialorder %v1278_v26, 0.0  ;;  %v1533_v23 = vmul.f32 0.1, %v1278_v26  ;;  %vm1470_vm8 = vcmp.gt.f32.partialorder %v1327_v19, 0.0  ;;  %v1534_v24 = vmul.f32 0.1, %v1327_v19  ;;  %v1427_v25 = vpop.f32.mrf.mxu1  ;;  %v1378_v59 = vpop.f32.mrf.mxu0 }
 0x341   : > { %v1428_v27 = vadd.f32 %v1427_v25, %v4630_v16  ;;  %v1379_v15 = vadd.f32 %v1378_v59, %v4628_v14 }
 0x342   : > { %v1597_v28 = vsel %vm1469_vm7, %v1278_v26, %v1533_v23  ;;  %v1598_v30 = vsel %vm1470_vm8, %v1327_v19, %v1534_v24 }
 0x343   : > { %v1753_v31 = vmax.f32 %v1597_v28, %v1749_v37  ;;  %v1754_v32 = vmax.f32 %v1598_v30, %v1750_v11  ;;  %vm1476_vm10 = vcmp.gt.f32.partialorder %v1428_v27, 0.0  ;;  %v1540_v35 = vmul.f32 0.1, %v1428_v27 }
 0x344   : > { %v1376_v11 = vadd.f32 %v1375_v50, %v4628_v14  ;;  %vm1475_vm0 = vcmp.gt.f32.partialorder %v1379_v15, 0.0 }
 0x345   : > { %v1280_v36 = vpop.f32.mrf.mxu2  ;;  %v1329_v39 = vpop.f32.mrf.mxu3  ;;  %v1604_v40 = vsel %vm1476_vm10, %v1428_v27, %v1540_v35 }
 0x346   : > { %v1281_v41 = vadd.f32 %v1280_v36, %v4634_v20  ;;  %v1330_v42 = vadd.f32 %v1329_v39, %v4636_v22  ;;  %v4656_v43 = vmax.f32 %v1604_v40, %v1756_v21  ;;  %v1535_v17 = vmul.f32 0.1, %v1376_v11 }
 0x347   : > { %vm1471_vm15 = vcmp.gt.f32.partialorder %v1376_v11, 0.0  ;;  %v1539_v21 = vmul.f32 0.1, %v1379_v15 }
 0x348   : > { %vm1473_vm11 = vcmp.gt.f32.partialorder %v1281_v41, 0.0  ;;  %v1537_v44 = vmul.f32 0.1, %v1281_v41  ;;  %vm1474_vm9 = vcmp.gt.f32.partialorder %v1330_v42, 0.0  ;;  %v1538_v45 = vmul.f32 0.1, %v1330_v42  ;;  %v1429_v52 = vpop.f32.mrf.mxu1  ;;  %v1380_v2 = vpop.f32.mrf.mxu0 }
 0x349   : > { %v1381_v23 = vadd.f32 %v1380_v2, %v4628_v14  ;;  %v1599_v24 = vsel %vm1471_vm15, %v1376_v11, %v1535_v17  ;;  %v1430_v25 = vadd.f32 %v1429_v52, %v4630_v16 }
 0x34a   : > { %v1601_v46 = vsel %vm1473_vm11, %v1281_v41, %v1537_v44  ;;  %v1602_v47 = vsel %vm1474_vm9, %v1330_v42, %v1538_v45 }
 0x34b   : > { %v1757_v48 = vmax.f32 %v1601_v46, %v1753_v31  ;;  %v4658_v49 = vmax.f32 %v1602_v47, %v1754_v32  ;;  %v1755_v31 = vmax.f32 %v1599_v24, %v4646_v3  ;;  %v1603_v32 = vsel %vm1475_vm0, %v1379_v15, %v1539_v21 }
 0x34c   : > { %vm1479_vm1 = vcmp.gt.f32.partialorder %v1381_v23, 0.0  ;;  %v1543_v35 = vmul.f32 0.1, %v1381_v23  ;;  %v1544_v36 = vmul.f32 0.1, %v1430_v25  ;;  %vm1480_vm2 = vcmp.gt.f32.partialorder %v1430_v25, 0.0 }
 0x34d   : > { %v1282_v51 = vpop.f32.mrf.mxu2  ;;  %v1331_v57 = vpop.f32.mrf.mxu3  ;;  %v1759_v45 = vmax.f32 %v1603_v32, %v1755_v31 }
 0x34e   : > { %v1283_v53 = vadd.f32 %v1282_v51, %v4634_v20  ;;  %v1332_v27 = vadd.f32 %v1331_v57, %v4636_v22  ;;  %v1607_v3 = vsel %vm1479_vm1, %v1381_v23, %v1543_v35 }
 0x350   : > { %vm1477_vm12 = vcmp.gt.f32.partialorder %v1283_v53, 0.0  ;;  %v1541_v54 = vmul.f32 0.1, %v1283_v53  ;;  %v1432_v61 = vpop.f32.mrf.mxu1  ;;  %v1383_v38 = vpop.f32.mrf.mxu0  ;;  %v1542_v39 = vmul.f32 0.1, %v1332_v27  ;;  %vm1478_vm3 = vcmp.gt.f32.partialorder %v1332_v27, 0.0 }
 0x351   : > { %v1433_v40 = vadd.f32 %v1432_v61, %v4630_v16  ;;  %v1384_v46 = vadd.f32 %v1383_v38, %v4628_v14 }
 0x352   : > { %v1605_v55 = vsel %vm1477_vm12, %v1283_v53, %v1541_v54  ;;  %v1606_v50 = vsel %vm1478_vm3, %v1332_v27, %v1542_v39 }
 0x353   : > { %v1761_v56 = vmax.f32 %v1605_v55, %v1757_v48  ;;  %v1608_v48 = vsel %vm1480_vm2, %v1430_v25, %v1544_v36  ;;  %v1548_v51 = vmul.f32 0.1, %v1433_v40  ;;  %vm1484_vm4 = vcmp.gt.f32.partialorder %v1433_v40, 0.0 }
 0x354   : > { %v1764_v59 = vmax.f32 %v1608_v48, %v4656_v43  ;;  %vm1483_vm7 = vcmp.gt.f32.partialorder %v1384_v46, 0.0 }
 0x355   : > { %v1285_v58 = vpop.f32.mrf.mxu2  ;;  %v1334_v63 = vpop.f32.mrf.mxu3 }
 0x356   : > { %v1286_v60 = vadd.f32 %v1285_v58, %v4634_v20  ;;  %v1335_v41 = vadd.f32 %v1334_v63, %v4636_v22  ;;  %v1763_v58 = vmax.f32 %v1607_v3, %v1759_v45 }
 0x358   : > { %vm1481_vm13 = vcmp.gt.f32.partialorder %v1286_v60, 0.0  ;;  %v1545_v62 = vmul.f32 0.1, %v1286_v60  ;;  %v1434_v5 = vpop.f32.mrf.mxu1  ;;  %v1385_v10 = vpop.f32.mrf.mxu0  ;;  %v1546_v52 = vmul.f32 0.1, %v1335_v41  ;;  %vm1482_vm5 = vcmp.gt.f32.partialorder %v1335_v41, 0.0 }
 0x359   : > { %v1435_v42 = vadd.f32 %v1434_v5, %v4630_v16  ;;  %v1386_v63 = vadd.f32 %v1385_v10, %v4628_v14 }
 0x35a   : > { %v1609_v33 = vsel %vm1481_vm13, %v1286_v60, %v1545_v62  ;;  %v1547_v60 = vmul.f32 0.1, %v1384_v46  ;;  %v1762_v62 = vmax.f32 %v1606_v50, %v4658_v49 }
 0x35b   : > { %v4662_v34 = vmax.f32 %v1609_v33, %v1761_v56  ;;  %v1552_v53 = vmul.f32 0.1, %v1435_v42  ;;  %vm1488_vm6 = vcmp.gt.f32.partialorder %v1435_v42, 0.0  ;;  %v1612_v33 = vsel %vm1484_vm4, %v1433_v40, %v1548_v51 }
 0x35c   : > { %vm1487_vm11 = vcmp.gt.f32.partialorder %v1386_v63, 0.0  ;;  %v1551_v10 = vmul.f32 0.1, %v1386_v63 }
 0x35d   : > { %v1287_v0 = vpop.f32.mrf.mxu2  ;;  %v1336_v18 = vpop.f32.mrf.mxu3 }
 0x35e   : > { %v1288_v1 = vadd.f32 %v1287_v0, %v4634_v20  ;;  %v1337_v54 = vadd.f32 %v1336_v18, %v4636_v22  ;;  %v1610_v0 = vsel %vm1482_vm5, %v1335_v41, %v1546_v52  ;;  %v4713_v36 = vsel %vm1487_vm11, %v1386_v63, %v1551_v10 }
 0x35f   : > { %v1826_v15 = vmax.f32 %v1610_v0, %v1762_v62 }
 0x360   : > { %vm1485_vm14 = vcmp.gt.f32.partialorder %v1288_v1, 0.0  ;;  %v1549_v4 = vmul.f32 0.1, %v1288_v1  ;;  %v1550_v2 = vmul.f32 0.1, %v1337_v54  ;;  %vm1486_vm8 = vcmp.gt.f32.partialorder %v1337_v54, 0.0 }
 0x362   : > { %v4665_v6 = vsel %vm1485_vm14, %v1288_v1, %v1549_v4  ;;  %v1616_v1 = vsel %vm1488_vm6, %v1435_v42, %v1552_v53  ;;  %v1614_v21 = vsel %vm1486_vm8, %v1337_v54, %v1550_v2 }
 0x363   : > { %v1765_v7 = vmax.f32 %v4665_v6, %v4662_v34  ;;  %v1766_v41 = vmax.f32 %v1614_v21, %v1826_v15 }
 0x366   : > { %v1437_v8 = vpop.f32.mrf.mxu1  ;;  %v1388_v26 = vpop.f32.mrf.mxu0 }
 0x367   : > { %v1438_v55 = vadd.f32 %v1437_v8, %v4630_v16  ;;  %v1389_v4 = vadd.f32 %v1388_v26, %v4628_v14  ;;  %v1611_v8 = vsel %vm1483_vm7, %v1384_v46, %v1547_v60 }
 0x368   : > { %v4710_v35 = vmax.f32 %v1611_v8, %v1763_v58 }
 0x369   : > { %v1556_v18 = vmul.f32 0.1, %v1438_v55  ;;  %vm1492_vm10 = vcmp.gt.f32.partialorder %v1438_v55, 0.0  ;;  %vm1491_vm12 = vcmp.gt.f32.partialorder %v1389_v4, 0.0  ;;  %v1555_v26 = vmul.f32 0.1, %v1389_v4 }
 0x36b   : > { %v1290_v9 = vpop.f32.mrf.mxu2  ;;  %v1339_v29 = vpop.f32.mrf.mxu3  ;;  %v1620_v23 = vsel %vm1492_vm10, %v1438_v55, %v1556_v18  ;;  %v4720_v42 = vsel %vm1491_vm12, %v1389_v4, %v1555_v26 }
 0x36c   : > { %v1291_v61 = vadd.f32 %v1290_v9, %v4634_v20  ;;  %v1340_v38 = vadd.f32 %v1339_v29, %v4636_v22  ;;  %v1828_v9 = vmax.f32 %v1612_v33, %v1764_v59 }
 0x36e   : > { %v1439_v37 = vpop.f32.mrf.mxu1  ;;  %v4691_v47 = vpop.f32.mrf.mxu0  ;;  %v1553_v49 = vmul.f32 0.1, %v1291_v61  ;;  %vm1489_vm9 = vcmp.gt.f32.partialorder %v1291_v61, 0.0  ;;  %v1768_v17 = vmax.f32 %v1616_v1, %v1828_v9  ;;  %vm1490_vm13 = vcmp.gt.f32.partialorder %v1340_v38, 0.0 }
 0x36f   : > { %v1440_v43 = vadd.f32 %v1439_v37, %v4630_v16  ;;  %v1554_v24 = vmul.f32 0.1, %v1340_v38 }
 0x370   : > { %v1617_v27 = vsel %vm1489_vm9, %v1291_v61, %v1553_v49  ;;  %v1832_v45 = vmax.f32 %v1620_v23, %v1768_v17 }
 0x371   : > { %v1560_v29 = vmul.f32 0.1, %v1440_v43  ;;  %vm1496_vm14 = vcmp.gt.f32.partialorder %v1440_v43, 0.0  ;;  %v1829_v46 = vmax.f32 %v1617_v27, %v1765_v7  ;;  %v1618_v3 = vsel %vm1490_vm13, %v1340_v38, %v1554_v24 }
 0x373   : > { %v4670_v12 = vpop.f32.mrf.mxu2  ;;  %v4672_v13 = vpop.f32.mrf.mxu3 }
 0x374   : > { %v1293_v31 = vadd.f32 %v4670_v12, %v4634_v20  ;;  %v1342_v32 = vadd.f32 %v4672_v13, %v4636_v22 }
 0x376   : > { %vm1493_vm15 = vcmp.gt.f32.partialorder %v1293_v31, 0.0  ;;  %v1557_v48 = vmul.f32 0.1, %v1293_v31  ;;  %v1558_v50 = vmul.f32 0.1, %v1342_v32  ;;  %vm1494_vm0 = vcmp.gt.f32.partialorder %v1342_v32, 0.0 }
 0x378   : > { %v1622_v60 = vsel %vm1494_vm0, %v1342_v32, %v1558_v50 }
 0x37c   : > { %v4675_v19 = vpop.f32.mrf.mxu1  ;;  %v4704_v11 = vpop.f32.mrf.mxu0 }
 0x37d   : > { %v1443_v39 = vadd.f32 %v4675_v19, %v4630_v16  ;;  %v4730_v19 = vadd.f32 %v4691_v47, %v4628_v14  ;;  %v1830_v47 = vmax.f32 %v1618_v3, %v1766_v41 }
 0x37f   : > { %vm1500_vm1 = vcmp.gt.f32.partialorder %v1443_v39, 0.0  ;;  %v4740_v54 = vmul.f32 0.1, %v4730_v19 }
 0x381   : > { %v4680_v28 = vpop.f32.mrf.mxu2  ;;  %v4682_v30 = vpop.f32.mrf.mxu3 }
 0x382   : > { %v1296_v40 = vadd.f32 %v4680_v28, %v4634_v20  ;;  %v1345_v12 = vadd.f32 %v4682_v30, %v4636_v22  ;;  %v1624_v28 = vsel %vm1496_vm14, %v1440_v43, %v1560_v29  ;;  %v1564_v30 = vmul.f32 0.1, %v1443_v39 }
 0x383   : > { %v1772_v59 = vmax.f32 %v1624_v28, %v1832_v45 }
 0x384   : > { %v4688_v44 = vpop.f32.mrf.mxu1  ;;  %v1561_v52 = vmul.f32 0.1, %v1296_v40  ;;  %vm1497_vm2 = vcmp.gt.f32.partialorder %v1296_v40, 0.0  ;;  %v1562_v34 = vmul.f32 0.1, %v1345_v12  ;;  %v4735_v6 = vpop.f32.mrf.mxu0  ;;  %vm1498_vm3 = vcmp.gt.f32.partialorder %v1345_v12, 0.0 }
 0x385   : > { %v1445_v51 = vadd.f32 %v4688_v44, %v4630_v16  ;;  %v1628_v62 = vsel %vm1500_vm1, %v1443_v39, %v1564_v30 }
 0x386   : > { %v1625_v33 = vsel %vm1497_vm2, %v1296_v40, %v1561_v52  ;;  %v1836_v9 = vmax.f32 %v1628_v62, %v1772_v59 }
 0x387   : > { %v1568_v61 = vmul.f32 0.1, %v1445_v51  ;;  %vm1504_vm4 = vcmp.gt.f32.partialorder %v1445_v51, 0.0 }
 0x389   : > { %v1297_v56 = vpop.f32.mrf.mxu2  ;;  %v4695_v57 = vpop.f32.mrf.mxu3  ;;  %v1632_v38 = vsel %vm1504_vm4, %v1445_v51, %v1568_v61 }
 0x38a   : > { %v1298_v53 = vadd.f32 %v1297_v56, %v4634_v20  ;;  %v1347_v7 = vadd.f32 %v4695_v57, %v4636_v22  ;;  %v1621_v56 = vsel %vm1493_vm15, %v1293_v31, %v1557_v48  ;;  %v1626_v57 = vsel %vm1498_vm3, %v1345_v12, %v1562_v34 }
 0x38b   : > { %v1769_v4 = vmax.f32 %v1621_v56, %v1829_v46  ;;  %v1868_v24 = vmax.f32 %v1632_v38, %v1836_v9  ;;  %vm1495_vm3 = vcmp.gt.f32.partialorder %v4730_v19, 0.0 }
 0x38c   : > { %v1447_v5 = vpop.f32.mrf.mxu1  ;;  %v1565_v63 = vmul.f32 0.1, %v1298_v53  ;;  %vm1501_vm5 = vcmp.gt.f32.partialorder %v1298_v53, 0.0  ;;  %v1566_v0 = vmul.f32 0.1, %v1347_v7  ;;  %vm1502_vm6 = vcmp.gt.f32.partialorder %v1347_v7, 0.0  ;;  %v1398_v45 = vpop.f32.mrf.mxu0 }
 0x38d   : > { %v1448_v44 = vadd.f32 %v1447_v5, %v4630_v16  ;;  %v1770_v5 = vmax.f32 %v1622_v60, %v1830_v47  ;;  %v1833_v49 = vmax.f32 %v1625_v33, %v1769_v4  ;;  %v1394_v47 = vadd.f32 %v4704_v11, %v4628_v14 }
 0x38e   : > { %v1629_v10 = vsel %vm1501_vm5, %v1298_v53, %v1565_v63  ;;  %v1630_v17 = vsel %vm1502_vm6, %v1347_v7, %v1566_v0  ;;  %v1396_v0 = vadd.f32 %v4735_v6, %v4628_v14  ;;  %v1767_v6 = vmax.f32 %v4713_v36, %v4710_v35 }
 0x38f   : > { %v1572_v18 = vmul.f32 0.1, %v1448_v44  ;;  %vm1508_vm7 = vcmp.gt.f32.partialorder %v1448_v44, 0.0  ;;  %v1834_v15 = vmax.f32 %v1626_v57, %v1770_v5  ;;  %v1563_v9 = vmul.f32 0.1, %v1394_v47 }
 0x390   : > { %vm1499_vm4 = vcmp.gt.f32.partialorder %v1394_v47, 0.0  ;;  %vm1503_vm5 = vcmp.gt.f32.partialorder %v1396_v0, 0.0 }
 0x391   : > { %v1300_v25 = vpop.f32.mrf.mxu2  ;;  %v1349_v37 = vpop.f32.mrf.mxu3  ;;  %v1636_v29 = vsel %vm1508_vm7, %v1448_v44, %v1572_v18  ;;  %v1866_v41 = vmax.f32 %v1630_v17, %v1834_v15  ;;  %v1623_v17 = vsel %vm1495_vm3, %v4730_v19, %v4740_v54 }
 0x392   : > { %v1301_v1 = vadd.f32 %v1300_v25, %v4634_v20  ;;  %v1350_v43 = vadd.f32 %v1349_v37, %v4636_v22  ;;  %v1865_v37 = vmax.f32 %v1629_v10, %v1833_v49 }
 0x394   : > { %v1449_v13 = vpop.f32.mrf.mxu1  ;;  %v1569_v21 = vmul.f32 0.1, %v1301_v1  ;;  %vm1505_vm8 = vcmp.gt.f32.partialorder %v1301_v1, 0.0  ;;  %v1570_v32 = vmul.f32 0.1, %v1350_v43  ;;  %vm1506_vm10 = vcmp.gt.f32.partialorder %v1350_v43, 0.0  ;;  %v1400_v18 = vpop.f32.mrf.mxu0 }
 0x395   : > { %v1450_v8 = vadd.f32 %v1449_v13, %v4630_v16  ;;  %v1776_v13 = vmax.f32 %v1636_v29, %v1868_v24  ;;  %v1831_v24 = vmax.f32 %v4720_v42, %v1767_v6 }
 0x396   : > { %v1633_v46 = vsel %vm1505_vm8, %v1301_v1, %v1569_v21  ;;  %v1634_v30 = vsel %vm1506_vm10, %v1350_v43, %v1570_v32  ;;  %v1567_v21 = vmul.f32 0.1, %v1396_v0 }
 0x397   : > { %v1576_v39 = vmul.f32 0.1, %v1450_v8  ;;  %vm1512_vm11 = vcmp.gt.f32.partialorder %v1450_v8, 0.0  ;;  %v1774_v59 = vmax.f32 %v1634_v30, %v1866_v41  ;;  %v1771_v36 = vmax.f32 %v1623_v17, %v1831_v24 }
 0x399   : > { %v1302_v55 = vpop.f32.mrf.mxu2  ;;  %v1351_v58 = vpop.f32.mrf.mxu3  ;;  %v1640_v52 = vsel %vm1512_vm11, %v1450_v8, %v1576_v39  ;;  %vm1929_vm11 = vcmask 1040384  }
 0x39a   : > { %v1303_v26 = vadd.f32 %v1302_v55, %v4634_v20  ;;  %v1352_v25 = vadd.f32 %v1351_v58, %v4636_v22  ;;  %v1773_v58 = vmax.f32 %v1633_v46, %v1865_v37  ;;  %v1840_v56 = vmax.f32 %v1640_v52, %v1776_v13 }
 0x39c   : > { %v1452_v2 = vpop.f32.mrf.mxu1  ;;  %v1573_v3 = vmul.f32 0.1, %v1303_v26  ;;  %vm1509_vm9 = vcmp.gt.f32.partialorder %v1303_v26, 0.0  ;;  %v1574_v50 = vmul.f32 0.1, %v1352_v25  ;;  %vm1510_vm13 = vcmp.gt.f32.partialorder %v1352_v25, 0.0 }
 0x39d   : > { %v1453_v23 = vadd.f32 %v1452_v2, %v4630_v16 }
 0x39e   : > { %v1637_v44 = vsel %vm1509_vm9, %v1303_v26, %v1573_v3  ;;  %v1638_v60 = vsel %vm1510_vm13, %v1352_v25, %v1574_v50  ;;  %v1401_v26 = vadd.f32 %v1400_v18, %v4628_v14  ;;  %vm1931_vm9 = vcmask 1042434  }
 0x39f   : > { %v1580_v28 = vmul.f32 0.1, %v1453_v23  ;;  %vm1516_vm12 = vcmp.gt.f32.partialorder %v1453_v23, 0.0  ;;  %v1837_v1 = vmax.f32 %v1637_v44, %v1773_v58  ;;  %v1838_v4 = vmax.f32 %v1638_v60, %v1774_v59 }
 0x3a0   : > { %v1575_v19 = vmul.f32 0.1, %v1401_v26  ;;  %vm1511_vm7 = vcmp.gt.f32.partialorder %v1401_v26, 0.0 }
 0x3a1   : > { %v1305_v27 = vpop.f32.mrf.mxu2  ;;  %v1354_v31 = vpop.f32.mrf.mxu3  ;;  %v1644_v55 = vsel %vm1516_vm12, %v1453_v23, %v1580_v28  ;;  %vm1933_vm12 = vcmask 1041408  }
 0x3a2   : > { %v1306_v40 = vadd.f32 %v1305_v27, %v4634_v20  ;;  %v1355_v12 = vadd.f32 %v1354_v31, %v4636_v22  ;;  %v1872_v11 = vmax.f32 %v1644_v55, %v1840_v56  ;;  %v1627_v31 = vsel %vm1499_vm4, %v1394_v47, %v1563_v9 }
 0x3a3   : > { %v1835_v41 = vmax.f32 %v1627_v31, %v1771_v36 }
 0x3a4   : > { %v1454_v48 = vpop.f32.mrf.mxu1  ;;  %v1577_v53 = vmul.f32 0.1, %v1306_v40  ;;  %vm1513_vm14 = vcmp.gt.f32.partialorder %v1306_v40, 0.0  ;;  %v1578_v34 = vmul.f32 0.1, %v1355_v12  ;;  %vm1514_vm0 = vcmp.gt.f32.partialorder %v1355_v12, 0.0 }
 0x3a5   : > { %v1455_v51 = vadd.f32 %v1454_v48, %v4630_v16  ;;  %v1639_v48 = vsel %vm1511_vm7, %v1401_v26, %v1575_v19 }
 0x3a6   : > { %v1641_v62 = vsel %vm1513_vm14, %v1306_v40, %v1577_v53  ;;  %v1642_v2 = vsel %vm1514_vm0, %v1355_v12, %v1578_v34  ;;  %v1631_v40 = vsel %vm1503_vm5, %v1396_v0, %v1567_v21 }
 0x3a7   : > { %vm1520_vm15 = vcmp.gt.f32.partialorder %v1455_v51, 0.0  ;;  %v1584_v7 = vmul.f32 0.1, %v1455_v51  ;;  %v1869_v38 = vmax.f32 %v1641_v62, %v1837_v1  ;;  %v1867_v3 = vmax.f32 %v1631_v40, %v1835_v41 }
 0x3a9   : > { %v1307_v61 = vpop.f32.mrf.mxu2  ;;  %v1356_v16 = vpop.f32.mrf.mxu3  ;;  %v1648_v33 = vsel %vm1520_vm15, %v1455_v51, %v1584_v7 }
 0x3aa   : > { %v1308_v63 = vadd.f32 %v1307_v61, %v4634_v20  ;;  %v1357_v57 = vadd.f32 %v1356_v16, %v4636_v22  ;;  %v1888_v43 = vmax.f32 %v1648_v33, %v1872_v11  ;;  %v1399_v20 = vadd.f32 %v1398_v45, %v4628_v14 }
 0x3ab   : > { %v1870_v22 = vmax.f32 %v1642_v2, %v1838_v4 }
 0x3ac   : > { %vm1517_vm1 = vcmp.gt.f32.partialorder %v1308_v63, 0.0  ;;  %v1581_v5 = vmul.f32 0.1, %v1308_v63  ;;  %vm1518_vm2 = vcmp.gt.f32.partialorder %v1357_v57, 0.0  ;;  %v1582_v8 = vmul.f32 0.1, %v1357_v57 }
 0x3ad   : > { %v1892_v29 = vpack.c.bf16 %v1888_v43, %v1888_v43  ;;  %v1571_v37 = vmul.f32 0.1, %v1399_v20  ;;  %vm1507_vm6 = vcmp.gt.f32.partialorder %v1399_v20, 0.0 }
 0x3ae   : > { %v1645_v49 = vsel %vm1517_vm1, %v1308_v63, %v1581_v5  ;;  %v1646_v10 = vsel %vm1518_vm2, %v1357_v57, %v1582_v8 }
 0x3af   : > { %v1885_v15 = vmax.f32 %v1645_v49, %v1869_v38  ;;  %v1886_v23 = vmax.f32 %v1646_v10, %v1870_v22  ;;  %v1896_v45 = vunpack.c.l.bf16 %v1892_v29  ;;  %v1635_v42 = vsel %vm1507_vm6, %v1399_v20, %v1571_v37  ;;  %v1921_v10 = vld [vmem:[#allocation2] sm:$0xf] }
 0x3b0   : > { %v1775_v51 = vmax.f32 %v1635_v42, %v1867_v3  ;;  %v1937_v49 = vlaneseq }
 0x3b1   : > { %v1889_v25 = vpack.c.bf16 %v1885_v15, %v1885_v15  ;;  %v1403_v27 = vpop.f32.mrf.mxu2  ;;  %v1890_v32 = vpack.c.bf16 %v1886_v23, %v1886_v23  ;;  %v1915_v30 = vrot.slane %v1896_v45, 4 }
 0x3b2   : > { %v1404_v35 = vadd.f32 %v1403_v27, %v4628_v14  ;;  %v1839_v44 = vmax.f32 %v1639_v48, %v1775_v51  ;;  %vm4773_vm13 = vcmp.lt.s32.totalorder %v1937_v49, 512 }
 0x3b3   : > { %v1893_v39 = vunpack.c.l.bf16 %v1889_v25  ;;  %v1894_v54 = vunpack.c.l.bf16 %v1890_v32  ;;  %v1916_v56 = vmax.f32 %v1896_v45, %v1915_v30 }
 0x3b4   : > { %v1579_v46 = vmul.f32 0.1, %v1404_v35  ;;  %vm1515_vm8 = vcmp.gt.f32.partialorder %v1404_v35, 0.0 }
 0x3b5   : > { %v1897_v12 = vrot.slane %v1893_v39, 4  ;;  %v1903_v13 = vrot.slane %v1894_v54, 4  ;;  %v1917_v57 = vrot.slane %v1916_v56, 2 }
 0x3b6   : > { %v1643_v7 = vsel %vm1515_vm8, %v1404_v35, %v1579_v46 }
 0x3b7   : > { %v1898_v28 = vmax.f32 %v1893_v39, %v1897_v12  ;;  %v1904_v50 = vmax.f32 %v1894_v54, %v1903_v13  ;;  %v1871_v60 = vmax.f32 %v1643_v7, %v1839_v44  ;;  %v1918_v4 = vmax.f32 %v1916_v56, %v1917_v57 }
 0x3b9   : > { %v1899_v52 = vrot.slane %v1898_v28, 2  ;;  %v1405_v53 = vpop.f32.mrf.mxu2  ;;  %v1905_v34 = vrot.slane %v1904_v50, 2  ;;  %v1919_v38 = vrot.slane %v1918_v4, 1 }
 0x3ba   : > { %v1406_v47 = vadd.f32 %v1405_v53, %v4628_v14 }
 0x3bb   : > { %v1900_v55 = vmax.f32 %v1898_v28, %v1899_v52  ;;  %v1906_v58 = vmax.f32 %v1904_v50, %v1905_v34  ;;  %v1920_v9 = vmax.f32 %v1918_v4, %v1919_v38 }
 0x3bc   : > { %vm1519_vm10 = vcmp.gt.f32.partialorder %v1406_v47, 0.0  ;;  %v1583_v59 = vmul.f32 0.1, %v1406_v47 }
 0x3bd   : > { %v1901_v61 = vrot.slane %v1900_v55, 1  ;;  %v1907_v16 = vrot.slane %v1906_v58, 1  ;;  %v1928_v6 = vrot.slane %v1920_v9, 5 }
 0x3be   : > { %v1647_v62 = vsel %vm1519_vm10, %v1406_v47, %v1583_v59 }
 0x3bf   : > { %v1887_v33 = vmax.f32 %v1647_v62, %v1871_v60  ;;  %v1908_v63 = vmax.f32 %v1906_v58, %v1907_v16  ;;  %v1902_v1 = vmax.f32 %v1900_v55, %v1901_v61 }
 0x3c1   : > { %v1891_v0 = vpack.c.bf16 %v1887_v33, %v1887_v33  ;;  %v1926_v11 = vrot.slane %v1908_v63, 7 }
 0x3c3   : > { %v1895_v2 = vunpack.c.l.bf16 %v1891_v0  ;;  %v1930_v14 = vsel %vm1929_vm11, %v1902_v1, %v1926_v11 }
 0x3c5   : > { %v1909_v5 = vrot.slane %v1895_v2, 4 }
 0x3c7   : > { %v1910_v18 = vmax.f32 %v1895_v2, %v1909_v5 }
 0x3c9   : > { %v1911_v43 = vrot.slane %v1910_v18, 2 }
 0x3cb   : > { %v1912_v8 = vmax.f32 %v1910_v18, %v1911_v43 }
 0x3cd   : > { %v1913_v20 = vrot.slane %v1912_v8, 1 }
 0x3cf   : > { %v1914_v22 = vmax.f32 %v1912_v8, %v1913_v20 }
 0x3d1   : > { %v1927_v15 = vrot.slane %v1914_v22, 6 }
 0x3d3   : > { %v1932_v17 = vsel %vm1931_vm9, %v1927_v15, %v1928_v6  ;;  %1945 = sbr.rel (%p3261_p5) target bundleno = 1257 (0x4e9), region = 80 }
 0x3d4   : > { %v1934_v21 = vsel %vm1933_vm12, %v1930_v14, %v1932_v17 }
 0x3d5   : > { %v1936_v23 = vmax.f32 %v1921_v10, %v1934_v21 }
 0x3d7   : > { %1941 = vst.msk [vmem:[#allocation2] sm:$0xf] %vm4773_vm13, %v1936_v23 }
 0x3d8   : > { %v3376_v24 = vld [vmem:[#allocation6 + $0xe0] sm:$0xf]  ;;  %v3848_v29 = vld [vmem:[#allocation6 + $0xec] sm:$0xf0] }
 0x3d9   : > { %v3504_v25 = vld [vmem:[#allocation6 + $0x1e0] sm:$0xf]  ;;  %v3377_v27 = vor.u32 %v3848_v29, %v3376_v24  ;;  %v3880_v31 = vld [vmem:[#allocation6 + $0x1ec] sm:$0xf0] }
 0x3da   : > { %v3632_v37 = vld [vmem:[#allocation6 + $0x2e0] sm:$0xf]  ;;  %v3912_v32 = vld [vmem:[#allocation6 + $0x2ec] sm:$0xf0]  ;;  %v3505_v35 = vor.u32 %v3880_v31, %v3504_v25 }
 0x3db   : > { %v3633_v36 = vor.u32 %v3912_v32, %v3632_v37  ;;  %v3760_v39 = vld [vmem:[#allocation6 + $0x3e0] sm:$0xf]  ;;  %v3944_v40 = vld [vmem:[#allocation6 + $0x3ec] sm:$0xf0]  ;;  %2738 = vmatpush.bf16.msra.mxu0 %v3377_v27 }
 0x3dc   : > { %v3360_v19 = vld [vmem:[#allocation6 + $0xc0] sm:$0xf]  ;;  %v3761_v54 = vor.u32 %v3944_v40, %v3760_v39  ;;  %v3844_v41 = vld [vmem:[#allocation6 + $0xcc] sm:$0xf0]  ;;  %2751 = vmatpush.bf16.msra.mxu1 %v3505_v35 }
 0x3dd   : > { %v3488_v45 = vld [vmem:[#allocation6 + $0x1c0] sm:$0xf]  ;;  %v3876_v12 = vld [vmem:[#allocation6 + $0x1cc] sm:$0xf0]  ;;  %2764 = vmatpush.bf16.msra.mxu2 %v3633_v36  ;;  %v3361_v42 = vor.u32 %v3844_v41, %v3360_v19 }
 0x3de   : > { %v3489_v13 = vor.u32 %v3876_v12, %v3488_v45  ;;  %v3616_v46 = vld [vmem:[#allocation6 + $0x2c0] sm:$0xf]  ;;  %v3908_v3 = vld [vmem:[#allocation6 + $0x2cc] sm:$0xf0]  ;;  %2777 = vmatpush.bf16.msra.mxu3 %v3761_v54 }
 0x3df   : > { %v3744_v28 = vld [vmem:[#allocation6 + $0x3c0] sm:$0xf]  ;;  %v3617_v48 = vor.u32 %v3908_v3, %v3616_v46  ;;  %v3940_v50 = vld [vmem:[#allocation6 + $0x3cc] sm:$0xf0]  ;;  %2739 = vmatpush.bf16.msra.mxu0 %v3361_v42 }
 0x3e0   : > { %v3344_v51 = vld [vmem:[#allocation6 + $0xa0] sm:$0xf]  ;;  %v3840_v30 = vld [vmem:[#allocation6 + $0xac] sm:$0xf0]  ;;  %v3745_v52 = vor.u32 %v3940_v50, %v3744_v28  ;;  %2752 = vmatpush.bf16.msra.mxu1 %v3489_v13 }
 0x3e1   : > { %v3472_v53 = vld [vmem:[#allocation6 + $0x1a0] sm:$0xf]  ;;  %v3872_v34 = vld [vmem:[#allocation6 + $0x1ac] sm:$0xf0]  ;;  %v3345_v47 = vor.u32 %v3840_v30, %v3344_v51  ;;  %2765 = vmatpush.bf16.msra.mxu2 %v3617_v48 }
 0x3e2   : > { %v3600_v7 = vld [vmem:[#allocation6 + $0x2a0] sm:$0xf]  ;;  %v3904_v44 = vld [vmem:[#allocation6 + $0x2ac] sm:$0xf0]  ;;  %v3473_v59 = vor.u32 %v3872_v34, %v3472_v53  ;;  %2778 = vmatpush.bf16.msra.mxu3 %v3745_v52 }
 0x3e3   : > { %v3728_v55 = vld [vmem:[#allocation6 + $0x3a0] sm:$0xf]  ;;  %v3936_v58 = vld [vmem:[#allocation6 + $0x3ac] sm:$0xf0]  ;;  %v3601_v56 = vor.u32 %v3904_v44, %v3600_v7  ;;  %2740 = vmatpush.bf16.msra.mxu0 %v3345_v47  ;;  %v3846_v47 = vld [vmem:[#allocation6 + $0xe4] sm:$0xf] }
 0x3e4   : > { %v3328_v60 = vld [vmem:[#allocation6 + $0x80] sm:$0xf]  ;;  %v3836_v61 = vld [vmem:[#allocation6 + $0x8c] sm:$0xf0]  ;;  %v3729_v62 = vor.u32 %v3936_v58, %v3728_v55  ;;  %2753 = vmatpush.bf16.msra.mxu1 %v3473_v59  ;;  %v3378_v44 = vld [vmem:[#allocation6 + $0xf0] sm:$0xf0] }
 0x3e5   : > { %v3456_v16 = vld [vmem:[#allocation6 + $0x180] sm:$0xf]  ;;  %v3868_v33 = vld [vmem:[#allocation6 + $0x18c] sm:$0xf0]  ;;  %v3329_v11 = vor.u32 %v3836_v61, %v3328_v60  ;;  %2766 = vmatpush.bf16.msra.mxu2 %v3601_v56  ;;  %v3878_v55 = vld [vmem:[#allocation6 + $0x1e4] sm:$0xf] }
 0x3e6   : > { %v3584_v63 = vld [vmem:[#allocation6 + $0x280] sm:$0xf]  ;;  %v3900_v57 = vld [vmem:[#allocation6 + $0x28c] sm:$0xf0]  ;;  %v3457_v2 = vor.u32 %v3868_v33, %v3456_v16  ;;  %2779 = vmatpush.bf16.msra.mxu3 %v3729_v62  ;;  %v3506_v59 = vld [vmem:[#allocation6 + $0x1f0] sm:$0xf0] }
 0x3e7   : > { %v3712_v0 = vld [vmem:[#allocation6 + $0x380] sm:$0xf]  ;;  %v3932_v1 = vld [vmem:[#allocation6 + $0x38c] sm:$0xf0]  ;;  %v3585_v14 = vor.u32 %v3900_v57, %v3584_v63  ;;  %2741 = vmatpush.bf16.msra.mxu0 %v3329_v11  ;;  %v3910_v56 = vld [vmem:[#allocation6 + $0x2e4] sm:$0xf]  ;;  %v3381_v57 = vor.u32 %v3846_v47, %v3378_v44 }
 0x3e8   : > { %v3312_v4 = vld [vmem:[#allocation6 + $0x60] sm:$0xf]  ;;  %v3832_v5 = vld [vmem:[#allocation6 + $0x6c] sm:$0xf0]  ;;  %v3713_v38 = vor.u32 %v3932_v1, %v3712_v0  ;;  %2754 = vmatpush.bf16.msra.mxu1 %v3457_v2  ;;  %v3634_v60 = vld [vmem:[#allocation6 + $0x2f0] sm:$0xf0]  ;;  %v3509_v0 = vor.u32 %v3878_v55, %v3506_v59 }
 0x3e9   : > { %v3440_v18 = vld [vmem:[#allocation6 + $0x160] sm:$0xf]  ;;  %v3864_v43 = vld [vmem:[#allocation6 + $0x16c] sm:$0xf0]  ;;  %v3313_v49 = vor.u32 %v3832_v5, %v3312_v4  ;;  %2767 = vmatpush.bf16.msra.mxu2 %v3585_v14  ;;  %v3942_v62 = vld [vmem:[#allocation6 + $0x3e4] sm:$0xf]  ;;  %v3637_v1 = vor.u32 %v3910_v56, %v3634_v60 }
 0x3ea   : > { %v3568_v8 = vld [vmem:[#allocation6 + $0x260] sm:$0xf]  ;;  %v3896_v9 = vld [vmem:[#allocation6 + $0x26c] sm:$0xf0]  ;;  %v3441_v6 = vor.u32 %v3864_v43, %v3440_v18  ;;  %2780 = vmatpush.bf16.msra.mxu3 %v3713_v38  ;;  %v3762_v33 = vld [vmem:[#allocation6 + $0x3f0] sm:$0xf0] }
 0x3eb   : > { %v3696_v20 = vld [vmem:[#allocation6 + $0x360] sm:$0xf]  ;;  %v3928_v22 = vld [vmem:[#allocation6 + $0x36c] sm:$0xf0]  ;;  %v3569_v15 = vor.u32 %v3896_v9, %v3568_v8  ;;  %2742 = vmatpush.bf16.msra.mxu0 %v3313_v49  ;;  %v3842_v11 = vld [vmem:[#allocation6 + $0xc4] sm:$0xf]  ;;  %v3765_v4 = vor.u32 %v3942_v62, %v3762_v33 }
 0x3ec   : > { %v3296_v10 = vld [vmem:[#allocation6 + $0x40] sm:$0xf]  ;;  %v3828_v17 = vld [vmem:[#allocation6 + $0x4c] sm:$0xf0]  ;;  %v3697_v23 = vor.u32 %v3928_v22, %v3696_v20  ;;  %2755 = vmatpush.bf16.msra.mxu1 %v3441_v6  ;;  %v3362_v2 = vld [vmem:[#allocation6 + $0xd0] sm:$0xf0] }
 0x3ed   : > { %v3424_v21 = vld [vmem:[#allocation6 + $0x140] sm:$0xf]  ;;  %v3860_v24 = vld [vmem:[#allocation6 + $0x14c] sm:$0xf0]  ;;  %v3297_v37 = vor.u32 %v3828_v17, %v3296_v10  ;;  %2768 = vmatpush.bf16.msra.mxu2 %v3569_v15  ;;  %v3874_v14 = vld [vmem:[#allocation6 + $0x1c4] sm:$0xf]  ;;  %v3365_v20 = vor.u32 %v3842_v11, %v3362_v2 }
 0x3ee   : > { %v3552_v29 = vld [vmem:[#allocation6 + $0x240] sm:$0xf]  ;;  %v3892_v25 = vld [vmem:[#allocation6 + $0x24c] sm:$0xf0]  ;;  %v3425_v32 = vor.u32 %v3860_v24, %v3424_v21  ;;  %2781 = vmatpush.bf16.msra.mxu3 %v3697_v23  ;;  %v3490_v5 = vld [vmem:[#allocation6 + $0x1d0] sm:$0xf0] }
 0x3ef   : > { %v3680_v27 = vld [vmem:[#allocation6 + $0x340] sm:$0xf]  ;;  %v3924_v31 = vld [vmem:[#allocation6 + $0x34c] sm:$0xf0]  ;;  %v3553_v35 = vor.u32 %v3892_v25, %v3552_v29  ;;  %2743 = vmatpush.bf16.msra.mxu0 %v3297_v37  ;;  %v3906_v18 = vld [vmem:[#allocation6 + $0x2c4] sm:$0xf]  ;;  %v3493_v15 = vor.u32 %v3874_v14, %v3490_v5 }
 0x3f0   : > { %v3280_v36 = vld [vmem:[#allocation6 + $0x20] sm:$0xf]  ;;  %v3824_v39 = vld [vmem:[#allocation6 + $0x2c] sm:$0xf0]  ;;  %v3681_v19 = vor.u32 %v3924_v31, %v3680_v27  ;;  %2756 = vmatpush.bf16.msra.mxu1 %v3425_v32  ;;  %v3618_v38 = vld [vmem:[#allocation6 + $0x2d0] sm:$0xf0] }
 0x3f1   : > { %v3408_v40 = vld [vmem:[#allocation6 + $0x120] sm:$0xf]  ;;  %v3856_v54 = vld [vmem:[#allocation6 + $0x12c] sm:$0xf0]  ;;  %v3281_v13 = vor.u32 %v3824_v39, %v3280_v36  ;;  %2769 = vmatpush.bf16.msra.mxu2 %v3553_v35  ;;  %v3938_v43 = vld [vmem:[#allocation6 + $0x3c4] sm:$0xf]  ;;  %v3621_v10 = vor.u32 %v3906_v18, %v3618_v38 }
 0x3f2   : > { %v3536_v41 = vld [vmem:[#allocation6 + $0x220] sm:$0xf]  ;;  %v3888_v45 = vld [vmem:[#allocation6 + $0x22c] sm:$0xf0]  ;;  %v3409_v28 = vor.u32 %v3856_v54, %v3408_v40  ;;  %2782 = vmatpush.bf16.msra.mxu3 %v3681_v19  ;;  %v3746_v8 = vld [vmem:[#allocation6 + $0x3d0] sm:$0xf0] }
 0x3f3   : > { %v3664_v12 = vld [vmem:[#allocation6 + $0x320] sm:$0xf]  ;;  %v3920_v42 = vld [vmem:[#allocation6 + $0x32c] sm:$0xf0]  ;;  %v3537_v48 = vor.u32 %v3888_v45, %v3536_v41  ;;  %2744 = vmatpush.bf16.msra.mxu0 %v3281_v13  ;;  %v1946_v9 = vld [vmem:[#allocation2] sm:$0xf]  ;;  %v3749_v24 = vor.u32 %v3938_v43, %v3746_v8 }
 0x3f4   : > { %v3264_v46 = vld [vmem:[#allocation6] sm:$0xf]  ;;  %v3820_v3 = vld [vmem:[#allocation6 + $0xc] sm:$0xf0]  ;;  %v3665_v52 = vor.u32 %v3920_v42, %v3664_v12  ;;  %2757 = vmatpush.bf16.msra.mxu1 %v3409_v28  ;;  %v3838_v22 = vld [vmem:[#allocation6 + $0xa4] sm:$0xf] }
 0x3f5   : > { %v3392_v50 = vld [vmem:[#allocation6 + $0x100] sm:$0xf]  ;;  %v3852_v51 = vld [vmem:[#allocation6 + $0x10c] sm:$0xf0]  ;;  %v3265_v58 = vor.u32 %v3820_v3, %v3264_v46  ;;  %2770 = vmatpush.bf16.msra.mxu2 %v3537_v48  ;;  %v1950_v49 = vperm.slane %v1946_v9, 2  ;;  %v1948_v6 = vperm.slane %v1946_v9, 0 }
 0x3f6   : > { %v3520_v30 = vld [vmem:[#allocation6 + $0x200] sm:$0xf]  ;;  %v3884_v53 = vld [vmem:[#allocation6 + $0x20c] sm:$0xf0]  ;;  %v3393_v61 = vor.u32 %v3852_v51, %v3392_v50  ;;  %2783 = vmatpush.bf16.msra.mxu3 %v3665_v52  ;;  %v3346_v17 = vld [vmem:[#allocation6 + $0xb0] sm:$0xf0] }
 0x3f7   : > { %v3648_v34 = vld [vmem:[#allocation6 + $0x300] sm:$0xf]  ;;  %v3916_v7 = vld [vmem:[#allocation6 + $0x30c] sm:$0xf0]  ;;  %v3521_v16 = vor.u32 %v3884_v53, %v3520_v30  ;;  %2745 = vmatpush.bf16.msra.mxu0 %v3265_v58  ;;  %v3870_v21 = vld [vmem:[#allocation6 + $0x1a4] sm:$0xf]  ;;  %v4780_v27 = vpack.c.bf16 %v1950_v49, %v1950_v49  ;;  %v4782_v31 = vpack.c.bf16 %v1948_v6, %v1948_v6  ;;  %v3349_v39 = vor.u32 %v3838_v22, %v3346_v17 }
 0x3f8   : > { %v3649_v63 = vor.u32 %v3916_v7, %v3648_v34  ;;  %2758 = vmatpush.bf16.msra.mxu1 %v3393_v61  ;;  %v3474_v23 = vld [vmem:[#allocation6 + $0x1b0] sm:$0xf0]  ;;  %v3902_v29 = vld [vmem:[#allocation6 + $0x2a4] sm:$0xf]  ;;  %v1951_v37 = vperm.slane %v1946_v9, 3  ;;  %v1949_v36 = vperm.slane %v1946_v9, 1 }
 0x3f9   : > { %2771 = vmatpush.bf16.msra.mxu2 %v3521_v16  ;;  %v3602_v25 = vld [vmem:[#allocation6 + $0x2b0] sm:$0xf0]  ;;  %v3934_v32 = vld [vmem:[#allocation6 + $0x3a4] sm:$0xf]  ;;  %v3477_v19 = vor.u32 %v3870_v21, %v3474_v23 }
 0x3fa   : > { %2784 = vmatpush.bf16.msra.mxu3 %v3649_v63  ;;  %v3730_v35 = vld [vmem:[#allocation6 + $0x3b0] sm:$0xf0]  ;;  %v4785_v40 = vpack.c.bf16 %v1951_v37, %v1951_v37  ;;  %v3605_v54 = vor.u32 %v3902_v29, %v3602_v25  ;;  %v3834_v41 = vld [vmem:[#allocation6 + $0x84] sm:$0xf]  ;;  %v4787_v42 = vpack.c.bf16 %v1949_v36, %v1949_v36  ;;  %2746 = vmatmul.bf16.vlgmr.msra.gmra.mxu0 %v4782_v31 }
 0x3fb   : > { %2790 = vmatpush.bf16.msrb.mxu0 %v3381_v57  ;;  %v3330_v45 = vld [vmem:[#allocation6 + $0x90] sm:$0xf0]  ;;  %v3866_v12 = vld [vmem:[#allocation6 + $0x184] sm:$0xf]  ;;  %v3733_v13 = vor.u32 %v3934_v32, %v3730_v35 }
 0x3fc   : > { %2803 = vmatpush.bf16.msrb.mxu1 %v3509_v0  ;;  %2772 = vmatmul.bf16.vlgmr.msra.gmra.mxu2 %v4780_v27  ;;  %v3458_v46 = vld [vmem:[#allocation6 + $0x190] sm:$0xf0]  ;;  %v3898_v3 = vld [vmem:[#allocation6 + $0x284] sm:$0xf]  ;;  %v3333_v51 = vor.u32 %v3834_v41, %v3330_v45  ;;  %v3512_v41 = vld [vmem:[#allocation6 + $0x1e8] sm:$0xf] }
 0x3fd   : > { %2816 = vmatpush.bf16.msrb.mxu2 %v3637_v1  ;;  %v3586_v28 = vld [vmem:[#allocation6 + $0x290] sm:$0xf0]  ;;  %v3930_v48 = vld [vmem:[#allocation6 + $0x384] sm:$0xf]  ;;  %2785 = vmatmul.bf16.vlgmr.msra.gmra.mxu3 %v4785_v40  ;;  %v3461_v30 = vor.u32 %v3866_v12, %v3458_v46  ;;  %v3881_v12 = vld [vmem:[#allocation6 + $0x1f4] sm:$0xf0] }
 0x3fe   : > { %2829 = vmatpush.bf16.msrb.mxu3 %v3765_v4  ;;  %v3714_v50 = vld [vmem:[#allocation6 + $0x390] sm:$0xf0]  ;;  %2759 = vmatmul.bf16.vlgmr.msra.gmra.mxu1 %v4787_v42  ;;  %v3589_v52 = vor.u32 %v3898_v3, %v3586_v28  ;;  %v3830_v53 = vld [vmem:[#allocation6 + $0x64] sm:$0xf]  ;;  %v3913_v46 = vld [vmem:[#allocation6 + $0x2f4] sm:$0xf0] }
 0x3ff   : > { %2791 = vmatpush.bf16.msrb.mxu0 %v3365_v20  ;;  %v3314_v34 = vld [vmem:[#allocation6 + $0x70] sm:$0xf0]  ;;  %v3862_v7 = vld [vmem:[#allocation6 + $0x164] sm:$0xf]  ;;  %v3717_v47 = vor.u32 %v3930_v48, %v3714_v50  ;;  %v3768_v48 = vld [vmem:[#allocation6 + $0x3e8] sm:$0xf] }
 0x400   : > { %2804 = vmatpush.bf16.msrb.mxu1 %v3493_v15  ;;  %v3442_v44 = vld [vmem:[#allocation6 + $0x170] sm:$0xf0]  ;;  %v3894_v55 = vld [vmem:[#allocation6 + $0x264] sm:$0xf]  ;;  %v3317_v60 = vor.u32 %v3830_v53, %v3314_v34  ;;  %v3945_v50 = vld [vmem:[#allocation6 + $0x3f4] sm:$0xf0] }
 0x401   : > { %2817 = vmatpush.bf16.msrb.mxu2 %v3621_v10  ;;  %v3570_v58 = vld [vmem:[#allocation6 + $0x270] sm:$0xf0]  ;;  %v3926_v59 = vld [vmem:[#allocation6 + $0x364] sm:$0xf]  ;;  %v3445_v61 = vor.u32 %v3862_v7, %v3442_v44  ;;  %v3368_v34 = vld [vmem:[#allocation6 + $0xc8] sm:$0xf]  ;;  %v3769_v44 = vor.u32 %v3945_v50, %v3768_v48 }
 0x402   : > { %2830 = vmatpush.bf16.msrb.mxu3 %v3749_v24  ;;  %v3698_v56 = vld [vmem:[#allocation6 + $0x370] sm:$0xf0]  ;;  %v3573_v16 = vor.u32 %v3894_v55, %v3570_v58  ;;  %v3826_v62 = vld [vmem:[#allocation6 + $0x44] sm:$0xf]  ;;  %v3845_v7 = vld [vmem:[#allocation6 + $0xd4] sm:$0xf0] }
 0x403   : > { %2792 = vmatpush.bf16.msrb.mxu0 %v3349_v39  ;;  %v3298_v33 = vld [vmem:[#allocation6 + $0x50] sm:$0xf0]  ;;  %v3858_v63 = vld [vmem:[#allocation6 + $0x144] sm:$0xf]  ;;  %v3701_v57 = vor.u32 %v3926_v59, %v3698_v56  ;;  %v3877_v55 = vld [vmem:[#allocation6 + $0x1d4] sm:$0xf0] }
 0x404   : > { %2805 = vmatpush.bf16.msrb.mxu1 %v3477_v19  ;;  %v3426_v0 = vld [vmem:[#allocation6 + $0x150] sm:$0xf0]  ;;  %v3890_v1 = vld [vmem:[#allocation6 + $0x244] sm:$0xf]  ;;  %v3301_v4 = vor.u32 %v3826_v62, %v3298_v33  ;;  %v3384_v19 = vld [vmem:[#allocation6 + $0xe8] sm:$0xf] }
 0x405   : > { %2818 = vmatpush.bf16.msrb.mxu2 %v3605_v54  ;;  %v3554_v11 = vld [vmem:[#allocation6 + $0x250] sm:$0xf0]  ;;  %v3922_v2 = vld [vmem:[#allocation6 + $0x344] sm:$0xf]  ;;  %v3429_v5 = vor.u32 %v3858_v63, %v3426_v0  ;;  %v3849_v54 = vld [vmem:[#allocation6 + $0xf4] sm:$0xf0] }
 0x406   : > { %2831 = vmatpush.bf16.msrb.mxu3 %v3733_v13  ;;  %v3682_v14 = vld [vmem:[#allocation6 + $0x350] sm:$0xf0]  ;;  %v3557_v18 = vor.u32 %v3890_v1, %v3554_v11  ;;  %v3822_v38 = vld [vmem:[#allocation6 + $0x24] sm:$0xf]  ;;  %v3640_v13 = vld [vmem:[#allocation6 + $0x2e8] sm:$0xf] }
 0x407   : > { %2793 = vmatpush.bf16.msrb.mxu0 %v3333_v51  ;;  %v3282_v43 = vld [vmem:[#allocation6 + $0x30] sm:$0xf0]  ;;  %v3854_v8 = vld [vmem:[#allocation6 + $0x124] sm:$0xf]  ;;  %v3685_v9 = vor.u32 %v3922_v2, %v3682_v14  ;;  %v3641_v53 = vor.u32 %v3913_v46, %v3640_v13  ;;  %v3624_v58 = vld [vmem:[#allocation6 + $0x2c8] sm:$0xf] }
 0x408   : > { %2806 = vmatpush.bf16.msrb.mxu1 %v3461_v30  ;;  %v3410_v20 = vld [vmem:[#allocation6 + $0x130] sm:$0xf0]  ;;  %v3886_v22 = vld [vmem:[#allocation6 + $0x224] sm:$0xf]  ;;  %v3285_v10 = vor.u32 %v3822_v38, %v3282_v43  ;;  %v3385_v30 = vor.u32 %v3849_v54, %v3384_v19  ;;  %v3909_v59 = vld [vmem:[#allocation6 + $0x2d4] sm:$0xf0] }
 0x409   : > { %2819 = vmatpush.bf16.msrb.mxu2 %v3589_v52  ;;  %v3538_v49 = vld [vmem:[#allocation6 + $0x230] sm:$0xf0]  ;;  %v3918_v6 = vld [vmem:[#allocation6 + $0x324] sm:$0xf]  ;;  %v3413_v23 = vor.u32 %v3854_v8, %v3410_v20  ;;  %v3513_v52 = vor.u32 %v3881_v12, %v3512_v41  ;;  %v3752_v56 = vld [vmem:[#allocation6 + $0x3c8] sm:$0xf]  ;;  %v3625_v62 = vor.u32 %v3909_v59, %v3624_v58 }
 0x40a   : > { %2832 = vmatpush.bf16.msrb.mxu3 %v3717_v47  ;;  %v3666_v15 = vld [vmem:[#allocation6 + $0x330] sm:$0xf0]  ;;  %v3818_v17 = vld [vmem:[#allocation6 + $0x4] sm:$0xf]  ;;  %v3541_v24 = vor.u32 %v3886_v22, %v3538_v49  ;;  %v3496_v47 = vld [vmem:[#allocation6 + $0x1c8] sm:$0xf] }
 0x40b   : > { %2794 = vmatpush.bf16.msrb.mxu0 %v3317_v60  ;;  %v3266_v21 = vld [vmem:[#allocation6 + $0x10] sm:$0xf0]  ;;  %v3850_v29 = vld [vmem:[#allocation6 + $0x104] sm:$0xf]  ;;  %v3669_v32 = vor.u32 %v3918_v6, %v3666_v15  ;;  %v3941_v60 = vld [vmem:[#allocation6 + $0x3d4] sm:$0xf0] }
 0x40c   : > { %2807 = vmatpush.bf16.msrb.mxu1 %v3445_v61  ;;  %v3394_v25 = vld [vmem:[#allocation6 + $0x110] sm:$0xf0]  ;;  %v3882_v37 = vld [vmem:[#allocation6 + $0x204] sm:$0xf]  ;;  %v3269_v45 = vor.u32 %v3818_v17, %v3266_v21  ;;  %v3369_v61 = vor.u32 %v3845_v7, %v3368_v34  ;;  %v3352_v33 = vld [vmem:[#allocation6 + $0xa8] sm:$0xf]  ;;  %v3753_v0 = vor.u32 %v3941_v60, %v3752_v56 }
 0x40d   : > { %2820 = vmatpush.bf16.msrb.mxu2 %v3573_v16  ;;  %v3522_v35 = vld [vmem:[#allocation6 + $0x210] sm:$0xf0]  ;;  %v3914_v36 = vld [vmem:[#allocation6 + $0x304] sm:$0xf]  ;;  %v3397_v3 = vor.u32 %v3850_v29, %v3394_v25  ;;  %v3497_v16 = vor.u32 %v3877_v55, %v3496_v47  ;;  %v3841_v63 = vld [vmem:[#allocation6 + $0xb4] sm:$0xf0] }
 0x40e   : > { %2833 = vmatpush.bf16.msrb.mxu3 %v3701_v57  ;;  %v3650_v39 = vld [vmem:[#allocation6 + $0x310] sm:$0xf0]  ;;  %v3525_v28 = vor.u32 %v3882_v37, %v3522_v35  ;;  %v3480_v57 = vld [vmem:[#allocation6 + $0x1a8] sm:$0xf]  ;;  %v3873_v1 = vld [vmem:[#allocation6 + $0x1b4] sm:$0xf0] }
 0x40f   : > { %2795 = vmatpush.bf16.msrb.mxu0 %v3301_v4  ;;  %v3653_v51 = vor.u32 %v3914_v36, %v3650_v39  ;;  %v3608_v11 = vld [vmem:[#allocation6 + $0x2a8] sm:$0xf]  ;;  %v3905_v2 = vld [vmem:[#allocation6 + $0x2b4] sm:$0xf0] }
 0x410   : > { %2808 = vmatpush.bf16.msrb.mxu1 %v3429_v5  ;;  %v3736_v14 = vld [vmem:[#allocation6 + $0x3a8] sm:$0xf]  ;;  %v3937_v4 = vld [vmem:[#allocation6 + $0x3b4] sm:$0xf0]  ;;  %v3353_v5 = vor.u32 %v3841_v63, %v3352_v33  ;;  %v3609_v38 = vor.u32 %v3905_v2, %v3608_v11 }
 0x411   : > { %2821 = vmatpush.bf16.msrb.mxu2 %v3557_v18  ;;  %v3481_v18 = vor.u32 %v3873_v1, %v3480_v57  ;;  %v3336_v43 = vld [vmem:[#allocation6 + $0x88] sm:$0xf]  ;;  %v3837_v8 = vld [vmem:[#allocation6 + $0x94] sm:$0xf0]  ;;  %v3737_v20 = vor.u32 %v3937_v4, %v3736_v14 }
 0x412   : > { %2834 = vmatpush.bf16.msrb.mxu3 %v3685_v9  ;;  %v3464_v9 = vld [vmem:[#allocation6 + $0x188] sm:$0xf]  ;;  %v3869_v22 = vld [vmem:[#allocation6 + $0x194] sm:$0xf0]  ;;  %v3337_v17 = vor.u32 %v3837_v8, %v3336_v43  ;;  %v3879_v43 = vld [vmem:[#allocation6 + $0x1ec] sm:$0xf] }
 0x413   : > { %2796 = vmatpush.bf16.msrb.mxu0 %v3285_v10  ;;  %v3592_v49 = vld [vmem:[#allocation6 + $0x288] sm:$0xf]  ;;  %v3901_v6 = vld [vmem:[#allocation6 + $0x294] sm:$0xf0]  ;;  %v3465_v21 = vor.u32 %v3869_v22, %v3464_v9  ;;  %v3514_v9 = vld [vmem:[#allocation6 + $0x1f8] sm:$0xf0] }
 0x414   : > { %2809 = vmatpush.bf16.msrb.mxu1 %v3413_v23  ;;  %v3720_v15 = vld [vmem:[#allocation6 + $0x388] sm:$0xf]  ;;  %v3933_v10 = vld [vmem:[#allocation6 + $0x394] sm:$0xf0]  ;;  %v3593_v23 = vor.u32 %v3901_v6, %v3592_v49  ;;  %v3642_v22 = vld [vmem:[#allocation6 + $0x2f8] sm:$0xf0] }
 0x415   : > { %2822 = vmatpush.bf16.msrb.mxu2 %v3541_v24  ;;  %v3320_v24 = vld [vmem:[#allocation6 + $0x68] sm:$0xf]  ;;  %v3833_v29 = vld [vmem:[#allocation6 + $0x74] sm:$0xf0]  ;;  %v3721_v37 = vor.u32 %v3933_v10, %v3720_v15  ;;  %v3943_v15 = vld [vmem:[#allocation6 + $0x3ec] sm:$0xf] }
 0x416   : > { %2835 = vmatpush.bf16.msrb.mxu3 %v3669_v32  ;;  %v3448_v25 = vld [vmem:[#allocation6 + $0x168] sm:$0xf]  ;;  %v3865_v32 = vld [vmem:[#allocation6 + $0x174] sm:$0xf0]  ;;  %v3321_v54 = vor.u32 %v3833_v29, %v3320_v24  ;;  %v3770_v10 = vld [vmem:[#allocation6 + $0x3f8] sm:$0xf0] }
 0x417   : > { %2797 = vmatpush.bf16.msrb.mxu0 %v3269_v45  ;;  %v3576_v35 = vld [vmem:[#allocation6 + $0x268] sm:$0xf]  ;;  %v3897_v36 = vld [vmem:[#allocation6 + $0x274] sm:$0xf0]  ;;  %v3449_v41 = vor.u32 %v3865_v32, %v3448_v25  ;;  %v3843_v29 = vld [vmem:[#allocation6 + $0xcc] sm:$0xf]  ;;  %v3773_v32 = vor.u32 %v3943_v15, %v3770_v10 }
 0x418   : > { %2810 = vmatpush.bf16.msrb.mxu1 %v3397_v3  ;;  %v3704_v39 = vld [vmem:[#allocation6 + $0x368] sm:$0xf]  ;;  %v3929_v19 = vld [vmem:[#allocation6 + $0x374] sm:$0xf0]  ;;  %v3577_v45 = vor.u32 %v3897_v36, %v3576_v35  ;;  %v3370_v25 = vld [vmem:[#allocation6 + $0xd8] sm:$0xf0] }
 0x419   : > { %2823 = vmatpush.bf16.msrb.mxu2 %v3525_v28  ;;  %v3304_v12 = vld [vmem:[#allocation6 + $0x48] sm:$0xf]  ;;  %v3829_v13 = vld [vmem:[#allocation6 + $0x54] sm:$0xf0]  ;;  %v3705_v3 = vor.u32 %v3929_v19, %v3704_v39  ;;  %v3498_v35 = vld [vmem:[#allocation6 + $0x1d8] sm:$0xf0] }
 0x41a   : > { %2836 = vmatpush.bf16.msrb.mxu3 %v3653_v51  ;;  %2798 = vmatmul.bf16.vlgmr.msrb.gmra.mxu0 %v4782_v31  ;;  %v3432_v46 = vld [vmem:[#allocation6 + $0x148] sm:$0xf]  ;;  %v3861_v28 = vld [vmem:[#allocation6 + $0x154] sm:$0xf0]  ;;  %v3907_v36 = vld [vmem:[#allocation6 + $0x2cc] sm:$0xf] }
 0x41b   : > { %2842 = vmatpush.bf16.msra.mxu0 %v3385_v30  ;;  %2811 = vmatmul.bf16.vlgmr.msrb.gmra.mxu1 %v4787_v42  ;;  %v3560_v48 = vld [vmem:[#allocation6 + $0x248] sm:$0xf]  ;;  %v3893_v50 = vld [vmem:[#allocation6 + $0x254] sm:$0xf0]  ;;  %v3626_v39 = vld [vmem:[#allocation6 + $0x2d8] sm:$0xf0] }
 0x41c   : > { %2855 = vmatpush.bf16.msra.mxu1 %v3513_v52  ;;  %2824 = vmatmul.bf16.vlgmr.msrb.gmra.mxu2 %v4780_v27  ;;  %v3688_v51 = vld [vmem:[#allocation6 + $0x348] sm:$0xf]  ;;  %v3925_v30 = vld [vmem:[#allocation6 + $0x354] sm:$0xf0]  ;;  %v3305_v52 = vor.u32 %v3829_v13, %v3304_v12  ;;  %v3561_v34 = vor.u32 %v3893_v50, %v3560_v48  ;;  %v3939_v19 = vld [vmem:[#allocation6 + $0x3cc] sm:$0xf]  ;;  %v3629_v12 = vor.u32 %v3907_v36, %v3626_v39 }
 0x41d   : > { %2868 = vmatpush.bf16.msra.mxu2 %v3641_v53  ;;  %2837 = vmatmul.bf16.vlgmr.msrb.gmra.mxu3 %v4785_v40  ;;  %v3433_v53 = vor.u32 %v3861_v28, %v3432_v46  ;;  %v3288_v7 = vld [vmem:[#allocation6 + $0x28] sm:$0xf]  ;;  %v3825_v47 = vld [vmem:[#allocation6 + $0x34] sm:$0xf0]  ;;  %v3689_v55 = vor.u32 %v3925_v30, %v3688_v51  ;;  %v3839_v13 = vld [vmem:[#allocation6 + $0xac] sm:$0xf] }
 0x41e   : > { %2881 = vmatpush.bf16.msra.mxu3 %v3769_v44  ;;  %v3416_v44 = vld [vmem:[#allocation6 + $0x128] sm:$0xf]  ;;  %v3857_v58 = vld [vmem:[#allocation6 + $0x134] sm:$0xf0]  ;;  %v3354_v46 = vld [vmem:[#allocation6 + $0xb8] sm:$0xf0] }
 0x41f   : > { %2843 = vmatpush.bf16.msra.mxu0 %v3369_v61  ;;  %v3544_v59 = vld [vmem:[#allocation6 + $0x228] sm:$0xf]  ;;  %v3889_v56 = vld [vmem:[#allocation6 + $0x234] sm:$0xf0]  ;;  %v3417_v63 = vor.u32 %v3857_v58, %v3416_v44  ;;  %v3482_v48 = vld [vmem:[#allocation6 + $0x1b8] sm:$0xf0] }
 0x420   : > { %2856 = vmatpush.bf16.msra.mxu1 %v3497_v16  ;;  %v3672_v60 = vld [vmem:[#allocation6 + $0x328] sm:$0xf]  ;;  %v3921_v61 = vld [vmem:[#allocation6 + $0x334] sm:$0xf0]  ;;  %v3289_v16 = vor.u32 %v3825_v47, %v3288_v7  ;;  %v3545_v57 = vor.u32 %v3889_v56, %v3544_v59  ;;  %v3903_v50 = vld [vmem:[#allocation6 + $0x2ac] sm:$0xf] }
 0x421   : > { %2869 = vmatpush.bf16.msra.mxu2 %v3625_v62  ;;  %v3272_v62 = vld [vmem:[#allocation6 + $0x8] sm:$0xf]  ;;  %v3821_v33 = vld [vmem:[#allocation6 + $0x14] sm:$0xf0]  ;;  %v3673_v2 = vor.u32 %v3921_v61, %v3672_v60  ;;  %v3610_v51 = vld [vmem:[#allocation6 + $0x2b8] sm:$0xf0] }
 0x422   : > { %2882 = vmatpush.bf16.msra.mxu3 %v3753_v0  ;;  %v3400_v0 = vld [vmem:[#allocation6 + $0x108] sm:$0xf]  ;;  %v3853_v1 = vld [vmem:[#allocation6 + $0x114] sm:$0xf0]  ;;  %v3273_v8 = vor.u32 %v3821_v33, %v3272_v62  ;;  %v3935_v30 = vld [vmem:[#allocation6 + $0x3ac] sm:$0xf]  ;;  %v3613_v7 = vor.u32 %v3903_v50, %v3610_v51 }
 0x423   : > { %2844 = vmatpush.bf16.msra.mxu0 %v3353_v5  ;;  %v3528_v11 = vld [vmem:[#allocation6 + $0x208] sm:$0xf]  ;;  %v3885_v14 = vld [vmem:[#allocation6 + $0x214] sm:$0xf0]  ;;  %v3401_v49 = vor.u32 %v3853_v1, %v3400_v0  ;;  %v3835_v47 = vld [vmem:[#allocation6 + $0x8c] sm:$0xf] }
 0x424   : > { %2857 = vmatpush.bf16.msra.mxu1 %v3481_v18  ;;  %v3656_v4 = vld [vmem:[#allocation6 + $0x308] sm:$0xf]  ;;  %v3917_v5 = vld [vmem:[#allocation6 + $0x314] sm:$0xf0]  ;;  %v3847_v18 = vld [vmem:[#allocation6 + $0xec] sm:$0xf]  ;;  %v3529_v6 = vor.u32 %v3885_v14, %v3528_v11 }
 0x425   : > { %2870 = vmatpush.bf16.msra.mxu2 %v3609_v38  ;;  %v3386_v38 = vld [vmem:[#allocation6 + $0xf8] sm:$0xf0]  ;;  %v3899_v56 = vld [vmem:[#allocation6 + $0x28c] sm:$0xf] }
 0x426   : > { %2883 = vmatpush.bf16.msra.mxu3 %v3737_v20  ;;  %v3911_v20 = vld [vmem:[#allocation6 + $0x2ec] sm:$0xf]  ;;  %v3338_v44 = vld [vmem:[#allocation6 + $0x98] sm:$0xf0] }
 0x427   : > { %2845 = vmatpush.bf16.msra.mxu0 %v3337_v17  ;;  %v3657_v17 = vor.u32 %v3917_v5, %v3656_v4  ;;  %v3645_v24 = vor.u32 %v3911_v20, %v3642_v22  ;;  %v3466_v59 = vld [vmem:[#allocation6 + $0x198] sm:$0xf0]  ;;  %v3931_v61 = vld [vmem:[#allocation6 + $0x38c] sm:$0xf]  ;;  %v3341_v62 = vor.u32 %v3835_v47, %v3338_v44 }
 0x428   : > { %2858 = vmatpush.bf16.msra.mxu1 %v3465_v21  ;;  %v3389_v21 = vor.u32 %v3847_v18, %v3386_v38  ;;  %v3594_v60 = vld [vmem:[#allocation6 + $0x298] sm:$0xf0]  ;;  %v3863_v1 = vld [vmem:[#allocation6 + $0x16c] sm:$0xf] }
 0x429   : > { %2871 = vmatpush.bf16.msra.mxu2 %v3593_v23  ;;  %v3517_v23 = vor.u32 %v3879_v43, %v3514_v9  ;;  %v3322_v0 = vld [vmem:[#allocation6 + $0x78] sm:$0xf0]  ;;  %v3895_v14 = vld [vmem:[#allocation6 + $0x26c] sm:$0xf] }
 0x42a   : > { %2884 = vmatpush.bf16.msra.mxu3 %v3721_v37  ;;  %v3875_v37 = vld [vmem:[#allocation6 + $0x1cc] sm:$0xf]  ;;  %v3578_v4 = vld [vmem:[#allocation6 + $0x278] sm:$0xf0] }
 0x42b   : > { %2846 = vmatpush.bf16.msra.mxu0 %v3321_v54  ;;  %v3754_v54 = vld [vmem:[#allocation6 + $0x3d8] sm:$0xf0]  ;;  %v3927_v5 = vld [vmem:[#allocation6 + $0x36c] sm:$0xf] }
 0x42c   : > { %2859 = vmatpush.bf16.msra.mxu1 %v3449_v41  ;;  %v3373_v41 = vor.u32 %v3843_v29, %v3370_v25  ;;  %v3757_v28 = vor.u32 %v3939_v19, %v3754_v54  ;;  %v3706_v18 = vld [vmem:[#allocation6 + $0x378] sm:$0xf0]  ;;  %v3827_v9 = vld [vmem:[#allocation6 + $0x4c] sm:$0xf] }
 0x42d   : > { %2872 = vmatpush.bf16.msra.mxu2 %v3577_v45  ;;  %v3501_v45 = vor.u32 %v3875_v37, %v3498_v35  ;;  %v3306_v20 = vld [vmem:[#allocation6 + $0x58] sm:$0xf0]  ;;  %v3859_v22 = vld [vmem:[#allocation6 + $0x14c] sm:$0xf] }
 0x42e   : > { %2885 = vmatpush.bf16.msra.mxu3 %v3705_v3  ;;  %v3871_v3 = vld [vmem:[#allocation6 + $0x1ac] sm:$0xf]  ;;  %v3562_v10 = vld [vmem:[#allocation6 + $0x258] sm:$0xf0] }
 0x42f   : > { %2847 = vmatpush.bf16.msra.mxu0 %v3305_v52  ;;  %v3738_v52 = vld [vmem:[#allocation6 + $0x3b8] sm:$0xf0]  ;;  %v3891_v15 = vld [vmem:[#allocation6 + $0x24c] sm:$0xf] }
 0x430   : > { %2860 = vmatpush.bf16.msra.mxu1 %v3433_v53  ;;  %v3357_v53 = vor.u32 %v3839_v13, %v3354_v46  ;;  %v3741_v58 = vor.u32 %v3935_v30, %v3738_v52  ;;  %v3565_v29 = vor.u32 %v3891_v15, %v3562_v10  ;;  %v3823_v25 = vld [vmem:[#allocation6 + $0x2c] sm:$0xf]  ;;  %v3290_v37 = vld [vmem:[#allocation6 + $0x38] sm:$0xf0] }
 0x431   : > { %2873 = vmatpush.bf16.msra.mxu2 %v3561_v34  ;;  %v3485_v34 = vor.u32 %v3871_v3, %v3482_v48  ;;  %v3418_v36 = vld [vmem:[#allocation6 + $0x138] sm:$0xf0]  ;;  %v3887_v39 = vld [vmem:[#allocation6 + $0x22c] sm:$0xf] }
 0x432   : > { %2886 = vmatpush.bf16.msra.mxu3 %v3689_v55  ;;  %v3867_v55 = vld [vmem:[#allocation6 + $0x18c] sm:$0xf]  ;;  %v3546_v19 = vld [vmem:[#allocation6 + $0x238] sm:$0xf0] }
 0x433   : > { %2848 = vmatpush.bf16.msra.mxu0 %v3289_v16  ;;  %v3722_v16 = vld [vmem:[#allocation6 + $0x398] sm:$0xf0]  ;;  %v3469_v33 = vor.u32 %v3867_v55, %v3466_v59  ;;  %v3919_v54 = vld [vmem:[#allocation6 + $0x32c] sm:$0xf]  ;;  %v3549_v13 = vor.u32 %v3887_v39, %v3546_v19 }
 0x434   : > { %2861 = vmatpush.bf16.msra.mxu1 %v3417_v63  ;;  %v3597_v63 = vor.u32 %v3899_v56, %v3594_v60  ;;  %v3725_v11 = vor.u32 %v3931_v61, %v3722_v16  ;;  %v3819_v46 = vld [vmem:[#allocation6 + $0xc] sm:$0xf]  ;;  %v3274_v3 = vld [vmem:[#allocation6 + $0x18] sm:$0xf0] }
 0x435   : > { %2874 = vmatpush.bf16.msra.mxu2 %v3545_v57  ;;  %v3831_v57 = vld [vmem:[#allocation6 + $0x6c] sm:$0xf]  ;;  %v3402_v50 = vld [vmem:[#allocation6 + $0x118] sm:$0xf0] }
 0x436   : > { %2887 = vmatpush.bf16.msra.mxu3 %v3673_v2  ;;  %v3450_v2 = vld [vmem:[#allocation6 + $0x178] sm:$0xf0]  ;;  %v3325_v38 = vor.u32 %v3831_v57, %v3322_v0  ;;  %v3883_v51 = vld [vmem:[#allocation6 + $0x20c] sm:$0xf] }
 0x437   : > { %2849 = vmatpush.bf16.msra.mxu0 %v3273_v8  ;;  %v3453_v43 = vor.u32 %v3863_v1, %v3450_v2  ;;  %v3581_v8 = vor.u32 %v3895_v14, %v3578_v4  ;;  %v3530_v30 = vld [vmem:[#allocation6 + $0x218] sm:$0xf0]  ;;  %v3915_v52 = vld [vmem:[#allocation6 + $0x30c] sm:$0xf] }
 0x438   : > { %2862 = vmatpush.bf16.msra.mxu1 %v3401_v49  ;;  %v3709_v49 = vor.u32 %v3927_v5, %v3706_v18  ;;  %v3533_v47 = vor.u32 %v3883_v51, %v3530_v30  ;;  %v2088_v55 = vld [vmem:[%s4870_s10] sm:$0xf] }
 0x439   : > { %2875 = vmatpush.bf16.msra.mxu2 %v3529_v6  ;;  %v3434_v6 = vld [vmem:[#allocation6 + $0x158] sm:$0xf0]  ;;  %v2732_v15 = vperm.slane %v2088_v55, 2 }
 0x43a   : > { %2888 = vmatpush.bf16.msra.mxu3 %v3657_v17  ;;  %2850 = vmatmul.bf16.vlgmr.msra.gmra.mxu0 %v4782_v31  ;;  %v3923_v17 = vld [vmem:[#allocation6 + $0x34c] sm:$0xf] }
 0x43b   : > { %2894 = vmatpush.bf16.msrb.mxu0 %v3389_v21  ;;  %2863 = vmatmul.bf16.vlgmr.msra.gmra.mxu1 %v4787_v42  ;;  %v3690_v21 = vld [vmem:[#allocation6 + $0x358] sm:$0xf0] }
 0x43c   : > { %2907 = vmatpush.bf16.msrb.mxu1 %v3517_v23  ;;  %2876 = vmatmul.bf16.vlgmr.msra.gmra.mxu2 %v4780_v27  ;;  %v3309_v23 = vor.u32 %v3827_v9, %v3306_v20  ;;  %v3693_v35 = vor.u32 %v3923_v17, %v3690_v21  ;;  %v2733_v21 = vperm.slane %v2088_v55, 3 }
 0x43d   : > { %2920 = vmatpush.bf16.msrb.mxu2 %v3645_v24  ;;  %2889 = vmatmul.bf16.vlgmr.msra.gmra.mxu3 %v4785_v40  ;;  %v3437_v24 = vor.u32 %v3859_v22, %v3434_v6  ;;  %v2731_v6 = vperm.slane %v2088_v55, 1 }
 0x43e   : > { %2933 = vmatpush.bf16.msrb.mxu3 %v3773_v32  ;;  %v3855_v32 = vld [vmem:[#allocation6 + $0x12c] sm:$0xf] }
 0x43f   : > { %2895 = vmatpush.bf16.msrb.mxu0 %v3373_v41  ;;  %v3674_v41 = vld [vmem:[#allocation6 + $0x338] sm:$0xf0] }
 0x440   : > { %2908 = vmatpush.bf16.msrb.mxu1 %v3501_v45  ;;  %v3293_v45 = vor.u32 %v3823_v25, %v3290_v37  ;;  %v3677_v48 = vor.u32 %v3919_v54, %v3674_v41 }
 0x441   : > { %2921 = vmatpush.bf16.msrb.mxu2 %v3629_v12  ;;  %v3421_v12 = vor.u32 %v3855_v32, %v3418_v36 }
 0x442   : > { %2934 = vmatpush.bf16.msrb.mxu3 %v3757_v28  ;;  %v3851_v28 = vld [vmem:[#allocation6 + $0x10c] sm:$0xf] }
 0x443   : > { %2896 = vmatpush.bf16.msrb.mxu0 %v3357_v53  ;;  %v3658_v53 = vld [vmem:[#allocation6 + $0x318] sm:$0xf0] }
 0x444   : > { %2909 = vmatpush.bf16.msrb.mxu1 %v3485_v34  ;;  %v3277_v34 = vor.u32 %v3819_v46, %v3274_v3  ;;  %v3661_v44 = vor.u32 %v3915_v52, %v3658_v53 }
 0x445   : > { %2922 = vmatpush.bf16.msrb.mxu2 %v3613_v7  ;;  %v3405_v7 = vor.u32 %v3851_v28, %v3402_v50 }
 0x446   : > { %2935 = vmatpush.bf16.msrb.mxu3 %v3741_v58  ;;  %v2730_v58 = vperm.slane %v2088_v55, 0 }
 0x447   : > { %2897 = vmatpush.bf16.msrb.mxu0 %v3341_v62 }
 0x448   : > { %2910 = vmatpush.bf16.msrb.mxu1 %v3469_v33 }
 0x449   : > { %2923 = vmatpush.bf16.msrb.mxu2 %v3597_v63 }
 0x44a   : > { %2936 = vmatpush.bf16.msrb.mxu3 %v3725_v11 }
 0x44b   : > { %2898 = vmatpush.bf16.msrb.mxu0 %v3325_v38 }
 0x44c   : > { %2911 = vmatpush.bf16.msrb.mxu1 %v3453_v43 }
 0x44d   : > { %2924 = vmatpush.bf16.msrb.mxu2 %v3581_v8 }
 0x44e   : > { %2937 = vmatpush.bf16.msrb.mxu3 %v3709_v49 }
 0x44f   : > { %2899 = vmatpush.bf16.msrb.mxu0 %v3309_v23 }
 0x450   : > { %2912 = vmatpush.bf16.msrb.mxu1 %v3437_v24 }
 0x451   : > { %2925 = vmatpush.bf16.msrb.mxu2 %v3565_v29 }
 0x452   : > { %2938 = vmatpush.bf16.msrb.mxu3 %v3693_v35 }
 0x453   : > { %2900 = vmatpush.bf16.msrb.mxu0 %v3293_v45 }
 0x454   : > { %2913 = vmatpush.bf16.msrb.mxu1 %v3421_v12 }
 0x455   : > { %2926 = vmatpush.bf16.msrb.mxu2 %v3549_v13 }
 0x456   : > { %2939 = vmatpush.bf16.msrb.mxu3 %v3677_v48 }
 0x457   : > { %2901 = vmatpush.bf16.msrb.mxu0 %v3277_v34 }
 0x458   : > { %2914 = vmatpush.bf16.msrb.mxu1 %v3405_v7 }
 0x459   : > { %2927 = vmatpush.bf16.msrb.mxu2 %v3533_v47 }
 0x45a   : > { %2940 = vmatpush.bf16.msrb.mxu3 %v3661_v44  ;;  %2902 = vmatmul.bf16.vlgmr.msrb.gmra.mxu0 %v4782_v31 }
 0x45b   : > { %2915 = vmatmul.bf16.vlgmr.msrb.gmra.mxu1 %v4787_v42 }
 0x45c   : > { %2928 = vmatmul.bf16.vlgmr.msrb.gmra.mxu2 %v4780_v27 }
 0x45d   : > { %2941 = vmatmul.bf16.vlgmr.msrb.gmra.mxu3 %v4785_v40 }
 0x477   : > { %v2747_v59 = vpop.f32.mrf.mxu0 }
 0x478   : > { %v2748_v56 = vadd.f32 %v2747_v59, %v2730_v58 }
 0x47b   : > { %v2760_v60 = vpop.f32.mrf.mxu1 }
 0x47c   : > { %v2761_v61 = vadd.f32 %v2760_v60, %v2748_v56 }
 0x47f   : > { %v2773_v16 = vpop.f32.mrf.mxu2  ;;  %v2749_v31 = vpop.f32.mrf.mxu0 }
 0x480   : > { %v2774_v62 = vadd.f32 %v2773_v16, %v2761_v61  ;;  %v2786_v33 = vpop.f32.mrf.mxu3 }
 0x482   : > { %v2787_v63 = vadd.f32 %v2786_v33, %v2774_v62 }
 0x483   : > { %v2762_v57 = vpop.f32.mrf.mxu1 }
 0x487   : > { %v2775_v42 = vpop.f32.mrf.mxu2 }
 0x488   : > { %v2788_v0 = vpop.f32.mrf.mxu3 }
 0x497   : > { %v2799_v27 = vpop.f32.mrf.mxu0 }
 0x498   : > { %v2812_v1 = vpop.f32.mrf.mxu1  ;;  %v2800_v10 = vadd.f32 %v2799_v27, %v2731_v6 }
 0x49a   : > { %v2813_v23 = vadd.f32 %v2812_v1, %v2800_v10 }
 0x49f   : > { %v2825_v40 = vpop.f32.mrf.mxu2  ;;  %v2801_v2 = vpop.f32.mrf.mxu0 }
 0x4a0   : > { %v2838_v11 = vpop.f32.mrf.mxu3  ;;  %v2814_v14 = vpop.f32.mrf.mxu1  ;;  %v2826_v32 = vadd.f32 %v2825_v40, %v2813_v23 }
 0x4a2   : > { %v2839_v39 = vadd.f32 %v2838_v11, %v2826_v32 }
 0x4a4   : > { %v2950_v46 = vrot.slane %v2839_v39, 7 }
 0x4a6   : > { %v2953_v50 = vsel %vm1929_vm11, %v2787_v63, %v2950_v46 }
 0x4a7   : > { %v2827_v4 = vpop.f32.mrf.mxu2 }
 0x4a8   : > { %v2840_v5 = vpop.f32.mrf.mxu3 }
 0x4b7   : > { %v2851_v18 = vpop.f32.mrf.mxu0 }
 0x4b8   : > { %v2864_v38 = vpop.f32.mrf.mxu1  ;;  %v2852_v17 = vadd.f32 %v2851_v18, %v2732_v15 }
 0x4ba   : > { %v2865_v24 = vadd.f32 %v2864_v38, %v2852_v17 }
 0x4bf   : > { %v2877_v43 = vpop.f32.mrf.mxu2  ;;  %v2853_v9 = vpop.f32.mrf.mxu0 }
 0x4c0   : > { %v2890_v8 = vpop.f32.mrf.mxu3  ;;  %v2866_v20 = vpop.f32.mrf.mxu1  ;;  %v2878_v35 = vadd.f32 %v2877_v43, %v2865_v24 }
 0x4c2   : > { %v2891_v54 = vadd.f32 %v2890_v8, %v2878_v35 }
 0x4c4   : > { %v2951_v28 = vrot.slane %v2891_v54, 6 }
 0x4c7   : > { %v2879_v22 = vpop.f32.mrf.mxu2 }
 0x4c8   : > { %v2892_v49 = vpop.f32.mrf.mxu3 }
 0x4d7   : > { %v2903_v29 = vpop.f32.mrf.mxu0 }
 0x4d8   : > { %v2904_v25 = vadd.f32 %v2903_v29, %v2733_v21  ;;  %v2916_v37 = vpop.f32.mrf.mxu1 }
 0x4da   : > { %v2917_v36 = vadd.f32 %v2916_v37, %v2904_v25 }
 0x4df   : > { %v2929_v19 = vpop.f32.mrf.mxu2  ;;  %v2905_v12 = vpop.f32.mrf.mxu0 }
 0x4e0   : > { %v2930_v41 = vadd.f32 %v2929_v19, %v2917_v36  ;;  %v2942_v45 = vpop.f32.mrf.mxu3  ;;  %v2918_v13 = vpop.f32.mrf.mxu1 }
 0x4e2   : > { %v2943_v3 = vadd.f32 %v2942_v45, %v2930_v41 }
 0x4e4   : > { %v2952_v48 = vrot.slane %v2943_v3, 5 }
 0x4e6   : > { %v2954_v51 = vsel %vm1931_vm9, %v2951_v28, %v2952_v48 }
 0x4e7   : > { %v2955_v30 = vsel %vm1933_vm12, %v2953_v50, %v2954_v51  ;;  %v2931_v52 = vpop.f32.mrf.mxu2 }
 0x4e8   : > { %2957 = vst.msk [vmem:[%s433_s26] sm:$0xf] %vm4773_vm13, %v2955_v30  ;;  %v2944_v53 = vpop.f32.mrf.mxu3 }
 0x4e9 PF: > { %s3775_s16 = sshll.u32 %s4236_s21, 2  ;;  %s4894_s27 = sld [smem:[#allocation19_spill]] }
 0x4ea   : > { %s2971_s29 = sshll.u32 %s433_s26, 4  ;;  %s2959_s13 = scalar_lea.sflag [#allocation5], %s431_s11  ;;  %s2972_s29 = int_to_ptr.vmem [resolvable:$true] %s2971_s29 }
 0x4ef   : > { %s2969_s28 = scalar_lea.hbm %s4894_s27, %s3775_s16  ;;  %s4166_s15 = scalar_lea.hbm %s4894_s27, 8 }
 0x4f0   : > { %s2973_s12 = sshll.u32 %s2969_s28, 4  ;;  %s2974_s12 = int_to_ptr.hbm [resolvable:$true] %s2973_s12 }
 0x4f1   : > { %s4160_s14 = sshra.s32 %s2974_s12, 4  ;;  %s4161_s14 = int_to_ptr.hbm [resolvable:$true] %s4160_s14 }
 0x4f2   : > { %s4162_s25 = scalar_lea.hbm %s4161_s14, 4  ;;  %p4167_p10 = scmp.lt.s32.totalorder %s4161_s14, %s4894_s27 }
 0x4f3   : > { %p4163_p6 = scmp.ne.s32.totalorder %s4161_s14, %s4162_s25  ;;  %p4168_p11 = scmp.lt.s32.totalorder %s4166_s15, %s4162_s25 }
 0x4f5   : > { %p4164_p7 = pnand %p4163_p6, %p4368_p3  ;;  %p4169_p12 = por %p4168_p11, %p4167_p10 }
 0x4f7   : > { %p4165_p8 = pneg %p4164_p7 }
 0x4f9   : > { %p4170_p13 = pnand %p4169_p12, %p4165_p8 }
 0x4fb   : > { %4173 = shalt.err (!%p4170_p13)
}
 0x4fc   : > { %3970 = dma.vmem_to_hbm [thread:$0]  (%p4368_p3), %s2972_s29, 64, %s2974_s12, %s2959_s13  }
 0x4fd PF: > { %s4895_s11 = sld [smem:[#allocation15_spill]] }
 0x4fe   : > { %s4896_s17 = sld [smem:[#allocation12_spill]] }
 0x503   : > { %p3987_p0 = scmp.ge.s32.totalorder %s4895_s11, 2 }
 0x504   : > { %s2985_s24 = sand.u32 1, %s4896_s17  }
 0x505   : > { %p3980_p1 = pnand %p3987_p0, %p4378_p9  ;;  %s2986_s28 = scalar_lea.sflag [#allocation5], %s2985_s24 }
 0x507   : > { %p3981_p2 = pneg %p3980_p1 }
 0x509   : > { %4215 = dma.done.wait (%p3981_p2), %s2986_s28, 64  }
 0x50a   : > { %4217 = vsyncadd (%p3981_p2), %s2986_s28, 4294967232  ;;  %s26_s24 = sadd.s32 1, %s4895_s11   ;;  %s4898_s20 = sld [smem:[#allocation13_spill]] }
 0x50b   : > { %p23_p4 = scmp.ge.s32.totalorder %s26_s24, 6   ;;  %s4899_s21 = sld [smem:[#allocation14_spill]] }
 0x50c   : > { %s4900_s30 = sld [smem:[#allocation16_spill]]  ;;  %s4902_s17 = smov %s4224_s18 }
 0x50d   : > { %s4901_s23 = sld [smem:[#allocation17_spill]]  ;;  %s4903_s18 = smov %s4228_s19 }
 0x50e   : > { %s4904_s19 = smov %s4398_s22  ;;  %25 = sbr.rel (!%p23_p4) target bundleno = 9 (0x9), region = 116 }
 0x512   : > { %s4905_s22 = smov %s4900_s30 }
 0x513   :  { %2992 = vsyncpa [#allocation4], 1 }
 0x514   :  { %2994 = vsyncpa [#allocation4 + $0x1], 1 }
 0x515   :  { %2995 = vsyncpa [#allocation7], 1 }
 0x516   :  { %2996 = vsyncpa [#allocation5], 1 }
 0x517   :  { %2998 = vsyncpa [#allocation5 + $0x1], 1 }

</bundles_post_ra>
